<compile_context>
chip_gen: v7x
topology: tpu7x:2x2x1
jax: 0.10.0
libtpu: 0.0.40
codegen_flags: <defaults>
</compile_context>

<pallas_src>
import functools
import math

import jax
import jax.numpy as jnp
from jax import lax
from jax.experimental import pallas as pl
from jax.experimental.pallas import tpu as pltpu


# ------------------------------- Pallas kernel -------------------------------

_PAD = 128  # lane-aligned zero pad on each side of the flattened pixel axis (>= W+1)


def _build_patch(xb, mask_m1, mask_p1, *, H, W, C):
    """im2col in pixel-lane space.

    xb:      (C, H*W) bf16 image (channels on sublanes, flattened pixels on lanes)
    returns: (9*C, H*W) bf16 patch, row index r = (ky*3+kx)*C + ci, equal to
             x[ci, h+ky-1, w+kx-1] (zero outside the image) for output pixel p = h*W+w.
    """
    P = H * W
    zpad = jnp.zeros((C, _PAD), xb.dtype)
    # lane-aligned concat (both pads are 128 lanes wide)
    xpf = jnp.concatenate([zpad, xb, zpad], axis=1)          # (C, P + 2*_PAD)

    taps = []
    for ky in range(3):
        for kx in range(3):
            d = (ky - 1) * W + (kx - 1)                       # flat pixel shift
            t = xpf[:, _PAD + d:_PAD + d + P]                 # zero-filled shift, (C, P)
            if kx == 0:                                       # reads w-1 -> invalid at w == 0
                t = jnp.where(mask_m1, t, 0)
            elif kx == 2:                                     # reads w+1 -> invalid at w == W-1
                t = jnp.where(mask_p1, t, 0)
            taps.append(t)
    # sublane-dim concat at multiples of C (tile-aligned) -> cheap vreg placement
    return jnp.concatenate(taps, axis=0)                      # (9*C, P)


def _resblock_kernel(x_ref, w1_ref, b1_ref, w2_ref, b2_ref, o_ref, *, H, W, C):
    # x_ref : (1, C, H*W) f32      lane-dense input block
    # w*_ref: (C, 9*C)    bf16     packed conv weights (Cout, (ky,kx,Cin))
    # b*_ref: (C, 1)      f32
    # o_ref : (1, C, H*W) f32
    P = H * W

    x_f32 = x_ref[0]                                  # (C, P) f32 (kept for the residual)
    xb = x_f32.astype(jnp.bfloat16)                   # single f32->bf16 cast of the input

    # width-boundary masks, shared by both convs (depend only on the lane index)
    col = lax.broadcasted_iota(jnp.int32, (1, P), 1) % W
    mask_m1 = col != 0                                # valid lanes for the dx = -1 taps
    mask_p1 = col != (W - 1)                          # valid lanes for the dx = +1 taps

    # ---------------- conv1 + bias + ReLU : one K = 9C MXU matmul ----------------
    p1 = _build_patch(xb, mask_m1, mask_p1, H=H, W=W, C=C)            # (9C, P) bf16
    h1 = jnp.dot(w1_ref[...], p1, preferred_element_type=jnp.float32)  # (C, P) f32
    h1 = jnp.maximum(h1 + b1_ref[...], 0.0).astype(jnp.bfloat16)       # ReLU'd mid, bf16

    # ---------------- conv2 + bias ------------------------------------------------
    p2 = _build_patch(h1, mask_m1, mask_p1, H=H, W=W, C=C)            # (9C, P) bf16
    y = jnp.dot(w2_ref[...], p2, preferred_element_type=jnp.float32) + b2_ref[...]

    # ---------------- residual add (f32) + lane-dense store -----------------------
    o_ref[0] = (x_f32 + y).astype(o_ref.dtype)


# ------------------------------- wrapper (NCHW API) -------------------------------

def residual_block_nobn(x_nchw, params):
    """x_nchw: (N, C, H, W) f32 -> (N, C, H, W) f32."""
    w1, b1, w2, b2 = params["w1"], params["b1"], params["w2"], params["b2"]
    N, C, H, W = x_nchw.shape
    P = H * W
    assert W + 1 <= _PAD

    # NCHW -> (N, C, H*W): identical row-major layout, so this reshape is free (no transpose).
    x = x_nchw.reshape(N, C, P).astype(jnp.float32)

    def pack_w(w):  # torch OIHW (Co, Ci, 3, 3) -> (Co, 9*Ci), col index = (ky*3+kx)*Ci + ci
        return jnp.transpose(w, (0, 2, 3, 1)).reshape(C, 9 * C).astype(jnp.bfloat16)

    w1m, w2m = pack_w(w1), pack_w(w2)
    b1c = b1.reshape(C, 1).astype(jnp.float32)
    b2c = b2.reshape(C, 1).astype(jnp.float32)

    flops = 2 * (2 * N * P * (9 * C) * C)                         # two 3x3 convs
    bytes_accessed = 2 * N * C * P * 4 + 2 * C * 9 * C * 2 + 2 * C * 4

    out = pl.pallas_call(
        functools.partial(_resblock_kernel, H=H, W=W, C=C),
        out_shape=jax.ShapeDtypeStruct((N, C, P), jnp.float32),
        grid=(N,),
        in_specs=[
            pl.BlockSpec((1, C, P), lambda n: (n, 0, 0)),
            pl.BlockSpec((C, 9 * C), lambda n: (0, 0)),
            pl.BlockSpec((C, 1), lambda n: (0, 0)),
            pl.BlockSpec((C, 9 * C), lambda n: (0, 0)),
            pl.BlockSpec((C, 1), lambda n: (0, 0)),
        ],
        out_specs=pl.BlockSpec((1, C, P), lambda n: (n, 0, 0)),
        compiler_params=pltpu.CompilerParams(
            dimension_semantics=("parallel",),
            vmem_limit_bytes=64 * 1024 * 1024,
        ),
        cost_estimate=pl.CostEstimate(flops=flops, transcendentals=0,
                                      bytes_accessed=bytes_accessed),
    )(x, w1m, b1c, w2m, b2c)

    return out.reshape(N, C, H, W)


# ------------------------ parameters (kaiming * 0.1, zero bias) ------------------------

def init_params(key, nf=64, scale=0.1):
    k1, k2 = jax.random.split(key)
    fan_in = nf * 3 * 3
    std = math.sqrt(2.0 / fan_in)          # kaiming_normal_(a=0, mode='fan_in')
    w1 = jax.random.normal(k1, (nf, nf, 3, 3), jnp.float32) * std * scale
    w2 = jax.random.normal(k2, (nf, nf, 3, 3), jnp.float32) * std * scale
    b1 = jnp.zeros((nf,), jnp.float32)
    b2 = jnp.zeros((nf,), jnp.float32)
    return {"w1": w1, "b1": b1, "w2": w2, "b2": b2}


# ------------------------------- plain-JAX reference -------------------------------

def ref_forward(x, params):
    w1, b1, w2, b2 = params["w1"], params["b1"], params["w2"], params["b2"]
    dn = jax.lax.conv_dimension_numbers(x.shape, w1.shape, ("NCHW", "OIHW", "NCHW"))
    y = jax.lax.conv_general_dilated(x, w1, (1, 1), ((1, 1), (1, 1)),
                                     dimension_numbers=dn,
                                     precision=jax.lax.Precision.HIGHEST)
    y = jnp.maximum(y + b1[None, :, None, None], 0.0)
    y = jax.lax.conv_general_dilated(y, w2, (1, 1), ((1, 1), (1, 1)),
                                     dimension_numbers=dn,
                                     precision=jax.lax.Precision.HIGHEST)
    return x + y + b2[None, :, None, None]


# ------------------------------------ main ------------------------------------

if __name__ == "__main__":
    key = jax.random.PRNGKey(0)
    kp, kx = jax.random.split(key)

    # nf=64 is the module default; N=4 gives >=2 pipelined grid steps per TensorCore on v7x.
    NF, N, H, W = 64, 4, 16, 16
    params = init_params(kp, nf=NF)
    x = jax.random.normal(kx, (N, NF, H, W), jnp.float32)

    fwd = jax.jit(lambda inp: residual_block_nobn(inp, params))
    out = jax.block_until_ready(fwd(x))
    assert out.shape == (N, NF, H, W)

    # NOTE: MXU operands are bf16 (f32 accumulation); with the module's 0.1-scaled init the
    # error vs. the f32 HIGHEST reference is << 5e-2.
    ref = jax.block_until_ready(ref_forward(x, params))
    err = float(jnp.max(jnp.abs(out - ref)))
    assert err < 5e-2, f"max abs err too large: {err}"

    print("KERNEL_OK")
</pallas_src>

<mosaic_0001>
module attributes {stable_mosaic.version = 11 : i64} {
  func.func @_resblock_kernel(%arg0: i32, %arg1: memref<1x64x256xf32, #tpu.memory_space<vmem>>, %arg2: memref<64x576xbf16, #tpu.memory_space<vmem>>, %arg3: memref<64x1xf32, #tpu.memory_space<vmem>>, %arg4: memref<64x576xbf16, #tpu.memory_space<vmem>>, %arg5: memref<64x1xf32, #tpu.memory_space<vmem>>, %arg6: memref<1x64x256xf32, #tpu.memory_space<vmem>>) attributes {dimension_semantics = [#tpu.dimension_semantics<parallel>], iteration_bounds = array<i64: 4>, scalar_prefetch = 0 : i64, scratch_operands = 0 : i64, tpu.core_type = #tpu.core_type<tc>, window_params = [{transform_indices = @transform_0, window_bounds = array<i64: 1, 64, 256>}, {pipeline_mode = #tpu.pipeline_mode<synchronous>, transform_indices = @transform_1, window_bounds = array<i64: 64, 576>}, {pipeline_mode = #tpu.pipeline_mode<synchronous>, transform_indices = @transform_2, window_bounds = array<i64: 64, 1>}, {pipeline_mode = #tpu.pipeline_mode<synchronous>, transform_indices = @transform_3, window_bounds = array<i64: 64, 576>}, {pipeline_mode = #tpu.pipeline_mode<synchronous>, transform_indices = @transform_4, window_bounds = array<i64: 64, 1>}, {transform_indices = @transform_5, window_bounds = array<i64: 1, 64, 256>}]} {
    %c0 = arith.constant 0 : index
    %c0_0 = arith.constant 0 : index
    %c0_1 = arith.constant 0 : index
    %0 = vector.load %arg1[%c0, %c0_0, %c0_1] : memref<1x64x256xf32, #tpu.memory_space<vmem>>, vector<1x64x256xf32>
    %1 = vector.shape_cast %0 : vector<1x64x256xf32> to vector<64x256xf32>
    %2 = arith.truncf %1 : vector<64x256xf32> to vector<64x256xbf16>
    %3 = tpu.iota {dimensions = array<i32: 1>} : vector<1x256xi32>
    %c16_i32 = arith.constant 16 : i32
    %c0_i32 = arith.constant 0 : i32
    %4 = arith.cmpi eq, %c16_i32, %c0_i32 : i32
    %c1_i32 = arith.constant 1 : i32
    %5 = arith.select %4, %c1_i32, %c16_i32 : i32
    %6 = vector.broadcast %5 : i32 to vector<1x256xi32>
    %7 = arith.remsi %3, %6 : vector<1x256xi32>
    %c0_i32_2 = arith.constant 0 : i32
    %8 = vector.broadcast %c0_i32_2 : i32 to vector<1x256xi32>
    %9 = arith.cmpi ne, %7, %8 : vector<1x256xi32>
    %c0_i32_3 = arith.constant 0 : i32
    %10 = vector.broadcast %c0_i32_3 : i32 to vector<1x256xi32>
    %11 = arith.cmpi slt, %7, %10 : vector<1x256xi32>
    %c0_i32_4 = arith.constant 0 : i32
    %12 = arith.cmpi slt, %5, %c0_i32_4 : i32
    %13 = vector.broadcast %12 : i1 to vector<1x256xi1>
    %14 = vector.broadcast %13 : vector<1x256xi1> to vector<1x256xi1>
    %15 = arith.xori %11, %14 : vector<1x256xi1>
    %16 = arith.andi %15, %9 : vector<1x256xi1>
    %17 = vector.broadcast %5 : i32 to vector<1x256xi32>
    %18 = arith.addi %7, %17 : vector<1x256xi32>
    %19 = arith.select %16, %18, %7 : vector<1x256xi1>, vector<1x256xi32>
    %c0_i32_5 = arith.constant 0 : i32
    %20 = vector.broadcast %c0_i32_5 : i32 to vector<1x256xi32>
    %21 = arith.cmpi ne, %19, %20 : vector<1x256xi32>
    %c15_i32 = arith.constant 15 : i32
    %22 = vector.broadcast %c15_i32 : i32 to vector<1x256xi32>
    %23 = arith.cmpi ne, %19, %22 : vector<1x256xi32>
    %cst = arith.constant 0.000000e+00 : bf16
    %24 = vector.broadcast %cst : bf16 to vector<64x128xbf16>
    %25 = tpu.concatenate %24, %2, %24 in 1 : vector<64x128xbf16>, vector<64x256xbf16>, vector<64x128xbf16> -> vector<64x512xbf16>
    %26 = vector.extract_strided_slice %25 {offsets = [0, 111], sizes = [64, 256], strides = [1, 1]} : vector<64x512xbf16> to vector<64x256xbf16>
    %c0_i32_6 = arith.constant 0 : i32
    %27 = arith.sitofp %c0_i32_6 : i32 to bf16
    %28 = vector.shape_cast %21 : vector<1x256xi1> to vector<1x256xi1>
    %29 = vector.broadcast %28 : vector<1x256xi1> to vector<64x256xi1>
    %30 = vector.broadcast %27 : bf16 to vector<64x256xbf16>
    %31 = arith.select %29, %26, %30 : vector<64x256xi1>, vector<64x256xbf16>
    %32 = vector.extract_strided_slice %25 {offsets = [0, 112], sizes = [64, 256], strides = [1, 1]} : vector<64x512xbf16> to vector<64x256xbf16>
    %33 = vector.extract_strided_slice %25 {offsets = [0, 113], sizes = [64, 256], strides = [1, 1]} : vector<64x512xbf16> to vector<64x256xbf16>
    %c0_i32_7 = arith.constant 0 : i32
    %34 = arith.sitofp %c0_i32_7 : i32 to bf16
    %35 = vector.shape_cast %23 : vector<1x256xi1> to vector<1x256xi1>
    %36 = vector.broadcast %35 : vector<1x256xi1> to vector<64x256xi1>
    %37 = vector.broadcast %34 : bf16 to vector<64x256xbf16>
    %38 = arith.select %36, %33, %37 : vector<64x256xi1>, vector<64x256xbf16>
    %39 = vector.extract_strided_slice %25 {offsets = [0, 127], sizes = [64, 256], strides = [1, 1]} : vector<64x512xbf16> to vector<64x256xbf16>
    %c0_i32_8 = arith.constant 0 : i32
    %40 = arith.sitofp %c0_i32_8 : i32 to bf16
    %41 = vector.shape_cast %21 : vector<1x256xi1> to vector<1x256xi1>
    %42 = vector.broadcast %41 : vector<1x256xi1> to vector<64x256xi1>
    %43 = vector.broadcast %40 : bf16 to vector<64x256xbf16>
    %44 = arith.select %42, %39, %43 : vector<64x256xi1>, vector<64x256xbf16>
    %45 = vector.extract_strided_slice %25 {offsets = [0, 128], sizes = [64, 256], strides = [1, 1]} : vector<64x512xbf16> to vector<64x256xbf16>
    %46 = vector.extract_strided_slice %25 {offsets = [0, 129], sizes = [64, 256], strides = [1, 1]} : vector<64x512xbf16> to vector<64x256xbf16>
    %c0_i32_9 = arith.constant 0 : i32
    %47 = arith.sitofp %c0_i32_9 : i32 to bf16
    %48 = vector.shape_cast %23 : vector<1x256xi1> to vector<1x256xi1>
    %49 = vector.broadcast %48 : vector<1x256xi1> to vector<64x256xi1>
    %50 = vector.broadcast %47 : bf16 to vector<64x256xbf16>
    %51 = arith.select %49, %46, %50 : vector<64x256xi1>, vector<64x256xbf16>
    %52 = vector.extract_strided_slice %25 {offsets = [0, 143], sizes = [64, 256], strides = [1, 1]} : vector<64x512xbf16> to vector<64x256xbf16>
    %c0_i32_10 = arith.constant 0 : i32
    %53 = arith.sitofp %c0_i32_10 : i32 to bf16
    %54 = vector.shape_cast %21 : vector<1x256xi1> to vector<1x256xi1>
    %55 = vector.broadcast %54 : vector<1x256xi1> to vector<64x256xi1>
    %56 = vector.broadcast %53 : bf16 to vector<64x256xbf16>
    %57 = arith.select %55, %52, %56 : vector<64x256xi1>, vector<64x256xbf16>
    %58 = vector.extract_strided_slice %25 {offsets = [0, 144], sizes = [64, 256], strides = [1, 1]} : vector<64x512xbf16> to vector<64x256xbf16>
    %59 = vector.extract_strided_slice %25 {offsets = [0, 145], sizes = [64, 256], strides = [1, 1]} : vector<64x512xbf16> to vector<64x256xbf16>
    %c0_i32_11 = arith.constant 0 : i32
    %60 = arith.sitofp %c0_i32_11 : i32 to bf16
    %61 = vector.shape_cast %23 : vector<1x256xi1> to vector<1x256xi1>
    %62 = vector.broadcast %61 : vector<1x256xi1> to vector<64x256xi1>
    %63 = vector.broadcast %60 : bf16 to vector<64x256xbf16>
    %64 = arith.select %62, %59, %63 : vector<64x256xi1>, vector<64x256xbf16>
    %65 = tpu.concatenate %31, %32, %38, %44, %45, %51, %57, %58, %64 in 0 : vector<64x256xbf16>, vector<64x256xbf16>, vector<64x256xbf16>, vector<64x256xbf16>, vector<64x256xbf16>, vector<64x256xbf16>, vector<64x256xbf16>, vector<64x256xbf16>, vector<64x256xbf16> -> vector<576x256xbf16>
    %c0_12 = arith.constant 0 : index
    %c0_13 = arith.constant 0 : index
    %66 = vector.load %arg2[%c0_12, %c0_13] : memref<64x576xbf16, #tpu.memory_space<vmem>>, vector<64x576xbf16>
    %cst_14 = arith.constant dense<0.000000e+00> : vector<64x256xf32>
    %67 = tpu.matmul %66, %65, %cst_14 {dimension_numbers = #tpu.dot_dimension_numbers<[1], [0], [0], [1], [0, 0, 1, 1], [], []>} : vector<64x576xbf16>, vector<576x256xbf16>, vector<64x256xf32> -> vector<64x256xf32>
    %c0_15 = arith.constant 0 : index
    %c0_16 = arith.constant 0 : index
    %68 = vector.load %arg3[%c0_15, %c0_16] : memref<64x1xf32, #tpu.memory_space<vmem>>, vector<64x1xf32>
    %69 = vector.broadcast %68 : vector<64x1xf32> to vector<64x256xf32>
    %70 = arith.addf %67, %69 : vector<64x256xf32>
    %cst_17 = arith.constant 0.000000e+00 : f32
    %71 = vector.broadcast %cst_17 : f32 to vector<64x256xf32>
    %72 = arith.maximumf %70, %71 : vector<64x256xf32>
    %73 = arith.truncf %72 : vector<64x256xf32> to vector<64x256xbf16>
    %cst_18 = arith.constant 0.000000e+00 : bf16
    %74 = vector.broadcast %cst_18 : bf16 to vector<64x128xbf16>
    %75 = tpu.concatenate %74, %73, %74 in 1 : vector<64x128xbf16>, vector<64x256xbf16>, vector<64x128xbf16> -> vector<64x512xbf16>
    %76 = vector.extract_strided_slice %75 {offsets = [0, 111], sizes = [64, 256], strides = [1, 1]} : vector<64x512xbf16> to vector<64x256xbf16>
    %c0_i32_19 = arith.constant 0 : i32
    %77 = arith.sitofp %c0_i32_19 : i32 to bf16
    %78 = vector.shape_cast %21 : vector<1x256xi1> to vector<1x256xi1>
    %79 = vector.broadcast %78 : vector<1x256xi1> to vector<64x256xi1>
    %80 = vector.broadcast %77 : bf16 to vector<64x256xbf16>
    %81 = arith.select %79, %76, %80 : vector<64x256xi1>, vector<64x256xbf16>
    %82 = vector.extract_strided_slice %75 {offsets = [0, 112], sizes = [64, 256], strides = [1, 1]} : vector<64x512xbf16> to vector<64x256xbf16>
    %83 = vector.extract_strided_slice %75 {offsets = [0, 113], sizes = [64, 256], strides = [1, 1]} : vector<64x512xbf16> to vector<64x256xbf16>
    %c0_i32_20 = arith.constant 0 : i32
    %84 = arith.sitofp %c0_i32_20 : i32 to bf16
    %85 = vector.shape_cast %23 : vector<1x256xi1> to vector<1x256xi1>
    %86 = vector.broadcast %85 : vector<1x256xi1> to vector<64x256xi1>
    %87 = vector.broadcast %84 : bf16 to vector<64x256xbf16>
    %88 = arith.select %86, %83, %87 : vector<64x256xi1>, vector<64x256xbf16>
    %89 = vector.extract_strided_slice %75 {offsets = [0, 127], sizes = [64, 256], strides = [1, 1]} : vector<64x512xbf16> to vector<64x256xbf16>
    %c0_i32_21 = arith.constant 0 : i32
    %90 = arith.sitofp %c0_i32_21 : i32 to bf16
    %91 = vector.shape_cast %21 : vector<1x256xi1> to vector<1x256xi1>
    %92 = vector.broadcast %91 : vector<1x256xi1> to vector<64x256xi1>
    %93 = vector.broadcast %90 : bf16 to vector<64x256xbf16>
    %94 = arith.select %92, %89, %93 : vector<64x256xi1>, vector<64x256xbf16>
    %95 = vector.extract_strided_slice %75 {offsets = [0, 128], sizes = [64, 256], strides = [1, 1]} : vector<64x512xbf16> to vector<64x256xbf16>
    %96 = vector.extract_strided_slice %75 {offsets = [0, 129], sizes = [64, 256], strides = [1, 1]} : vector<64x512xbf16> to vector<64x256xbf16>
    %c0_i32_22 = arith.constant 0 : i32
    %97 = arith.sitofp %c0_i32_22 : i32 to bf16
    %98 = vector.shape_cast %23 : vector<1x256xi1> to vector<1x256xi1>
    %99 = vector.broadcast %98 : vector<1x256xi1> to vector<64x256xi1>
    %100 = vector.broadcast %97 : bf16 to vector<64x256xbf16>
    %101 = arith.select %99, %96, %100 : vector<64x256xi1>, vector<64x256xbf16>
    %102 = vector.extract_strided_slice %75 {offsets = [0, 143], sizes = [64, 256], strides = [1, 1]} : vector<64x512xbf16> to vector<64x256xbf16>
    %c0_i32_23 = arith.constant 0 : i32
    %103 = arith.sitofp %c0_i32_23 : i32 to bf16
    %104 = vector.shape_cast %21 : vector<1x256xi1> to vector<1x256xi1>
    %105 = vector.broadcast %104 : vector<1x256xi1> to vector<64x256xi1>
    %106 = vector.broadcast %103 : bf16 to vector<64x256xbf16>
    %107 = arith.select %105, %102, %106 : vector<64x256xi1>, vector<64x256xbf16>
    %108 = vector.extract_strided_slice %75 {offsets = [0, 144], sizes = [64, 256], strides = [1, 1]} : vector<64x512xbf16> to vector<64x256xbf16>
    %109 = vector.extract_strided_slice %75 {offsets = [0, 145], sizes = [64, 256], strides = [1, 1]} : vector<64x512xbf16> to vector<64x256xbf16>
    %c0_i32_24 = arith.constant 0 : i32
    %110 = arith.sitofp %c0_i32_24 : i32 to bf16
    %111 = vector.shape_cast %23 : vector<1x256xi1> to vector<1x256xi1>
    %112 = vector.broadcast %111 : vector<1x256xi1> to vector<64x256xi1>
    %113 = vector.broadcast %110 : bf16 to vector<64x256xbf16>
    %114 = arith.select %112, %109, %113 : vector<64x256xi1>, vector<64x256xbf16>
    %115 = tpu.concatenate %81, %82, %88, %94, %95, %101, %107, %108, %114 in 0 : vector<64x256xbf16>, vector<64x256xbf16>, vector<64x256xbf16>, vector<64x256xbf16>, vector<64x256xbf16>, vector<64x256xbf16>, vector<64x256xbf16>, vector<64x256xbf16>, vector<64x256xbf16> -> vector<576x256xbf16>
    %c0_25 = arith.constant 0 : index
    %c0_26 = arith.constant 0 : index
    %116 = vector.load %arg4[%c0_25, %c0_26] : memref<64x576xbf16, #tpu.memory_space<vmem>>, vector<64x576xbf16>
    %cst_27 = arith.constant dense<0.000000e+00> : vector<64x256xf32>
    %117 = tpu.matmul %116, %115, %cst_27 {dimension_numbers = #tpu.dot_dimension_numbers<[1], [0], [0], [1], [0, 0, 1, 1], [], []>} : vector<64x576xbf16>, vector<576x256xbf16>, vector<64x256xf32> -> vector<64x256xf32>
    %c0_28 = arith.constant 0 : index
    %c0_29 = arith.constant 0 : index
    %118 = vector.load %arg5[%c0_28, %c0_29] : memref<64x1xf32, #tpu.memory_space<vmem>>, vector<64x1xf32>
    %119 = vector.broadcast %118 : vector<64x1xf32> to vector<64x256xf32>
    %120 = arith.addf %117, %119 : vector<64x256xf32>
    %121 = arith.addf %1, %120 : vector<64x256xf32>
    %c0_30 = arith.constant 0 : index
    %c0_31 = arith.constant 0 : index
    %c0_32 = arith.constant 0 : index
    %122 = vector.load %arg6[%c0_30, %c0_31, %c0_32] : memref<1x64x256xf32, #tpu.memory_space<vmem>>, vector<1x64x256xf32>
    %123 = vector.shape_cast %122 : vector<1x64x256xf32> to vector<64x256xf32>
    %124 = vector.shape_cast %121 : vector<64x256xf32> to vector<1x64x256xf32>
    tpu.vector_store %arg6[%c0_30, %c0_31, %c0_32], %124 {strides = array<i32>} : memref<1x64x256xf32, #tpu.memory_space<vmem>>, vector<1x64x256xf32>,
    return
  }
  func.func @transform_0(%arg0: i32) -> (i32, i32, i32) {
    %c0_i32 = arith.constant 0 : i32
    %c0_i32_0 = arith.constant 0 : i32
    %c0_i32_1 = arith.constant 0 : i32
    return %arg0, %c0_i32, %c0_i32_0 : i32, i32, i32
  }
  func.func @transform_1(%arg0: i32) -> (i32, i32) {
    %c0_i32 = arith.constant 0 : i32
    %c0_i32_0 = arith.constant 0 : i32
    %c0_i32_1 = arith.constant 0 : i32
    return %c0_i32, %c0_i32_0 : i32, i32
  }
  func.func @transform_2(%arg0: i32) -> (i32, i32) {
    %c0_i32 = arith.constant 0 : i32
    %c0_i32_0 = arith.constant 0 : i32
    %c0_i32_1 = arith.constant 0 : i32
    return %c0_i32, %c0_i32_0 : i32, i32
  }
  func.func @transform_3(%arg0: i32) -> (i32, i32) {
    %c0_i32 = arith.constant 0 : i32
    %c0_i32_0 = arith.constant 0 : i32
    %c0_i32_1 = arith.constant 0 : i32
    return %c0_i32, %c0_i32_0 : i32, i32
  }
  func.func @transform_4(%arg0: i32) -> (i32, i32) {
    %c0_i32 = arith.constant 0 : i32
    %c0_i32_0 = arith.constant 0 : i32
    %c0_i32_1 = arith.constant 0 : i32
    return %c0_i32, %c0_i32_0 : i32, i32
  }
  func.func @transform_5(%arg0: i32) -> (i32, i32, i32) {
    %c0_i32 = arith.constant 0 : i32
    %c0_i32_0 = arith.constant 0 : i32
    %c0_i32_1 = arith.constant 0 : i32
    return %arg0, %c0_i32, %c0_i32_0 : i32, i32, i32
  }
}

</mosaic_0001>

<bundles_post_ra>
// kernel: _lambda_.1
= control target key start
LH: loop header
LB: loop body
LE: loop exit
PB: predicated region body
PF: predicated region fallthrough
CT: control target
= control target key end

     0   :  { %10 = vsyncpa [#allocation3], 0  ;;  %s5188_s0 = inlined_call_operand.hbm [shape: f32[4,64,256], index: 0, kind: input, shape index: {}]   ;;  %s5189_s1 = inlined_call_operand.hbm [shape: bf16[64,576], index: 1, kind: input, shape index: {}]   ;;  %s5190_s2 = inlined_call_operand.hbm [shape: f32[64,1], index: 2, kind: input, shape index: {}, may-alias: {2,4}]   ;;  %s5191_s3 = inlined_call_operand.hbm [shape: bf16[64,576], index: 3, kind: input, shape index: {}]   ;;  %s5192_s4 = inlined_call_operand.hbm [shape: f32[64,1], index: 4, kind: input, shape index: {}, may-alias: {2,4}]   ;;  %s5193_s5 = inlined_call_operand.hbm [shape: f32[4,64,256], index: 5, kind: output, shape index: {}]  }
   0x1   :  { %12 = vsyncpa [#allocation3 + $0x1], 0 }
   0x2   :  { %13 = vsyncpa [#allocation6], 0 }
   0x3   :  { %14 = vsyncpa [#allocation9], 0 }
   0x4   :  { %15 = vsyncpa [#allocation4], 0 }
   0x5   :  { %17 = vsyncpa [#allocation4 + $0x1], 0  ;;  %s3359_s18 = smov 0   ;;  %s3361_s19 = smov 0  }
   0x6   :  { %s3363_s20 = smov 0   ;;  %s3365_s21 = smov 0  }
   0x7 LB: > { %s3380_s22 = sadd.s32 4294967295, %s3300_s21   ;;  %s2734_s23 = sadd.s32 4294967294, %s3300_s21   ;;  %s3300_s21 = sphi %s3365_s21, %s5261_s21   ;;  %s3296_s20 = sphi %s3363_s20, %s5260_s20   ;;  %s3292_s19 = sphi %s3361_s19, %s5259_s19   ;;  %s3288_s18 = sphi %s3359_s18, %s5258_s18  }
   0x8   : > { %p43_p0 = scmp.ne.s32.totalorder %s3292_s19, %s3288_s18  ;;  %p5194_p1 = scmp.eq.s32.totalorder %s3380_s22, 0 }
   0x9   : > { %p157_p3 = scmp.eq.s32.totalorder %s2734_s23, 3  ;;  %p2735_p5 = scmp.ge.s32.totalorder %s3300_s21, 1 }
   0xa   : > { %p3389_p4 = por %p5194_p1, %p43_p0  ;;  %p164_p7 = scmp.lt.s32.totalorder %s3300_s21, 5 }
   0xb   : > { %p3394_p6 = por %p157_p3, %p43_p0  ;;  %s3302_s27 = smov [#allocation5]  }
   0xc   : > { %s5203_s24 = scalar_select %p3389_p4, 1, 0 }
   0xd   : > { %s5204_s25 = scalar_select %p3394_p6, 1, 0 }
   0xe   : > { %p3399_p8 = pnand %p2735_p5, %p164_p7  ;;  %s176_s28 = sshll.u32 %s3302_s27, 4  ;;  %s3403_s28 = int_to_ptr.vmem [resolvable:$true] %s176_s28 }
   0xf   : > { %s3303_s30 = smov [#allocation8]   ;;  %s3304_s7 = smov [#allocation7]  }
  0x10   : > { %s5205_s26 = scalar_select %p3399_p8, 1, 0 }
  0x11   : > { %p2922_p9 = pneg %p3399_p8  ;;  %s202_s6 = sshll.u32 %s3303_s30, 4  ;;  %s3413_s6 = int_to_ptr.vmem [resolvable:$true] %s202_s6 }
  0x12   : > { %s3415_s8 = sshll.u32 %s3304_s7, 4  ;;  %s3084_s11 = scalar_lea.hbm %s5189_s1, 2560  ;;  %s190_s8 = int_to_ptr.vmem [resolvable:$true] %s3415_s8 }
  0x13   : > { %p3409_p10 = pnand %p2922_p9, %p5194_p1  ;;  %p3085_p11 = scmp.ne.s32.totalorder %s5189_s1, %s3084_s11 }
  0x14   : > { %p3091_p3 = scmp.lt.u32.totalorder %s3084_s11, %s5189_s1 }
  0x15   : > { %p3425_p12 = pneg %p3409_p10 }
  0x17   : > { %p3087_p13 = pnand %p3425_p12, %p3085_p11 }
  0x19   : > { %p3088_p0 = pneg %p3087_p13 }
  0x1b   : > { %p3093_p5 = pnand %p3091_p3, %p3088_p0 }
  0x1d   : > { %3096 = shalt.err (!%p3093_p5)
}
  0x1e   : > { %s3097_s17 = scalar_lea.vmem %s3403_s28, 2560  ;;  %p3105_p2 = scmp.lt.s32.totalorder %s3403_s28, %s3403_s28 }
  0x1f   : > { %p3098_p7 = scmp.ne.s32.totalorder %s3403_s28, %s3097_s17  ;;  %p3106_p6 = scmp.lt.s32.totalorder %s3097_s17, %s3097_s17 }
  0x21   : > { %p3100_p9 = pnand %p3098_p7, %p3425_p12  ;;  %p3107_p11 = por %p3106_p6, %p3105_p2 }
  0x23   : > { %p3101_p1 = pneg %p3100_p9 }
  0x25   : > { %p3108_p13 = pnand %p3107_p11, %p3101_p1 }
  0x27   : > { %3111 = shalt.err (!%p3108_p13)
}
  0x28   : > { %s3305_s23 = smov 320   ;;  %s3306_s27 = smov 20  }
  0x29   : > { %2925 = dma.hbm_to_vmem [thread:$0]  (!%p3409_p10), %s5189_s1, 2560, %s3403_s28, [#allocation6], %s3305_s23, %s3305_s23, %s3306_s27  }
  0x2a   : > { %s3112_s11 = scalar_lea.hbm %s5191_s3, 2560 }
  0x2b   : > { %p3113_p2 = scmp.ne.s32.totalorder %s5191_s3, %s3112_s11  ;;  %p3119_p0 = scmp.lt.u32.totalorder %s3112_s11, %s5191_s3 }
  0x2d   : > { %p3115_p1 = pnand %p3113_p2, %p3425_p12 }
  0x2f   : > { %p3116_p6 = pneg %p3115_p1 }
  0x31   : > { %p3121_p3 = pnand %p3119_p0, %p3116_p6 }
  0x33   : > { %3124 = shalt.err (!%p3121_p3)
}
  0x34   : > { %s3125_s28 = scalar_lea.vmem %s3413_s6, 2560  ;;  %p3133_p11 = scmp.lt.s32.totalorder %s3413_s6, %s3413_s6 }
  0x35   : > { %p3126_p5 = scmp.ne.s32.totalorder %s3413_s6, %s3125_s28  ;;  %p3134_p13 = scmp.lt.s32.totalorder %s3125_s28, %s3125_s28 }
  0x37   : > { %p3128_p7 = pnand %p3126_p5, %p3425_p12  ;;  %p3135_p2 = por %p3134_p13, %p3133_p11 }
  0x39   : > { %p3129_p9 = pneg %p3128_p7 }
  0x3b   : > { %p3136_p1 = pnand %p3135_p2, %p3129_p9 }
  0x3d   : > { %3139 = shalt.err (!%p3136_p1)
}
  0x3e   : > { %2931 = dma.hbm_to_vmem [thread:$0]  (!%p3409_p10), %s5191_s3, 2560, %s3413_s6, [#allocation9], %s3305_s23, %s3305_s23, %s3306_s27  }
  0x3f   : > { %s3140_s10 = scalar_lea.hbm %s5190_s2, 1024 }
  0x40   : > { %p3141_p6 = scmp.ne.s32.totalorder %s5190_s2, %s3140_s10  ;;  %p3147_p5 = scmp.lt.u32.totalorder %s3140_s10, %s5190_s2 }
  0x42   : > { %p3143_p0 = pnand %p3141_p6, %p3425_p12 }
  0x44   : > { %p3144_p3 = pneg %p3143_p0 }
  0x46   : > { %p3149_p7 = pnand %p3147_p5, %p3144_p3 }
  0x48   : > { %3152 = shalt.err (!%p3149_p7)
}
  0x49   : > { %s3153_s16 = scalar_lea.vmem %s190_s8, 1024  ;;  %p3161_p2 = scmp.lt.s32.totalorder %s190_s8, %s190_s8 }
  0x4a   : > { %p3154_p9 = scmp.ne.s32.totalorder %s190_s8, %s3153_s16  ;;  %p3162_p1 = scmp.lt.s32.totalorder %s3153_s16, %s3153_s16 }
  0x4c   : > { %p3156_p11 = pnand %p3154_p9, %p3425_p12  ;;  %p3163_p4 = por %p3162_p1, %p3161_p2 }
  0x4e   : > { %p3157_p13 = pneg %p3156_p11 }
  0x50   : > { %p3164_p8 = pnand %p3163_p4, %p3157_p13 }
  0x52   : > { %3167 = shalt.err (!%p3164_p8)
}
  0x53   : > { %s3307_s6 = smov 128   ;;  %s3308_s23 = smov 8  }
  0x54   : > { %2928 = dma.hbm_to_vmem [thread:$0]  (!%p3409_p10), %s5190_s2, 1024, %s190_s8, [#allocation6], %s3307_s6, %s3307_s6, %s3308_s23  }
  0x55   : > { %s3309_s17 = smov [#allocation10]   ;;  %s3168_s10 = scalar_lea.hbm %s5192_s4, 1024 }
  0x56   : > { %s215_s30 = sshll.u32 %s3309_s17, 4  ;;  %p3169_p4 = scmp.ne.s32.totalorder %s5192_s4, %s3168_s10  ;;  %s216_s30 = int_to_ptr.vmem [resolvable:$true] %s215_s30 }
  0x57   : > { %p3175_p0 = scmp.lt.u32.totalorder %s3168_s10, %s5192_s4 }
  0x58   : > { %p3171_p8 = pnand %p3169_p4, %p3425_p12 }
  0x5a   : > { %p3172_p6 = pneg %p3171_p8 }
  0x5c   : > { %p3177_p3 = pnand %p3175_p0, %p3172_p6 }
  0x5e   : > { %3180 = shalt.err (!%p3177_p3)
}
  0x5f   : > { %s3181_s8 = scalar_lea.vmem %s216_s30, 1024  ;;  %p3189_p11 = scmp.lt.s32.totalorder %s216_s30, %s216_s30 }
  0x60   : > { %p3182_p5 = scmp.ne.s32.totalorder %s216_s30, %s3181_s8  ;;  %p3190_p13 = scmp.lt.s32.totalorder %s3181_s8, %s3181_s8 }
  0x62   : > { %p3184_p7 = pnand %p3182_p5, %p3425_p12  ;;  %p3191_p2 = por %p3190_p13, %p3189_p11 }
  0x64   : > { %p3185_p9 = pneg %p3184_p7 }
  0x66   : > { %p3192_p1 = pnand %p3191_p2, %p3185_p9 }
  0x68   : > { %3195 = shalt.err (!%p3192_p1)
}
  0x69   : > { %2934 = dma.hbm_to_vmem [thread:$0]  (!%p3409_p10), %s5192_s4, 1024, %s216_s30, [#allocation9], %s3307_s6, %s3307_s6, %s3308_s23  }
  0x6a   : > { %s3507_s14 = sadd.s32 1, %s3300_s21   ;;  %s30_s28 = sadd.s32 1, %s3296_s20 }
  0x6b   : > { %s27_s29 = ssub.s32 %s3300_s21, %s3507_s14  ;;  %p37_p12 = scmp.ne.s32.totalorder %s3296_s20, %s3292_s19 }
  0x6c   : > { %p28_p4 = scmp.eq.s32.totalorder %s27_s29, 0  ;;  %p38_p8 = scmp.eq.s32.totalorder %s3300_s21, 0 }
  0x6d   : > { %p5208_p6 = scmp.eq.s32.totalorder %s3380_s22, 3  ;;  %p2947_p3 = scmp.lt.s32.totalorder %s3300_s21, 4 }
  0x6e   : > { %s3523_s7 = scalar_select %p28_p4, %s3296_s20, %s30_s28  }
  0x6f   : > { %p3517_p0 = por %p5208_p6, %p37_p12  ;;  %p39_p5 = por %p38_p8, %p37_p12 }
  0x70   : > { %s229_s9 = sand.u32 1, %s3296_s20   ;;  %s2804_s6 = sshll.u32 %s3300_s21, 11 }
  0x71   : > { %s2741_s10 = sshll.u32 %s229_s9, 7  ;;  %s3530_s11 = scalar_lea.hbm %s5188_s0, %s2804_s6 }
  0x72   : > { %s233_s12 = scalar_lea.vmem [#allocation2], %s2741_s10  ;;  %p3534_p10 = pnand %p2947_p3, %p39_p5 }
  0x73   : > { %s240_s13 = sshll.u32 %s233_s12, 4  ;;  %s3538_s8 = scalar_lea.sflag [#allocation3], %s229_s9  ;;  %s3532_s13 = int_to_ptr.vmem [resolvable:$true] %s240_s13 }
  0x74   : > { %s3196_s16 = scalar_lea.hbm %s3530_s11, 2048  ;;  %p3198_p9 = pneg %p3534_p10 }
  0x75   : > { %p3197_p7 = scmp.ne.s32.totalorder %s3530_s11, %s3196_s16  ;;  %s3201_s29 = scalar_lea.hbm %s5188_s0, 8192 }
  0x76   : > { %p3202_p2 = scmp.lt.u32.totalorder %s3530_s11, %s5188_s0  ;;  %p3203_p1 = scmp.lt.u32.totalorder %s3201_s29, %s3196_s16 }
  0x77   : > { %p3199_p11 = pnand %p3198_p9, %p3197_p7  ;;  %p3205_p4 = scmp.lt.u32.totalorder %s3196_s16, %s3530_s11 }
  0x78   : > { %p3204_p12 = por %p3203_p1, %p3202_p2 }
  0x79   : > { %p3200_p13 = pneg %p3199_p11 }
  0x7a   : > { %p3206_p8 = por %p3205_p4, %p3204_p12 }
  0x7c   : > { %p3207_p6 = pnand %p3206_p8, %p3200_p13 }
  0x7e   : > { %3210 = shalt.err (!%p3207_p6)
}
  0x7f   : > { %s3211_s9 = scalar_lea.vmem %s3532_s13, 2048  ;;  %s3310_s23 = smov [#allocation2]  }
  0x80   : > { %p3212_p3 = scmp.ne.s32.totalorder %s3532_s13, %s3211_s9  ;;  %s3216_s30 = sshll.u32 %s3310_s23, 4  ;;  %s3217_s30 = int_to_ptr.vmem [resolvable:$false] %s3216_s30 }
  0x81   : > { %s3218_s12 = scalar_lea.vmem %s3217_s30, 4096  ;;  %p3219_p11 = scmp.lt.s32.totalorder %s3532_s13, %s3217_s30 }
  0x82   : > { %p3214_p5 = pnand %p3212_p3, %p3198_p9  ;;  %p3220_p2 = scmp.lt.s32.totalorder %s3218_s12, %s3211_s9 }
  0x84   : > { %p3215_p7 = pneg %p3214_p5  ;;  %p3221_p1 = por %p3220_p2, %p3219_p11 }
  0x86   : > { %p3222_p12 = pnand %p3221_p1, %p3215_p7 }
  0x88   : > { %3225 = shalt.err (!%p3222_p12)
}
  0x89   : > { %s3311_s16 = smov 256   ;;  %s3312_s27 = smov 16  }
  0x8a   : > { %2938 = dma.hbm_to_vmem [thread:$0]  (!%p3534_p10), %s3530_s11, 2048, %s3532_s13, %s3538_s8, %s3311_s16, %s3311_s16, %s3312_s27  }
  0x8b   : > { %p5211_p9 = scmp.ne.s32.totalorder %s5205_s26, 0 }
  0x8c   : > { %s3569_s28 = sand.u32 (!%p5211_p9), 1, %s3292_s19   ;;  %p5212_p13 = scmp.ne.s32.totalorder (!%p5211_p9), %s5203_s24, 0 }
  0x8d   : > { %252 = sbr.rel (%p5211_p9) target bundleno = 1785 (0x6f9), region = 40  ;;  %s2745_s29 = sshll.u32 (!%p5211_p9), %s3569_s28, 7 }
  0x8e   : > { %s255_s10 = scalar_lea.sflag (!%p5211_p9), [#allocation3], %s3569_s28  ;;  %s3575_s6 = scalar_lea.vmem (!%p5211_p9), [#allocation2], %s2745_s29 }
  0x94   : > { %3271 = dma.done.wait (%p5212_p13), %s255_s10, 2048  }
  0x95   : > { %3273 = vsyncadd (%p5212_p13), %s255_s10, 4294965248  ;;  %p5213_p10 = scmp.eq.s32.totalorder %s3380_s22, 0 }
  0x97   : > { %3275 = dma.done.wait (%p5213_p10), [#allocation6], 3584   ;;  %p5214_p4 = pmov %p5213_p10 }
  0x99   : > { %3277 = vsyncadd (%p5214_p4), [#allocation6], 4294963712  ;;  %p5215_p8 = pmov %p5214_p4 }
  0x9a   : > { %p5216_p6 = pmov %p5214_p4 }
  0x9b   : > { %3279 = dma.done.wait (%p5215_p8), [#allocation9], 3584  }
  0x9c   : > { %3281 = vsyncadd (%p5216_p6), [#allocation9], 4294963712  ;;  %v328_v0 = vlaneseq  ;;  %v3313_v1 = vmov 0   ;;  %v305_v7 = vld [vmem:[%s3575_s6 + $0x8] sm:$0xff]  ;;  %v307_v8 = vld [vmem:[%s3575_s6 + $0x18] sm:$0xff]  ;;  %s3314_s24 = smov 127  }
  0x9d   : > { %3011 = vset.pattern.permute.xlu1 %v3313_v1  ;;  %3010 = vset.pattern.permute.xlu0 %v3313_v1  ;;  %v304_v9 = vld [vmem:[%s3575_s6] sm:$0xff]  ;;  %v3594_v11 = vpack.c.bf16 %v307_v8, %v305_v7  ;;  %v306_v12 = vld [vmem:[%s3575_s6 + $0x10] sm:$0xff]  ;;  %s3315_s26 = smov 113   ;;  %s3316_s11 = smov 111   ;;  %v309_v26 = vld [vmem:[%s3575_s6 + $0x28] sm:$0xff]  ;;  %vm423_vm6 = vcmask 1039360  }
  0x9e   : > { %v329_v2 = vand.u32 127, %v328_v0  ;;  %v366_v3 = vshrl.u32 %v328_v0, 7  ;;  %v3597_v13 = vpack.c.bf16 %v306_v12, %v304_v9  ;;  %v308_v21 = vld [vmem:[%s3575_s6 + $0x20] sm:$0xff]  ;;  %v310_v22 = vld [vmem:[%s3575_s6 + $0x30] sm:$0xff]  ;;  %s3317_s13 = smov 1   ;;  %v311_v27 = vld [vmem:[%s3575_s6 + $0x38] sm:$0xff] }
  0x9f   : > { %496 = vrot.lane.b32.xlu1 %v3594_v11, %s3314_s24  ;;  %v312_v23 = vld [vmem:[%s3575_s6 + $0x40] sm:$0xff]  ;;  %v314_v24 = vld [vmem:[%s3575_s6 + $0x50] sm:$0xff]  ;;  %v3613_v25 = vpack.c.bf16 %v310_v22, %v308_v21  ;;  %v3623_v29 = vpack.c.bf16 %v311_v27, %v309_v26  ;;  %v313_v32 = vld [vmem:[%s3575_s6 + $0x48] sm:$0xff]  ;;  %s3318_s15 = smov 126   ;;  %s3319_s8 = smov 15   ;;  %vm407_vm10 = vcmask 924672  }
  0xa0   : > { %v330_v4 = vadd.s32 128, %v329_v2  ;;  %v335_v5 = vand.u32 15, %v329_v2  ;;  %v367_v10 = vsub.s32 0, %v366_v3  ;;  %v371_v15 = vsub.s32 4, %v366_v3  ;;  %494 = vrot.lane.b32.xlu0 %v3597_v13, %s3314_s24  ;;  %v316_v30 = vld [vmem:[%s3575_s6 + $0x60] sm:$0xff]  ;;  %v318_v31 = vld [vmem:[%s3575_s6 + $0x70] sm:$0xff] }
  0xa1   : > { %v3621_v28 = vpack.c.bf16 %v314_v24, %v312_v23  ;;  %v315_v33 = vld [vmem:[%s3575_s6 + $0x58] sm:$0xff]  ;;  %v3631_v34 = vpack.c.bf16 %v318_v31, %v316_v30  ;;  %v317_v36 = vld [vmem:[%s3575_s6 + $0x68] sm:$0xff]  ;;  %s3320_s9 = smov 17   ;;  %s3321_s23 = smov 112   ;;  %vm5197_vm14 = vcmask 908288  }
  0xa2   : > { %v342_v6 = vand.u32 15, %v330_v4  ;;  %vm355_vm0 = vcmp.ne.s32.totalorder %v335_v5, 0  ;;  %vm357_vm1 = vcmp.ne.s32.totalorder %v335_v5, 15  ;;  %v3635_v35 = vpack.c.bf16 %v315_v33, %v313_v32  ;;  %v319_v37 = vld [vmem:[%s3575_s6 + $0x78] sm:$0xff]  ;;  %s3322_s30 = smov 110   ;;  %s3323_s12 = smov 96  }
  0xa3   : > { %v3643_v38 = vpack.c.bf16 %v319_v37, %v317_v36  ;;  %s3324_s16 = smov 95   ;;  %s3325_s27 = smov 94  }
  0xa4   : > { %vm356_vm2 = vcmp.ne.s32.totalorder %v342_v6, 0  ;;  %vm358_vm3 = vcmp.ne.s32.totalorder %v342_v6, 15  ;;  %s5106_s10 = scalar_lea.vmem [#allocation11], %s2745_s29  ;;  %s2805_s29 = sshll.u32 %s3380_s22, 11 }
  0xa5   : > { %vm363_vm4 = vmpackc.low %vm356_vm2, %vm355_vm0  ;;  %vm439_vm0 = vcmask 7168   ;;  %vm455_vm2 = vcmask 121856   ;;  %s2610_s22 = scalar_lea.sflag [#allocation4], %s3569_s28 }
  0xa6   : > { %v364_v14 = vsel %vm363_vm4, 65537, %v3313_v1  ;;  %vm393_vm5 = vmpackc.low %vm358_vm3, %vm357_vm1 }
  0xa7   : > { %v368_v16 = vrot.slane %v364_v14, %v367_v10  ;;  %v394_v17 = vsel %vm393_vm5, 65537, %v3313_v1  ;;  %v372_v19 = vrot.slane %v364_v14, %v371_v15  ;;  %vm5199_vm5 = vcmask 1031168  }
  0xa8   : > { %v398_v18 = vrot.slane %v394_v17, %v367_v10  ;;  %v402_v20 = vrot.slane %v394_v17, %v371_v15 }
  0xa9   : > { %419 = vrot.lane.b32.xlu1 %v368_v16, %s3314_s24 }
  0xaa   : > { %403 = vrot.lane.b32.xlu0 %v398_v18, %s3315_s26 }
  0xad   : > { %421 = vrot.lane.b32.xlu1 %v372_v19, %s3314_s24 }
  0xae   : > { %405 = vrot.lane.b32.xlu0 %v402_v20, %s3315_s26 }
  0xb1   : > { %375 = vrot.lane.b32.xlu1 %v372_v19, %s3316_s11 }
  0xb2   : > { %373 = vrot.lane.b32.xlu0 %v368_v16, %s3316_s11 }
  0xb5   : > { %435 = vrot.lane.b32.xlu1 %v398_v18, %s3317_s13 }
  0xb6   : > { %492 = vrot.lane.b32.xlu0 %v3313_v1, %s3314_s24 }
  0xb9   : > { %498 = vrot.lane.b32.xlu1 %v3613_v25, %s3314_s24 }
  0xba   : > { %437 = vrot.lane.b32.xlu0 %v402_v20, %s3317_s13  ;;  %s5139_s13 = scalar_lea.hbm %s5193_s5, %s2805_s29 }
  0xbd   : > { %502 = vrot.lane.b32.xlu1 %v3621_v28, %s3314_s24 }
  0xbe   : > { %500 = vrot.lane.b32.xlu0 %v3623_v29, %s3314_s24 }
  0xc1   : > { %506 = vrot.lane.b32.xlu1 %v3631_v34, %s3314_s24 }
  0xc2   : > { %504 = vrot.lane.b32.xlu0 %v3635_v35, %s3314_s24 }
  0xc5   : > { %526 = vrot.lane.b32.xlu1 %v3313_v1, %s3318_s15 }
  0xc6   : > { %508 = vrot.lane.b32.xlu0 %v3643_v38, %s3314_s24 }
  0xc9   : > { %453 = vrot.lane.b32.xlu1 %v372_v19, %s3319_s8 }
  0xca   : > { %451 = vrot.lane.b32.xlu0 %v368_v16, %s3319_s8  ;;  %s3326_s8 = smov [#allocation11]  }
  0xcd   : > { %920 = vrot.lane.b32.xlu1 %v3313_v1, %s3320_s9 }
  0xce   : > { %561 = vrot.lane.b32.xlu0 %v3313_v1, %s3321_s23 }
  0xd1   : > { %590 = vrot.lane.b32.xlu1 %v3594_v11, %s3316_s11 }
  0xd2   : > { %588 = vrot.lane.b32.xlu0 %v3597_v13, %s3316_s11 }
  0xd5   : > { %594 = vrot.lane.b32.xlu1 %v3623_v29, %s3316_s11 }
  0xd6   : > { %592 = vrot.lane.b32.xlu0 %v3613_v25, %s3316_s11 }
  0xd9   : > { %598 = vrot.lane.b32.xlu1 %v3635_v35, %s3316_s11 }
  0xda   : > { %596 = vrot.lane.b32.xlu0 %v3621_v28, %s3316_s11 }
  0xdd   : > { %602 = vrot.lane.b32.xlu1 %v3643_v38, %s3316_s11 }
  0xde   : > { %600 = vrot.lane.b32.xlu0 %v3631_v34, %s3316_s11 }
  0xe1   : > { %620 = vrot.lane.b32.xlu1 %v3313_v1, %s3322_s30 }
  0xe2   : > { %469 = vrot.lane.b32.xlu0 %v402_v20, %s3320_s9 }
  0xe5   : > { %467 = vrot.lane.b32.xlu1 %v398_v18, %s3320_s9 }
 0x111   : > { %v497_v39 = vpop.permute.xlu1 %496 }
 0x112   : > { %v495_v40 = vpop.permute.xlu0 %494  ;;  %942 = vrot.lane.b32.xlu1 %v497_v39, %s3320_s9 }
 0x113   : > { %v511_v55 = vsel %vm423_vm6, %v495_v40, %v497_v39 }
 0x11b   : > { %v420_v41 = vpop.permute.xlu1 %419 }
 0x11c   : > { %v404_v42 = vpop.permute.xlu0 %403 }
 0x11f   : > { %v3674_v43 = vpop.permute.xlu1 %421 }
 0x120   : > { %v3676_v44 = vpop.permute.xlu0 %405  ;;  %vm426_vm8 = vcmp.ne.s16.totalorder %v3674_v43, 0  ;;  %v3773_v12 = vsel %vm423_vm6, %v420_v41, %v3674_v43 }
 0x121   : > { %vm410_vm7 = vcmp.ne.s16.totalorder %v3676_v44, 0  ;;  %v430_v63 = vsel %vm426_vm8, %v3623_v29, 0  ;;  %v428_v0 = vsel %vm426_vm8, %v3594_v11, 0  ;;  %v432_v2 = vsel %vm426_vm8, %v3635_v35, 0 }
 0x122   : > { %v414_v58 = vsel %vm410_vm7, %v3623_v29, 0  ;;  %v416_v60 = vsel %vm410_vm7, %v3635_v35, 0  ;;  %v412_v61 = vsel %vm410_vm7, %v3594_v11, 0  ;;  %v418_v62 = vsel %vm410_vm7, %v3643_v38, 0 }
 0x123   : > { %v3678_v45 = vpop.permute.xlu1 %375  ;;  %v3750_v6 = vsel %vm407_vm10, %v404_v42, %v3676_v44  ;;  %v434_v7 = vsel %vm426_vm8, %v3643_v38, 0  ;;  %vm425_vm13 = vcmp.ne.s16.totalorder %v3773_v12, 0  ;;  %vm5198_vm10 = vcmask 916480  }
 0x124   : > { %v3680_v46 = vpop.permute.xlu0 %373  ;;  %vm380_vm9 = vcmp.ne.s16.totalorder %v3678_v45, 0  ;;  %vm409_vm11 = vcmp.ne.s16.totalorder %v3750_v6, 0  ;;  %v429_v17 = vsel %vm425_vm13, %v3613_v25, 0  ;;  %v427_v19 = vsel %vm425_vm13, %v3597_v13, 0 }
 0x125   : > { %v384_v3 = vsel %vm380_vm9, %v3623_v29, 0  ;;  %v382_v4 = vsel %vm380_vm9, %v3594_v11, 0  ;;  %v386_v5 = vsel %vm380_vm9, %v3635_v35, 0  ;;  %v388_v8 = vsel %vm380_vm9, %v3643_v38, 0 }
 0x126   : > { %v413_v9 = vsel %vm409_vm11, %v3613_v25, 0  ;;  %v415_v14 = vsel %vm409_vm11, %v3621_v28, 0  ;;  %v411_v15 = vsel %vm409_vm11, %v3597_v13, 0  ;;  %v417_v16 = vsel %vm409_vm11, %v3631_v34, 0 }
 0x127   : > { %v3682_v47 = vpop.permute.xlu1 %435  ;;  %v3794_v18 = vsel %vm5197_vm14, %v3680_v46, %v3678_v45  ;;  %v431_v20 = vsel %vm425_vm13, %v3621_v28, 0  ;;  %v433_v26 = vsel %vm425_vm13, %v3631_v34, 0 }
 0x128   : > { %v3684_v48 = vpop.permute.xlu0 %492  ;;  %vm441_vm12 = vcmp.ne.s16.totalorder %v3682_v47, 0  ;;  %vm379_vm15 = vcmp.ne.s16.totalorder %v3794_v18, 0 }
 0x129   : > { %v510_v57 = vsel %vm423_vm6, %v3684_v48, %v495_v40  ;;  %v443_v10 = vsel %vm441_vm12, %v3597_v13, 0  ;;  %v383_v21 = vsel %vm379_vm15, %v3613_v25, 0  ;;  %v381_v22 = vsel %vm379_vm15, %v3597_v13, 0 }
 0x12a   : > { %v385_v24 = vsel %vm379_vm15, %v3621_v28, 0  ;;  %v387_v31 = vsel %vm379_vm15, %v3631_v34, 0  ;;  %v445_v32 = vsel %vm441_vm12, %v3613_v25, 0 }
 0x12b   : > { %v499_v50 = vpop.permute.xlu1 %498 }
 0x12c   : > { %v3686_v49 = vpop.permute.xlu0 %437  ;;  %v512_v59 = vsel %vm423_vm6, %v3684_v48, %v499_v50 }
 0x12d   : > { %v3823_v27 = vsel %vm439_vm0, %v3682_v47, %v3686_v49  ;;  %vm471_vm0 = vcmask 138240  }
 0x12e   : > { %vm442_vm1 = vcmp.ne.s16.totalorder %v3823_v27, 0 }
 0x12f   : > { %v3691_v53 = vpop.permute.xlu1 %502  ;;  %v444_v36 = vsel %vm442_vm1, %v3594_v11, 0  ;;  %v446_v42 = vsel %vm442_vm1, %v3623_v29, 0  ;;  %v448_v46 = vsel %vm442_vm1, %v3635_v35, 0 }
 0x130   : > { %v501_v51 = vpop.permute.xlu0 %500  ;;  %v514_v37 = vsel %vm423_vm6, %v3684_v48, %v3691_v53 }
 0x131   : > { %948 = vrot.lane.b32.xlu0 %v501_v51, %s3320_s9  ;;  %v513_v52 = vsel %vm423_vm6, %v499_v50, %v501_v51 }
 0x132   : > { %946 = vrot.lane.b32.xlu1 %v513_v52, %s3320_s9  ;;  %v449_v52 = vsel %vm441_vm12, %v3631_v34, 0 }
 0x133   : > { %v507_v23 = vpop.permute.xlu1 %506 }
 0x134   : > { %v3693_v54 = vpop.permute.xlu0 %504 }
 0x135   : > { %940 = vrot.lane.b32.xlu0 %v511_v55, %s3320_s9  ;;  %v515_v56 = vsel %vm423_vm6, %v3691_v53, %v3693_v54 }
 0x136   : > { %952 = vrot.lane.b32.xlu1 %v515_v56, %s3320_s9 }
 0x137   : > { %v3826_v30 = vpop.permute.xlu1 %526 }
 0x138   : > { %v509_v39 = vpop.permute.xlu0 %508 }
 0x139   : > { %938 = vrot.lane.b32.xlu0 %v510_v57, %s3320_s9  ;;  %v517_v51 = vsel %vm423_vm6, %v507_v23, %v509_v39  ;;  %v516_v57 = vsel %vm423_vm6, %v3684_v48, %v507_v23 }
 0x13a   : > { %534 = vrot.lane.b32.xlu1 %v414_v58, %s3318_s15 }
 0x13b   : > { %v454_v33 = vpop.permute.xlu1 %453 }
 0x13c   : > { %v3850_v41 = vpop.permute.xlu0 %451 }
 0x13d   : > { %944 = vrot.lane.b32.xlu0 %v512_v59, %s3320_s9  ;;  %v3860_v49 = vsel %vm455_vm2, %v3850_v41, %v454_v33  ;;  %vm457_vm4 = vcmp.ne.s16.totalorder %v3850_v41, 0  ;;  %vm634_vm2 = vcmask 900096  }
 0x13e   : > { %538 = vrot.lane.b32.xlu1 %v416_v60, %s3318_s15  ;;  %vm458_vm3 = vcmp.ne.s16.totalorder %v3860_v49, 0  ;;  %v463_v59 = vsel %vm457_vm4, %v3621_v28, 0 }
 0x13f   : > { %v3847_v40 = vpop.permute.xlu1 %920  ;;  %v460_v53 = vsel %vm458_vm3, %v3594_v11, 0  ;;  %v462_v58 = vsel %vm458_vm3, %v3623_v29, 0 }
 0x140   : > { %v3878_v56 = vpop.permute.xlu0 %561 }
 0x141   : > { %530 = vrot.lane.b32.xlu0 %v412_v61, %s3318_s15  ;;  %v450_v61 = vsel %vm442_vm1, %v3643_v38, 0 }
 0x142   : > { %542 = vrot.lane.b32.xlu1 %v418_v62, %s3318_s15 }
 0x143   : > { %v591_v50 = vpop.permute.xlu1 %590 }
 0x144   : > { %v589_v62 = vpop.permute.xlu0 %588 }
 0x145   : > { %569 = vrot.lane.b32.xlu0 %v430_v63, %s3321_s23  ;;  %v459_v63 = vsel %vm457_vm4, %v3597_v13, 0 }
 0x146   : > { %565 = vrot.lane.b32.xlu1 %v428_v0, %s3321_s23  ;;  %v466_v0 = vsel %vm458_vm3, %v3643_v38, 0 }
 0x147   : > { %v595_v55 = vpop.permute.xlu1 %594 }
 0x149   : > { %573 = vrot.lane.b32.xlu0 %v432_v2, %s3321_s23 }
 0x14a   : > { %928 = vrot.lane.b32.xlu1 %v384_v3, %s3320_s9  ;;  %v3908_v3 = vpop.permute.xlu0 %592 }
 0x14b   : > { %v3891_v60 = vpop.permute.xlu1 %598 }
 0x14d   : > { %924 = vrot.lane.b32.xlu0 %v382_v4, %s3320_s9 }
 0x14e   : > { %932 = vrot.lane.b32.xlu1 %v386_v5, %s3320_s9  ;;  %v461_v5 = vsel %vm457_vm4, %v3613_v25, 0 }
 0x14f   : > { %v3905_v2 = vpop.permute.xlu1 %602 }
 0x151   : > { %577 = vrot.lane.b32.xlu0 %v434_v7, %s3321_s23  ;;  %v3919_v7 = vpop.permute.xlu0 %596 }
 0x152   : > { %936 = vrot.lane.b32.xlu1 %v388_v8, %s3320_s9  ;;  %v464_v8 = vsel %vm458_vm3, %v3635_v35, 0 }
 0x153   : > { %v3914_v4 = vpop.permute.xlu1 %620 }
 0x155   : > { %532 = vrot.lane.b32.xlu0 %v413_v9, %s3318_s15 }
 0x156   : > { %616 = vrot.lane.b32.xlu1 %v443_v10, %s3322_s30  ;;  %v3932_v10 = vpop.permute.xlu0 %600 }
 0x157   : > { %v3928_v9 = vpop.permute.xlu1 %467 }
 0x159   : > { %536 = vrot.lane.b32.xlu0 %v415_v14, %s3318_s15  ;;  %v465_v14 = vsel %vm457_vm4, %v3631_v34, 0 }
 0x15a   : > { %528 = vrot.lane.b32.xlu1 %v411_v15, %s3318_s15  ;;  %v3940_v15 = vpop.permute.xlu0 %469 }
 0x15d   : > { %540 = vrot.lane.b32.xlu0 %v417_v16, %s3318_s15 }
 0x15e   : > { %567 = vrot.lane.b32.xlu1 %v429_v17, %s3321_s23  ;;  %v604_v17 = vsel %vm5197_vm14, %v589_v62, %v591_v50 }
 0x161   : > { %563 = vrot.lane.b32.xlu0 %v427_v19, %s3321_s23 }
 0x162   : > { %571 = vrot.lane.b32.xlu1 %v431_v20, %s3321_s23 }
 0x165   : > { %926 = vrot.lane.b32.xlu0 %v383_v21, %s3320_s9 }
 0x166   : > { %922 = vrot.lane.b32.xlu1 %v381_v22, %s3320_s9 }
 0x169   : > { %930 = vrot.lane.b32.xlu0 %v385_v24, %s3320_s9 }
 0x16a   : > { %575 = vrot.lane.b32.xlu1 %v433_v26, %s3321_s23 }
 0x16d   : > { %934 = vrot.lane.b32.xlu0 %v387_v31, %s3320_s9 }
 0x16e   : > { %622 = vrot.lane.b32.xlu1 %v445_v32, %s3322_s30 }
 0x171   : > { %618 = vrot.lane.b32.xlu0 %v444_v36, %s3322_s30  ;;  %v605_v36 = vsel %vm5197_vm14, %v3908_v3, %v595_v55 }
 0x172   : > { %950 = vrot.lane.b32.xlu1 %v514_v37, %s3320_s9 }
 0x175   : > { %954 = vrot.lane.b32.xlu0 %v3693_v54, %s3320_s9  ;;  %v447_v54 = vsel %vm441_vm12, %v3621_v28, 0 }
 0x176   : > { %960 = vrot.lane.b32.xlu1 %v509_v39, %s3320_s9 }
 0x179   : > { %624 = vrot.lane.b32.xlu0 %v446_v42, %s3322_s30 }
 0x17a   : > { %628 = vrot.lane.b32.xlu1 %v448_v46, %s3322_s30 }
 0x17d   : > { %958 = vrot.lane.b32.xlu0 %v517_v51, %s3320_s9 }
 0x17e   : > { %630 = vrot.lane.b32.xlu1 %v449_v52, %s3322_s30 }
 0x181   : > { %626 = vrot.lane.b32.xlu0 %v447_v54, %s3322_s30 }
 0x182   : > { %653 = vrot.lane.b32.xlu1 %v460_v53, %s3323_s12 }
 0x184   : > { %v3942_v16 = vpop.permute.xlu1 %942 }
 0x185   : > { %956 = vrot.lane.b32.xlu0 %v516_v57, %s3320_s9 }
 0x186   : > { %659 = vrot.lane.b32.xlu1 %v462_v58, %s3323_s12 }
 0x189   : > { %632 = vrot.lane.b32.xlu0 %v450_v61, %s3322_s30 }
 0x18a   : > { %661 = vrot.lane.b32.xlu1 %v463_v59, %s3323_s12 }
 0x18d   : > { %651 = vrot.lane.b32.xlu0 %v459_v63, %s3323_s12 }
 0x18e   : > { %667 = vrot.lane.b32.xlu1 %v466_v0, %s3323_s12 }
 0x191   : > { %655 = vrot.lane.b32.xlu0 %v3313_v1, %s3323_s12 }
 0x192   : > { %678 = vrot.lane.b32.xlu1 %v3597_v13, %s3324_s16 }
 0x195   : > { %657 = vrot.lane.b32.xlu0 %v461_v5, %s3323_s12 }
 0x196   : > { %682 = vrot.lane.b32.xlu1 %v3313_v1, %s3324_s16 }
 0x199   : > { %663 = vrot.lane.b32.xlu0 %v464_v8, %s3323_s12 }
 0x19a   : > { %684 = vrot.lane.b32.xlu1 %v3613_v25, %s3324_s16 }
 0x19d   : > { %665 = vrot.lane.b32.xlu0 %v465_v14, %s3323_s12 }
 0x19e   : > { %690 = vrot.lane.b32.xlu1 %v3635_v35, %s3324_s16 }
 0x1a1   : > { %680 = vrot.lane.b32.xlu0 %v3594_v11, %s3324_s16 }
 0x1a2   : > { %1012 = vrot.lane.b32.xlu1 %v604_v17, %s3320_s9 }
 0x1a3   : > { %v3948_v19 = vpop.permute.xlu0 %948 }
 0x1a4   : > { %v3950_v20 = vpop.permute.xlu1 %946 }
 0x1a5   : > { %686 = vrot.lane.b32.xlu0 %v3623_v29, %s3324_s16 }
 0x1a6   : > { %692 = vrot.lane.b32.xlu1 %v3631_v34, %s3324_s16 }
 0x1a7   : > { %v3956_v21 = vpop.permute.xlu0 %940 }
 0x1a8   : > { %v3958_v22 = vpop.permute.xlu1 %952 }
 0x1a9   : > { %688 = vrot.lane.b32.xlu0 %v3621_v28, %s3324_s16 }
 0x1aa   : > { %1010 = vrot.lane.b32.xlu1 %v589_v62, %s3320_s9 }
 0x1ab   : > { %v3963_v23 = vpop.permute.xlu0 %938 }
 0x1ac   : > { %v535_v24 = vpop.permute.xlu1 %534 }
 0x1ad   : > { %1014 = vrot.lane.b32.xlu0 %v591_v50, %s3320_s9 }
 0x1ae   : > { %1020 = vrot.lane.b32.xlu1 %v595_v55, %s3320_s9 }
 0x1af   : > { %v3967_v26 = vpop.permute.xlu0 %944 }
 0x1b0   : > { %v539_v31 = vpop.permute.xlu1 %538 }
 0x1b1   : > { %694 = vrot.lane.b32.xlu0 %v3643_v38, %s3324_s16 }
 0x1b2   : > { %972 = vrot.lane.b32.xlu1 %v535_v24, %s3320_s9 }
 0x1b3   : > { %v531_v32 = vpop.permute.xlu0 %530 }
 0x1b4   : > { %v543_v33 = vpop.permute.xlu1 %542 }
 0x1b5   : > { %1018 = vrot.lane.b32.xlu0 %v605_v36, %s3320_s9 }
 0x1b6   : > { %978 = vrot.lane.b32.xlu1 %v539_v31, %s3320_s9 }
 0x1b7   : > { %v3976_v37 = vpop.permute.xlu0 %569 }
 0x1b8   : > { %v566_v39 = vpop.permute.xlu1 %565 }
 0x1b9   : > { %966 = vrot.lane.b32.xlu0 %v531_v32, %s3320_s9 }
 0x1ba   : > { %990 = vrot.lane.b32.xlu1 %v566_v39, %s3320_s9 }
 0x1bb   : > { %v3980_v42 = vpop.permute.xlu0 %573 }
 0x1bc   : > { %v929_v46 = vpop.permute.xlu1 %928 }
 0x1bd   : > { %984 = vrot.lane.b32.xlu0 %v543_v33, %s3320_s9 }
 0x1bf   : > { %v925_v50 = vpop.permute.xlu0 %924 }
 0x1c0   : > { %v933_v51 = vpop.permute.xlu1 %932 }
 0x1c1   : > { %996 = vrot.lane.b32.xlu0 %v3976_v37, %s3320_s9 }
 0x1c3   : > { %v578_v52 = vpop.permute.xlu0 %577 }
 0x1c4   : > { %v937_v53 = vpop.permute.xlu1 %936  ;;  %1008 = vrot.lane.b32.xlu1 %v578_v52, %s3320_s9 }
 0x1c5   : > { %1002 = vrot.lane.b32.xlu0 %v3980_v42, %s3320_s9 }
 0x1c7   : > { %v533_v54 = vpop.permute.xlu0 %532 }
 0x1c8   : > { %v3988_v55 = vpop.permute.xlu1 %616  ;;  %v548_v57 = vsel %vm5199_vm5, %v533_v54, %v535_v24 }
 0x1c9   : > { %970 = vrot.lane.b32.xlu0 %v548_v57, %s3320_s9 }
 0x1cb   : > { %v537_v58 = vpop.permute.xlu0 %536 }
 0x1cc   : > { %v529_v59 = vpop.permute.xlu1 %528  ;;  %v550_v61 = vsel %vm5199_vm5, %v537_v58, %v539_v31  ;;  %v549_v5 = vsel %vm5199_vm5, %v3826_v30, %v537_v58  ;;  %v547_v31 = vsel %vm5199_vm5, %v3826_v30, %v533_v54 }
 0x1cd   : > { %976 = vrot.lane.b32.xlu0 %v550_v61, %s3320_s9  ;;  %v546_v62 = vsel %vm5199_vm5, %v529_v59, %v531_v32  ;;  %v545_v8 = vsel %vm5199_vm5, %v3826_v30, %v529_v59 }
 0x1ce   : > { %964 = vrot.lane.b32.xlu1 %v546_v62, %s3320_s9 }
 0x1cf   : > { %v541_v63 = vpop.permute.xlu0 %540 }
 0x1d0   : > { %v568_v0 = vpop.permute.xlu1 %567  ;;  %v552_v58 = vsel %vm5199_vm5, %v541_v63, %v543_v33  ;;  %v551_v33 = vsel %vm5199_vm5, %v3826_v30, %v541_v63  ;;  %vm669_vm5 = vcmask 785408  }
 0x1d1   : > { %974 = vrot.lane.b32.xlu0 %v549_v5, %s3320_s9  ;;  %v582_v5 = vsel %vm5198_vm10, %v3878_v56, %v568_v0 }
 0x1d2   : > { %962 = vrot.lane.b32.xlu1 %v545_v8, %s3320_s9 }
 0x1d3   : > { %v564_v14 = vpop.permute.xlu0 %563 }
 0x1d4   : > { %v572_v17 = vpop.permute.xlu1 %571  ;;  %v581_v24 = vsel %vm5198_vm10, %v564_v14, %v566_v39  ;;  %v580_v57 = vsel %vm5198_vm10, %v3878_v56, %v564_v14 }
 0x1d5   : > { %988 = vrot.lane.b32.xlu0 %v581_v24, %s3320_s9 }
 0x1d6   : > { %968 = vrot.lane.b32.xlu1 %v547_v31, %s3320_s9  ;;  %v583_v31 = vsel %vm5198_vm10, %v568_v0, %v3976_v37  ;;  %v3014_v37 = vld [vmem:[#allocation5 + $0x4] ss:$20 sps:$4 sm:$0xff]  }
 0x1d7   : > { %v927_v32 = vpop.permute.xlu0 %926  ;;  %1319 = vmatprep.mubr.bf16.mxu0 %v3014_v37 }
 0x1d8   : > { %v923_v36 = vpop.permute.xlu1 %922  ;;  %v1133_v61 = vsel %vm471_vm0, %v927_v32, %v929_v46 }
 0x1d9   : > { %986 = vrot.lane.b32.xlu0 %v580_v57, %s3320_s9  ;;  %v1131_v59 = vsel %vm471_vm0, %v923_v36, %v925_v50  ;;  %v1130_v39 = vsel %vm471_vm0, %v3847_v40, %v923_v36  ;;  %v1132_v50 = vsel %vm471_vm0, %v3847_v40, %v927_v32 }
 0x1da   : > { %982 = vrot.lane.b32.xlu1 %v552_v58, %s3320_s9  ;;  %1287 = vmatprep.subr.bf16.mxu0 %v1131_v59 }
 0x1db   : > { %1288 = vmatpush1.bf16.msra.mxu0 %v1130_v39  ;;  %v931_v54 = vpop.permute.xlu0 %930  ;;  %v1138_v39 = vsel %vm471_vm0, %v3963_v23, %v3956_v21 }
 0x1dc   : > { %v576_v62 = vpop.permute.xlu1 %575  ;;  %1289 = vmatprep.subr.bf16.mxu0 %v1133_v61  ;;  %v1135_v14 = vsel %vm471_vm0, %v931_v54, %v933_v51  ;;  %v1134_v63 = vsel %vm471_vm0, %v3847_v40, %v931_v54 }
 0x1dd   : > { %992 = vrot.lane.b32.xlu0 %v582_v5, %s3320_s9  ;;  %v587_v24 = vsel %vm5198_vm10, %v576_v62, %v578_v52  ;;  %v586_v57 = vsel %vm5198_vm10, %v3878_v56, %v576_v62  ;;  %v585_v52 = vsel %vm5198_vm10, %v572_v17, %v3980_v42  ;;  %v584_v42 = vsel %vm5198_vm10, %v3878_v56, %v572_v17 }
 0x1de   : > { %980 = vrot.lane.b32.xlu1 %v551_v33, %s3320_s9  ;;  %v607_v62 = vsel %vm5197_vm14, %v3932_v10, %v3905_v2 }
 0x1df   : > { %1290 = vmatpush1.bf16.msra.mxu0 %v1132_v50  ;;  %v935_v8 = vpop.permute.xlu0 %934 }
 0x1e0   : > { %v4025_v46 = vpop.permute.xlu1 %622  ;;  %1291 = vmatprep.subr.bf16.mxu0 %v1135_v14  ;;  %v1137_v36 = vsel %vm471_vm0, %v935_v8, %v937_v53  ;;  %v1136_v0 = vsel %vm471_vm0, %v3847_v40, %v935_v8  ;;  %v1139_v53 = vsel %vm471_vm0, %v3956_v21, %v3942_v16  ;;  %v1141_v16 = vsel %vm471_vm0, %v3950_v20, %v3948_v19 }
 0x1e1   : > { %1006 = vrot.lane.b32.xlu0 %v587_v24, %s3320_s9  ;;  %v1140_v21 = vsel %vm471_vm0, %v3967_v26, %v3950_v20  ;;  %v4105_v24 = vsel %vm471_vm0, %v3928_v9, %v3940_v15 }
 0x1e2   : > { %994 = vrot.lane.b32.xlu1 %v583_v31, %s3320_s9  ;;  %vm474_vm10 = vcmp.ne.s16.totalorder %v4105_v24, 0 }
 0x1e3   : > { %1292 = vmatpush1.bf16.msra.mxu0 %v1134_v63  ;;  %v619_v32 = vpop.permute.xlu0 %618 }
 0x1e4   : > { %v951_v51 = vpop.permute.xlu1 %950  ;;  %1293 = vmatprep.subr.bf16.mxu0 %v1137_v36  ;;  %v635_v8 = vsel %vm634_vm2, %v3988_v55, %v619_v32 }
 0x1e5   : > { %1004 = vrot.lane.b32.xlu0 %v586_v57, %s3320_s9 }
 0x1e6   : > { %1000 = vrot.lane.b32.xlu1 %v585_v52, %s3320_s9 }
 0x1e7   : > { %1294 = vmatpush1.bf16.msra.mxu0 %v1136_v0  ;;  %v955_v58 = vpop.permute.xlu0 %954 }
 0x1e8   : > { %v961_v59 = vpop.permute.xlu1 %960  ;;  %1295 = vmatprep.subr.bf16.mxu0 %v1139_v53  ;;  %v1143_v19 = vsel %vm471_vm0, %v3958_v22, %v955_v58 }
 0x1e9   : > { %1016 = vrot.lane.b32.xlu0 %v3908_v3, %s3320_s9  ;;  %v606_v3 = vsel %vm5197_vm14, %v3919_v7, %v3891_v60  ;;  %vm5200_vm14 = vcmp.ne.s16.totalorder %v3928_v9, 0 }
 0x1ea   : > { %998 = vrot.lane.b32.xlu1 %v584_v42, %s3320_s9  ;;  %v477_v58 = vsel %vm5200_vm14, %v3613_v25, 0 }
 0x1eb   : > { %1296 = vmatpush1.bf16.msra.mxu0 %v1138_v39  ;;  %v625_v54 = vpop.permute.xlu0 %624 }
 0x1ec   : > { %v629_v61 = vpop.permute.xlu1 %628  ;;  %1297 = vmatprep.subr.bf16.mxu0 %v1141_v16  ;;  %v638_v36 = vsel %vm634_vm2, %v625_v54, %v3914_v4 }
 0x1ed   : > { %1026 = vrot.lane.b32.xlu0 %v3891_v60, %s3320_s9  ;;  %v1142_v60 = vsel %vm471_vm0, %v951_v51, %v3958_v22 }
 0x1ee   : > { %1024 = vrot.lane.b32.xlu1 %v606_v3, %s3320_s9 }
 0x1ef   : > { %1298 = vmatpush1.bf16.msra.mxu0 %v1140_v21  ;;  %v959_v23 = vpop.permute.xlu0 %958 }
 0x1f0   : > { %v4068_v17 = vpop.permute.xlu1 %630  ;;  %1299 = vmatprep.subr.bf16.mxu0 %v1143_v19  ;;  %v1145_v26 = vsel %vm471_vm0, %v959_v23, %v961_v59 }
 0x1f1   : > { %1030 = vrot.lane.b32.xlu0 %v607_v62, %s3320_s9 }
 0x1f2   : > { %1022 = vrot.lane.b32.xlu1 %v3919_v7, %s3320_s9  ;;  %v636_v7 = vsel %vm634_vm2, %v619_v32, %v3914_v4  ;;  %v475_v32 = vsel %vm5200_vm14, %v3597_v13, 0  ;;  %v476_v13 = vsel %vm474_vm10, %v3594_v11, 0  ;;  %v640_v11 = vsel %vm634_vm2, %v629_v61, %v3914_v4 }
 0x1f3   : > { %1300 = vmatpush1.bf16.msra.mxu0 %v1142_v60  ;;  %v627_v20 = vpop.permute.xlu0 %626 }
 0x1f4   : > { %v4079_v5 = vpop.permute.xlu1 %653  ;;  %1301 = vmatprep.subr.bf16.mxu0 %v1145_v26  ;;  %v639_v52 = vsel %vm634_vm2, %v627_v20, %v629_v61  ;;  %v479_v61 = vsel %vm5200_vm14, %v3621_v28, 0  ;;  %v481_v28 = vsel %vm5200_vm14, %v3631_v34, 0  ;;  %vm5201_vm14 = vcmask 777216  }
 0x1f5   : > { %1028 = vrot.lane.b32.xlu0 %v3932_v10, %s3320_s9 }
 0x1f6   : > { %1032 = vrot.lane.b32.xlu1 %v3905_v2, %s3320_s9  ;;  %v637_v2 = vsel %vm634_vm2, %v4025_v46, %v625_v54 }
 0x1f7   : > { %v957_v33 = vpop.permute.xlu0 %956 }
 0x1f8   : > { %v4085_v50 = vpop.permute.xlu1 %659  ;;  %v1144_v22 = vsel %vm471_vm0, %v957_v33, %v959_v23 }
 0x1f9   : > { %1038 = vrot.lane.b32.xlu0 %v636_v7, %s3320_s9  ;;  %1302 = vmatpush1.bf16.msra.mxu0 %v1144_v22 }
 0x1fa   : > { %1036 = vrot.lane.b32.xlu1 %v635_v8, %s3320_s9 }
 0x1fb   : > { %v633_v10 = vpop.permute.xlu0 %632 }
 0x1fc   : > { %v4094_v14 = vpop.permute.xlu1 %661  ;;  %v642_v39 = vsel %vm634_vm2, %v633_v10, %v3914_v4  ;;  %v641_v54 = vsel %vm634_vm2, %v4068_v17, %v633_v10 }
 0x1fd   : > { %1042 = vrot.lane.b32.xlu0 %v637_v2, %s3320_s9 }
 0x1fe   : > { %1034 = vrot.lane.b32.xlu1 %v3988_v55, %s3320_s9 }
 0x1ff   : > { %v652_v31 = vpop.permute.xlu0 %651 }
 0x200   : > { %v4107_v63 = vpop.permute.xlu1 %667  ;;  %v670_v23 = vsel %vm669_vm5, %v652_v31, %v4079_v5 }
 0x201   : > { %713 = vrot.lane.b32.xlu0 %v475_v32, %s3325_s27 }
 0x202   : > { %1044 = vrot.lane.b32.xlu1 %v638_v36, %s3320_s9 }
 0x203   : > { %v4117_v55 = vpop.permute.xlu0 %655 }
 0x204   : > { %v4119_v15 = vpop.permute.xlu1 %678  ;;  %v671_v62 = vsel %vm669_vm5, %v4079_v5, %v4117_v55  ;;  %v673_v26 = vsel %vm669_vm5, %v4085_v50, %v4117_v55  ;;  %v677_v2 = vsel %vm669_vm5, %v4107_v63, %v4117_v55 }
 0x205   : > { %717 = vrot.lane.b32.xlu0 %v3313_v1, %s3325_s27 }
 0x206   : > { %715 = vrot.lane.b32.xlu1 %v476_v13, %s3325_s27 }
 0x207   : > { %v658_v51 = vpop.permute.xlu0 %657 }
 0x208   : > { %v4127_v57 = vpop.permute.xlu1 %682  ;;  %v672_v5 = vsel %vm669_vm5, %v658_v51, %v4085_v50 }
 0x209   : > { %1048 = vrot.lane.b32.xlu0 %v639_v52, %s3320_s9 }
 0x20a   : > { %1040 = vrot.lane.b32.xlu1 %v4025_v46, %s3320_s9  ;;  %v478_v46 = vsel %vm474_vm10, %v3623_v29, 0  ;;  %v480_v29 = vsel %vm474_vm10, %v3635_v35, 0 }
 0x20b   : > { %v664_v37 = vpop.permute.xlu0 %663 }
 0x20c   : > { %v4133_v0 = vpop.permute.xlu1 %684  ;;  %v675_v8 = vsel %vm669_vm5, %v664_v37, %v4117_v55 }
 0x20d   : > { %719 = vrot.lane.b32.xlu0 %v477_v58, %s3325_s27 }
 0x20e   : > { %1050 = vrot.lane.b32.xlu1 %v640_v11, %s3320_s9 }
 0x20f   : > { %v666_v53 = vpop.permute.xlu0 %665 }
 0x210   : > { %v4142_v59 = vpop.permute.xlu1 %690 }
 0x211   : > { %1046 = vrot.lane.b32.xlu0 %v627_v20, %s3320_s9 }
 0x212   : > { %721 = vrot.lane.b32.xlu1 %v478_v46, %s3325_s27 }
 0x213   : > { %v681_v42 = vpop.permute.xlu0 %680 }
 0x214   : > { %v4149_v25 = vpop.permute.xlu1 %1012  ;;  %v697_v36 = vsel %vm5201_vm14, %v4119_v15, %v681_v42 }
 0x215   : > { %1056 = vrot.lane.b32.xlu0 %v642_v39, %s3320_s9 }
 0x216   : > { %1054 = vrot.lane.b32.xlu1 %v641_v54, %s3320_s9 }
 0x217   : > { %v687_v16 = vpop.permute.xlu0 %686 }
 0x218   : > { %v4164_v3 = vpop.permute.xlu1 %692  ;;  %v700_v58 = vsel %vm5201_vm14, %v687_v16, %v4127_v57  ;;  %v699_v11 = vsel %vm5201_vm14, %v4133_v0, %v687_v16 }
 0x219   : > { %725 = vrot.lane.b32.xlu0 %v480_v29, %s3325_s27 }
 0x21a   : > { %723 = vrot.lane.b32.xlu1 %v479_v61, %s3325_s27  ;;  %v702_v61 = vsel %vm5201_vm14, %v4142_v59, %v4127_v57 }
 0x21b   : > { %v4167_v21 = vpop.permute.xlu0 %688 }
 0x21c   : > { %v4176_v19 = vpop.permute.xlu1 %1010 }
 0x21d   : > { %1060 = vrot.lane.b32.xlu0 %v670_v23, %s3320_s9 }
 0x21e   : > { %1052 = vrot.lane.b32.xlu1 %v4068_v17, %s3320_s9  ;;  %v482_v17 = vsel %vm474_vm10, %v3643_v38, 0  ;;  %v674_v38 = vsel %vm669_vm5, %v4094_v14, %v664_v37 }
 0x21f   : > { %v4174_v35 = vpop.permute.xlu0 %1014 }
 0x220   : > { %v4192_v20 = vpop.permute.xlu1 %1020 }
 0x221   : > { %727 = vrot.lane.b32.xlu0 %v481_v28, %s3325_s27 }
 0x222   : > { %1062 = vrot.lane.b32.xlu1 %v671_v62, %s3320_s9 }
 0x223   : > { %v4186_v60 = vpop.permute.xlu0 %694 }
 0x224   : > { %v973_v7 = vpop.permute.xlu1 %972 }
 0x225   : > { %1058 = vrot.lane.b32.xlu0 %v652_v31, %s3320_s9  ;;  %v676_v31 = vsel %vm669_vm5, %v666_v53, %v4107_v63  ;;  %v698_v63 = vsel %vm5201_vm14, %v681_v42, %v4127_v57  ;;  %v701_v42 = vsel %vm5201_vm14, %v4167_v21, %v4142_v59  ;;  %v703_v59 = vsel %vm5201_vm14, %v4164_v3, %v4186_v60 }
 0x226   : > { %729 = vrot.lane.b32.xlu1 %v482_v17, %s3325_s27  ;;  %v704_v17 = vsel %vm5201_vm14, %v4186_v60, %v4127_v57  ;;  %vm5202_vm14 = vcmask 769024  }
 0x227   : > { %v4195_v34 = vpop.permute.xlu0 %1018 }
 0x228   : > { %v979_v10 = vpop.permute.xlu1 %978 }
 0x229   : > { %1068 = vrot.lane.b32.xlu0 %v673_v26, %s3320_s9 }
 0x22a   : > { %1066 = vrot.lane.b32.xlu1 %v672_v5, %s3320_s9 }
 0x22b   : > { %v967_v33 = vpop.permute.xlu0 %966 }
 0x22c   : > { %v991_v32 = vpop.permute.xlu1 %990 }
 0x22d   : > { %1072 = vrot.lane.b32.xlu0 %v674_v38, %s3320_s9 }
 0x22e   : > { %1064 = vrot.lane.b32.xlu1 %v658_v51, %s3320_s9 }
 0x22f   : > { %v985_v22 = vpop.permute.xlu0 %984 }
 0x231   : > { %1070 = vrot.lane.b32.xlu0 %v4094_v14, %s3320_s9 }
 0x232   : > { %1074 = vrot.lane.b32.xlu1 %v675_v8, %s3320_s9 }
 0x233   : > { %v4213_v50 = vpop.permute.xlu0 %996 }
 0x235   : > { %1080 = vrot.lane.b32.xlu0 %v677_v2, %s3320_s9 }
 0x236   : > { %1078 = vrot.lane.b32.xlu1 %v676_v31, %s3320_s9  ;;  %v4228_v51 = vpop.permute.xlu1 %1008 }
 0x237   : > { %v4222_v14 = vpop.permute.xlu0 %1002 }
 0x239   : > { %1084 = vrot.lane.b32.xlu0 %v697_v36, %s3320_s9 }
 0x23a   : > { %1076 = vrot.lane.b32.xlu1 %v666_v53, %s3320_s9 }
 0x23b   : > { %v971_v13 = vpop.permute.xlu0 %970 }
 0x23c   : > { %v1149_v54 = vsel %vm471_vm0, %v971_v13, %v973_v7 }
 0x23d   : > { %1082 = vrot.lane.b32.xlu0 %v4119_v15, %s3320_s9 }
 0x23e   : > { %1086 = vrot.lane.b32.xlu1 %v698_v63, %s3320_s9 }
 0x23f   : > { %v977_v52 = vpop.permute.xlu0 %976 }
 0x240   : > { %v965_v37 = vpop.permute.xlu1 %964 }
 0x241   : > { %1092 = vrot.lane.b32.xlu0 %v700_v58, %s3320_s9  ;;  %v1147_v53 = vsel %vm471_vm0, %v965_v37, %v967_v33 }
 0x242   : > { %1090 = vrot.lane.b32.xlu1 %v699_v11, %s3320_s9  ;;  %1303 = vmatprep.subr.bf16.mxu0 %v1147_v53  ;;  %v3012_v11 = vld [vmem:[#allocation5] ss:$20 sps:$4 sm:$0xff]  }
 0x243   : > { %v975_v15 = vpop.permute.xlu0 %974  ;;  %v3015_v53 = vld [vmem:[#allocation5 + $0x2c] ss:$20 sps:$4 sm:$0xff]  }
 0x244   : > { %v963_v46 = vpop.permute.xlu1 %962 }
 0x245   : > { %1096 = vrot.lane.b32.xlu0 %v701_v42, %s3320_s9  ;;  %v1146_v39 = vsel %vm471_vm0, %v963_v46, %v965_v37  ;;  %v1162_v42 = vsel %vm471_vm0, %v4176_v19, %v4149_v25 }
 0x246   : > { %1088 = vrot.lane.b32.xlu1 %v4133_v0, %s3320_s9  ;;  %1304 = vmatpush1.bf16.msra.mxu0 %v1146_v39  ;;  %v1151_v0 = vsel %vm471_vm0, %v977_v52, %v979_v10 }
 0x247   : > { %1305 = vmatprep.subr.bf16.mxu0 %v1149_v54  ;;  %v989_v16 = vpop.permute.xlu0 %988 }
 0x248   : > { %v969_v29 = vpop.permute.xlu1 %968  ;;  %v1155_v38 = vsel %vm471_vm0, %v989_v16, %v991_v32 }
 0x249   : > { %1094 = vrot.lane.b32.xlu0 %v4167_v21, %s3320_s9  ;;  %v1148_v23 = vsel %vm471_vm0, %v969_v29, %v971_v13  ;;  %v1150_v21 = vsel %vm471_vm0, %v975_v15, %v977_v52 }
 0x24a   : > { %1098 = vrot.lane.b32.xlu1 %v702_v61, %s3320_s9  ;;  %1306 = vmatpush1.bf16.msra.mxu0 %v1148_v23  ;;  %v3018_v61 = vld [vmem:[#allocation5 + $0x54] ss:$20 sps:$4 sm:$0xff]  }
 0x24b   : > { %1307 = vmatprep.subr.bf16.mxu0 %v1151_v0  ;;  %v987_v28 = vpop.permute.xlu0 %986 }
 0x24c   : > { %v983_v62 = vpop.permute.xlu1 %982  ;;  %v1154_v10 = vsel %vm471_vm0, %v987_v28, %v989_v16  ;;  %v3017_v16 = vld [vmem:[#allocation5 + $0x28] ss:$20 sps:$4 sm:$0xff]  }
 0x24d   : > { %1104 = vrot.lane.b32.xlu0 %v704_v17, %s3320_s9  ;;  %v1153_v26 = vsel %vm471_vm0, %v983_v62, %v985_v22 }
 0x24e   : > { %1102 = vrot.lane.b32.xlu1 %v703_v59, %s3320_s9  ;;  %1308 = vmatpush1.bf16.msra.mxu0 %v1150_v21  ;;  %v3021_v59 = vld [vmem:[#allocation5 + $0x7c] ss:$20 sps:$4 sm:$0xff]  }
 0x24f   : > { %1309 = vmatprep.subr.bf16.mxu0 %v1153_v26  ;;  %v993_v5 = vpop.permute.xlu0 %992 }
 0x250   : > { %v981_v33 = vpop.permute.xlu1 %980 }
 0x251   : > { %v1152_v7 = vsel %vm471_vm0, %v981_v33, %v983_v62  ;;  %v3020_v62 = vld [vmem:[#allocation5 + $0x50] ss:$20 sps:$4 sm:$0xff]  }
 0x252   : > { %1100 = vrot.lane.b32.xlu1 %v4164_v3, %s3320_s9  ;;  %1310 = vmatpush1.bf16.msra.mxu0 %v1152_v7 }
 0x253   : > { %1311 = vmatprep.subr.bf16.mxu0 %v1155_v38  ;;  %v1007_v60 = vpop.permute.xlu0 %1006 }
 0x254   : > { %v995_v8 = vpop.permute.xlu1 %994  ;;  %v1161_v52 = vsel %vm471_vm0, %v1007_v60, %v4228_v51  ;;  %v1165_v51 = vsel %vm471_vm0, %v4195_v34, %v4192_v20 }
 0x255   : > { %v1157_v22 = vsel %vm471_vm0, %v995_v8, %v4213_v50  ;;  %v1156_v36 = vsel %vm471_vm0, %v993_v5, %v995_v8 }
 0x256   : > { %1312 = vmatpush1.bf16.msra.mxu0 %v1154_v10  ;;  %v3023_v10 = vld [vmem:[#allocation5 + $0x78] ss:$20 sps:$4 sm:$0xff]  }
 0x257   : > { %1313 = vmatprep.subr.bf16.mxu0 %v1157_v22  ;;  %v1005_v2 = vpop.permute.xlu0 %1004 }
 0x258   : > { %v1001_v31 = vpop.permute.xlu1 %1000  ;;  %v1160_v58 = vsel %vm471_vm0, %v1005_v2, %v1007_v60  ;;  %v3026_v2 = vld [vmem:[#allocation5 + $0xc] ss:$20 sps:$4 sm:$0xff]  }
 0x259   : > { %v1159_v3 = vsel %vm471_vm0, %v1001_v31, %v4222_v14  ;;  %v1163_v14 = vsel %vm471_vm0, %v4149_v25, %v4174_v35 }
 0x25a   : > { %1314 = vmatpush1.bf16.msra.mxu0 %v1156_v36 }
 0x25b   : > { %1315 = vmatprep.subr.bf16.mxu0 %v1159_v3  ;;  %v1017_v32 = vpop.permute.xlu0 %1016 }
 0x25c   : > { %v999_v13 = vpop.permute.xlu1 %998  ;;  %v1164_v35 = vsel %vm471_vm0, %v1017_v32, %v4195_v34 }
 0x25d   : > { %v1158_v63 = vsel %vm471_vm0, %v999_v13, %v1001_v31 }
 0x25e   : > { %1316 = vmatpush1.bf16.msra.mxu0 %v1158_v63 }
 0x25f   : > { %1317 = vmatprep.subr.bf16.mxu0 %v1161_v52  ;;  %v1027_v50 = vpop.permute.xlu0 %1026 }
 0x260   : > { %v1025_v37 = vpop.permute.xlu1 %1024 }
 0x261   : > { %v1167_v29 = vsel %vm471_vm0, %v1025_v37, %v1027_v50 }
 0x262   : > { %1318 = vmatpush1.bf16.msra.mxu0 %v1160_v58 }
 0x263   : > { %1360 = vmatprep.subr.bf16.mxu0 %v1163_v14  ;;  %v1031_v15 = vpop.permute.xlu0 %1030 }
 0x264   : > { %v1023_v46 = vpop.permute.xlu1 %1022 }
 0x265   : > { %1320 = vmatmul.mubr.bf16.vlgmr.msra.gmra.mrb[0].mxu0 %v3012_v11  ;;  %v1166_v23 = vsel %vm471_vm0, %v1023_v46, %v1025_v37 }
 0x266   : > { %1361 = vmatpush1.bf16.msra.mxu0 %v1162_v42  ;;  %1329 = vmatprep.mubr.bf16.mxu0 %v3015_v53 }
 0x267   : > { %1362 = vmatprep.subr.bf16.mxu0 %v1165_v51  ;;  %v1029_v39 = vpop.permute.xlu0 %1028 }
 0x268   : > { %v1033_v54 = vpop.permute.xlu1 %1032  ;;  %v1168_v34 = vsel %vm471_vm0, %v1029_v39, %v1031_v15 }
 0x269   : > { %v1169_v20 = vsel %vm471_vm0, %v1031_v15, %v1033_v54 }
 0x26a   : > { %1363 = vmatpush1.bf16.msra.mxu0 %v1164_v35 }
 0x26b   : > { %1364 = vmatprep.subr.bf16.mxu0 %v1167_v29  ;;  %v1039_v25 = vpop.permute.xlu0 %1038 }
 0x26c   : > { %v1037_v19 = vpop.permute.xlu1 %1036 }
 0x26d   : > { %1330 = vmatmul.mubr.bf16.gmra.mrb[4].mxu0 %v3017_v16  ;;  %v1171_v17 = vsel %vm471_vm0, %v1037_v19, %v1039_v25 }
 0x26e   : > { %1365 = vmatpush1.bf16.msra.mxu0 %v1166_v23  ;;  %1339 = vmatprep.mubr.bf16.mxu0 %v3018_v61 }
 0x26f   : > { %1366 = vmatprep.subr.bf16.mxu0 %v1169_v20  ;;  %v1043_v0 = vpop.permute.xlu0 %1042 }
 0x270   : > { %v1035_v28 = vpop.permute.xlu1 %1034 }
 0x271   : > { %v1170_v5 = vsel %vm471_vm0, %v1035_v28, %v1037_v19 }
 0x272   : > { %1367 = vmatpush1.bf16.msra.mxu0 %v1168_v34 }
 0x273   : > { %1368 = vmatprep.subr.bf16.mxu0 %v1171_v17  ;;  %v714_v21 = vpop.permute.xlu0 %713 }
 0x274   : > { %v1045_v26 = vpop.permute.xlu1 %1044 }
 0x275   : > { %v1173_v33 = vsel %vm471_vm0, %v1043_v0, %v1045_v26  ;;  %1340 = vmatmul.mubr.bf16.gmra.mrb[8].mxu0 %v3020_v62 }
 0x276   : > { %1369 = vmatpush1.bf16.msra.mxu0 %v1170_v5  ;;  %1349 = vmatprep.mubr.bf16.mxu0 %v3021_v59 }
 0x277   : > { %1370 = vmatprep.subr.bf16.mxu0 %v1173_v33  ;;  %v4300_v7 = vpop.permute.xlu0 %717 }
 0x278   : > { %v716_v38 = vpop.permute.xlu1 %715 }
 0x279   : > { %v732_v60 = vsel %vm5202_vm14, %v714_v21, %v716_v38  ;;  %v733_v8 = vsel %vm5202_vm14, %v716_v38, %v4300_v7 }
 0x27a   : > { %1108 = vrot.lane.b32.xlu0 %v732_v60, %s3320_s9  ;;  %1110 = vrot.lane.b32.xlu1 %v733_v8, %s3320_s9 }
 0x27b   : > { %v1049_v22 = vpop.permute.xlu0 %1048 }
 0x27c   : > { %v1041_v31 = vpop.permute.xlu1 %1040 }
 0x27d   : > { %v1172_v36 = vsel %vm471_vm0, %v1041_v31, %v1043_v0  ;;  %1350 = vmatmul.mubr.bf16.gmra.mrb[12].mxu0 %v3023_v10 }
 0x27e   : > { %1371 = vmatpush1.bf16.msra.mxu0 %v1172_v36  ;;  %1106 = vrot.lane.b32.xlu0 %v714_v21, %s3320_s9  ;;  %v764_v36 = vld [vmem:[#allocation7] sm:$0xff] }
 0x27f   : > { %v720_v3 = vpop.permute.xlu0 %719  ;;  %1392 = vmatprep.mubr.bf16.mxu0 %v3026_v2 }
 0x280   : > { %v1051_v32 = vpop.permute.xlu1 %1050 }
 0x281   : > { %v1175_v13 = vsel %vm471_vm0, %v1049_v22, %v1051_v32 }
 0x282   : > { %1372 = vmatprep.subr.bf16.mxu0 %v1175_v13  ;;  %v767_v13 = vld [vmem:[#allocation7 + $0x18] sm:$0xff] }
 0x283   : > { %v1047_v63 = vpop.permute.xlu0 %1046 }
 0x284   : > { %v1174_v52 = vsel %vm471_vm0, %v1047_v63, %v1049_v22  ;;  %v722_v50 = vpop.permute.xlu1 %721 }
 0x285   : > { %1373 = vmatpush1.bf16.msra.mxu0 %v1174_v52  ;;  %v735_v37 = vsel %vm5202_vm14, %v722_v50, %v4300_v7  ;;  %v734_v58 = vsel %vm5202_vm14, %v720_v3, %v722_v50  ;;  %v766_v52 = vld [vmem:[#allocation7 + $0x10] sm:$0xff] }
 0x286   : > { %1116 = vrot.lane.b32.xlu0 %v735_v37, %s3320_s9  ;;  %1114 = vrot.lane.b32.xlu1 %v734_v58, %s3320_s9 }
 0x287   : > { %v1057_v11 = vpop.permute.xlu0 %1056 }
 0x288   : > { %v1055_v14 = vpop.permute.xlu1 %1054 }
 0x289   : > { %v1177_v53 = vsel %vm471_vm0, %v1055_v14, %v1057_v11  ;;  %v769_v11 = vld [vmem:[#allocation7 + $0x28] sm:$0xff] }
 0x28a   : > { %1112 = vrot.lane.b32.xlu1 %v720_v3, %s3320_s9  ;;  %1374 = vmatprep.subr.bf16.mxu0 %v1177_v53  ;;  %v765_v3 = vld [vmem:[#allocation7 + $0x8] sm:$0xff]  ;;  %v768_v53 = vld [vmem:[#allocation7 + $0x20] sm:$0xff] }
 0x28b   : > { %v726_v15 = vpop.permute.xlu0 %725 }
 0x28c   : > { %v724_v46 = vpop.permute.xlu1 %723  ;;  %v737_v42 = vsel %vm5202_vm14, %v726_v15, %v4300_v7 }
 0x28d   : > { %v736_v51 = vsel %vm5202_vm14, %v724_v46, %v726_v15 }
 0x28e   : > { %1122 = vrot.lane.b32.xlu1 %v737_v42, %s3320_s9  ;;  %1120 = vrot.lane.b32.xlu0 %v736_v51, %s3320_s9  ;;  %v771_v42 = vld [vmem:[#allocation7 + $0x38] sm:$0xff] }
 0x28f   : > { %v1061_v39 = vpop.permute.xlu0 %1060 }
 0x290   : > { %v1053_v54 = vpop.permute.xlu1 %1052 }
 0x291   : > { %v1176_v35 = vsel %vm471_vm0, %v1053_v54, %v1055_v14 }
 0x292   : > { %1375 = vmatpush1.bf16.msra.mxu0 %v1176_v35  ;;  %1118 = vrot.lane.b32.xlu0 %v724_v46, %s3320_s9 }
 0x293   : > { %v728_v16 = vpop.permute.xlu0 %727 }
 0x294   : > { %v1063_v29 = vpop.permute.xlu1 %1062 }
 0x295   : > { %v1179_v61 = vsel %vm471_vm0, %v1061_v39, %v1063_v29 }
 0x296   : > { %1376 = vmatprep.subr.bf16.mxu0 %v1179_v61 }
 0x297   : > { %v1059_v25 = vpop.permute.xlu0 %1058 }
 0x298   : > { %v1178_v19 = vsel %vm471_vm0, %v1059_v25, %v1061_v39  ;;  %v730_v23 = vpop.permute.xlu1 %729  ;;  %v770_v39 = vld [vmem:[#allocation7 + $0x30] sm:$0xff] }
 0x299   : > { %1377 = vmatpush1.bf16.msra.mxu0 %v1178_v19  ;;  %v739_v20 = vsel %vm5202_vm14, %v730_v23, %v4300_v7  ;;  %v738_v0 = vsel %vm5202_vm14, %v728_v16, %v730_v23  ;;  %vm1274_vm14 = vcmask 523264  }
 0x29a   : > { %1128 = vrot.lane.b32.xlu0 %v739_v20, %s3320_s9  ;;  %1126 = vrot.lane.b32.xlu1 %v738_v0, %s3320_s9 }
 0x29b   : > { %v1069_v28 = vpop.permute.xlu0 %1068 }
 0x29c   : > { %v1067_v34 = vpop.permute.xlu1 %1066 }
 0x29d   : > { %v1181_v62 = vsel %vm471_vm0, %v1067_v34, %v1069_v28  ;;  %v3024_v28 = vld [vmem:[#allocation5 + $0x8] ss:$20 sps:$4 sm:$0xff]  }
 0x29e   : > { %1124 = vrot.lane.b32.xlu1 %v728_v16, %s3320_s9  ;;  %1378 = vmatprep.subr.bf16.mxu0 %v1181_v62  ;;  %v3029_v62 = vld [vmem:[#allocation5 + $0x30] ss:$20 sps:$4 sm:$0xff]  }
 0x29f   : > { %v1073_v17 = vpop.permute.xlu0 %1072  ;;  %774 = vperm.xlu0 %3010, %v764_v36  }
 0x2a0   : > { %v1065_v59 = vpop.permute.xlu1 %1064 }
 0x2a1   : > { %v1180_v21 = vsel %vm471_vm0, %v1065_v59, %v1067_v34  ;;  %v3027_v34 = vld [vmem:[#allocation5 + $0x34] ss:$20 sps:$4 sm:$0xff]   ;;  %v3032_v59 = vld [vmem:[#allocation5 + $0x58] ss:$20 sps:$4 sm:$0xff]  }
 0x2a2   : > { %1379 = vmatpush1.bf16.msra.mxu0 %v1180_v21  ;;  %779 = vperm.xlu1 %3011, %v765_v3   ;;  %v3033_v21 = vld [vmem:[#allocation5 + $0x84] ss:$20 sps:$4 sm:$0xff]  }
 0x2a3   : > { %v1071_v26 = vpop.permute.xlu0 %1070  ;;  %789 = vperm.xlu0 %3010, %v767_v13  }
 0x2a4   : > { %v1075_v5 = vpop.permute.xlu1 %1074  ;;  %v1182_v38 = vsel %vm471_vm0, %v1071_v26, %v1073_v17  ;;  %v3035_v26 = vld [vmem:[#allocation5 + $0x80] ss:$20 sps:$4 sm:$0xff]  }
 0x2a5   : > { %v1183_v33 = vsel %vm471_vm0, %v1073_v17, %v1075_v5  ;;  %v3030_v17 = vld [vmem:[#allocation5 + $0x5c] ss:$20 sps:$4 sm:$0xff]  }
 0x2a6   : > { %1380 = vmatprep.subr.bf16.mxu0 %v1183_v33  ;;  %784 = vperm.xlu1 %3011, %v766_v52  }
 0x2a7   : > { %1381 = vmatpush1.bf16.msra.mxu0 %v1182_v38  ;;  %v1081_v60 = vpop.permute.xlu0 %1080  ;;  %799 = vperm.xlu0 %3010, %v769_v11  }
 0x2a8   : > { %v1079_v8 = vpop.permute.xlu1 %1078 }
 0x2a9   : > { %v1185_v10 = vsel %vm471_vm0, %v1079_v8, %v1081_v60 }
 0x2aa   : > { %1382 = vmatprep.subr.bf16.mxu0 %v1185_v10  ;;  %794 = vperm.xlu1 %3011, %v768_v53   ;;  %v3036_v53 = vld [vmem:[#allocation5 + $0x10] ss:$20 sps:$4 sm:$0xff]  }
 0x2ab   : > { %v1085_v22 = vpop.permute.xlu0 %1084  ;;  %809 = vperm.xlu0 %3010, %v771_v42   ;;  %v3039_v42 = vld [vmem:[#allocation5 + $0x88] ss:$20 sps:$4 sm:$0xff]  }
 0x2ac   : > { %v1077_v2 = vpop.permute.xlu1 %1076 }
 0x2ad   : > { %v1184_v31 = vsel %vm471_vm0, %v1077_v2, %v1079_v8 }
 0x2ae   : > { %1383 = vmatpush1.bf16.msra.mxu0 %v1184_v31  ;;  %804 = vperm.xlu1 %3011, %v770_v39  }
 0x2af   : > { %v1083_v32 = vpop.permute.xlu0 %1082 }
 0x2b0   : > { %v1087_v63 = vpop.permute.xlu1 %1086  ;;  %v1186_v37 = vsel %vm471_vm0, %v1083_v32, %v1085_v22 }
 0x2b1   : > { %v1187_v50 = vsel %vm471_vm0, %v1085_v22, %v1087_v63 }
 0x2b2   : > { %1384 = vmatprep.subr.bf16.mxu0 %v1187_v50 }
 0x2b3   : > { %1385 = vmatpush1.bf16.msra.mxu0 %v1186_v37  ;;  %v1093_v58 = vpop.permute.xlu0 %1092 }
 0x2b4   : > { %v1091_v14 = vpop.permute.xlu1 %1090 }
 0x2b5   : > { %v1189_v15 = vsel %vm471_vm0, %v1091_v14, %v1093_v58 }
 0x2b6   : > { %1386 = vmatprep.subr.bf16.mxu0 %v1189_v15  ;;  %v3037_v15 = vld [vmem:[#allocation5 + $0x38] ss:$20 sps:$4 sm:$0xff]  }
 0x2b7   : > { %v1097_v46 = vpop.permute.xlu0 %1096 }
 0x2b8   : > { %v1089_v51 = vpop.permute.xlu1 %1088 }
 0x2b9   : > { %v1188_v54 = vsel %vm471_vm0, %v1089_v51, %v1091_v14 }
 0x2ba   : > { %1387 = vmatpush1.bf16.msra.mxu0 %v1188_v54 }
 0x2bb   : > { %v1095_v35 = vpop.permute.xlu0 %1094 }
 0x2bc   : > { %v1099_v16 = vpop.permute.xlu1 %1098  ;;  %v1190_v61 = vsel %vm471_vm0, %v1095_v35, %v1097_v46 }
 0x2bd   : > { %v1191_v29 = vsel %vm471_vm0, %v1097_v46, %v1099_v16  ;;  %v3038_v46 = vld [vmem:[#allocation5 + $0x60] ss:$20 sps:$4 sm:$0xff]  }
 0x2be   : > { %1388 = vmatprep.subr.bf16.mxu0 %v1191_v29 }
 0x2bf   : > { %1389 = vmatpush1.bf16.msra.mxu0 %v1190_v61  ;;  %v1105_v25 = vpop.permute.xlu0 %1104 }
 0x2c0   : > { %v1103_v19 = vpop.permute.xlu1 %1102 }
 0x2c1   : > { %v1193_v23 = vsel %vm471_vm0, %v1103_v19, %v1105_v25 }
 0x2c2   : > { %1390 = vmatprep.subr.bf16.mxu0 %v1193_v23 }
 0x2c4   : > { %v1101_v20 = vpop.permute.xlu1 %1100 }
 0x2c5   : > { %v1192_v0 = vsel %vm471_vm0, %v1101_v20, %v1103_v19 }
 0x2c6   : > { %1391 = vmatpush1.bf16.msra.mxu0 %v1192_v0 }
 0x2c9   : > { %1393 = vmatmul.mubr.bf16.vlgmr.msra.gmra.mrb[0].mxu0 %v3024_v28 }
 0x2ca   : > { %1402 = vmatprep.mubr.bf16.mxu0 %v3027_v34 }
 0x2d1   : > { %1403 = vmatmul.mubr.bf16.gmra.mrb[4].mxu0 %v3029_v62 }
 0x2d2   : > { %1412 = vmatprep.mubr.bf16.mxu0 %v3030_v17 }
 0x2d9   : > { %1413 = vmatmul.mubr.bf16.gmra.mrb[8].mxu0 %v3032_v59 }
 0x2da   : > { %1422 = vmatprep.mubr.bf16.mxu0 %v3033_v21 }
 0x2e1   : > { %1423 = vmatmul.mubr.bf16.gmra.mrb[12].mxu0 %v3035_v26 }
 0x2e2   : > { %1465 = vmatprep.mubr.bf16.mxu0 %v3313_v1 }
 0x2ec   : > { %v1111_v5 = vpop.permute.xlu1 %1110  ;;  %v1109_v33 = vpop.permute.xlu0 %1108 }
 0x2ed   : > { %v1195_v38 = vsel %vm471_vm0, %v1109_v33, %v1111_v5 }
 0x2ee   : > { %1433 = vmatprep.subr.bf16.mxu0 %v1195_v38 }
 0x2f0   : > { %v1107_v60 = vpop.permute.xlu0 %1106 }
 0x2f1   : > { %v1194_v8 = vsel %vm471_vm0, %v1107_v60, %v1109_v33 }
 0x2f2   : > { %1434 = vmatpush1.bf16.msra.mxu0 %v1194_v8 }
 0x2f8   : > { %v1115_v10 = vpop.permute.xlu1 %1114  ;;  %v1117_v22 = vpop.permute.xlu0 %1116 }
 0x2f9   : > { %v1197_v2 = vsel %vm471_vm0, %v1115_v10, %v1117_v22 }
 0x2fa   : > { %1435 = vmatprep.subr.bf16.mxu0 %v1197_v2 }
 0x2fc   : > { %v1113_v31 = vpop.permute.xlu1 %1112 }
 0x2fd   : > { %v1196_v36 = vsel %vm471_vm0, %v1113_v31, %v1115_v10 }
 0x2fe   : > { %1436 = vmatpush1.bf16.msra.mxu0 %v1196_v36 }
 0x300   : > { %v1123_v3 = vpop.permute.xlu1 %1122  ;;  %v1121_v32 = vpop.permute.xlu0 %1120 }
 0x301   : > { %v1199_v13 = vsel %vm471_vm0, %v1121_v32, %v1123_v3 }
 0x302   : > { %1437 = vmatprep.subr.bf16.mxu0 %v1199_v13 }
 0x304   : > { %v1119_v63 = vpop.permute.xlu0 %1118 }
 0x305   : > { %v1198_v52 = vsel %vm471_vm0, %v1119_v63, %v1121_v32 }
 0x306   : > { %1438 = vmatpush1.bf16.msra.mxu0 %v1198_v52 }
 0x30c   : > { %v1127_v50 = vpop.permute.xlu1 %1126  ;;  %v1129_v37 = vpop.permute.xlu0 %1128 }
 0x30d   : > { %v1201_v58 = vsel %vm471_vm0, %v1127_v50, %v1129_v37 }
 0x30e   : > { %1439 = vmatprep.subr.bf16.mxu0 %v1201_v58 }
 0x310   : > { %v1125_v11 = vpop.permute.xlu1 %1124 }
 0x311   : > { %v1200_v14 = vsel %vm471_vm0, %v1125_v11, %v1127_v50 }
 0x312   : > { %1440 = vmatpush1.bf16.msra.mxu0 %v1200_v14 }
 0x315   : > { %2771 = vmatmul.mubr.msk.bf16.vlgmr.msra.gmra.mrb[0].mxu0 %vm1274_vm14, %v3036_v53 }
 0x316   : > { %1475 = vmatprep.mubr.bf16.mxu0 %v3313_v1 }
 0x31d   : > { %2772 = vmatmul.mubr.msk.bf16.gmra.mrb[4].mxu0 %vm1274_vm14, %v3037_v15 }
 0x31e   : > { %1485 = vmatprep.mubr.bf16.mxu0 %v3313_v1  ;;  %v775_v51 = vpop.permute.xlu0 %774 }
 0x321   : > { %v780_v16 = vpop.permute.xlu1 %779 }
 0x322   : > { %v790_v33 = vpop.permute.xlu0 %789 }
 0x325   : > { %2773 = vmatmul.mubr.msk.bf16.gmra.mrb[8].mxu0 %vm1274_vm14, %v3038_v46  ;;  %v785_v17 = vpop.permute.xlu1 %784 }
 0x326   : > { %1495 = vmatprep.mubr.bf16.mxu0 %v3313_v1  ;;  %v800_v11 = vpop.permute.xlu0 %799 }
 0x329   : > { %v795_v13 = vpop.permute.xlu1 %794 }
 0x32d   : > { %2774 = vmatmul.mubr.msk.bf16.gmra.mrb[12].mxu0 %vm1274_vm14, %v3039_v42 }
 0x3e8   : > { %v1467_v39 = vpop.f32.mrb[0].mxu0 }
 0x3e9   : > { %v2806_v54 = vadd.f32 %v1467_v39, %v775_v51  ;;  %v1469_v35 = vpop.f32.mrb[1].mxu0 }
 0x3ea   : > { %v2807_v29 = vadd.f32 %v1469_v35, %v775_v51  ;;  %v1471_v61 = vpop.f32.mrb[2].mxu0 }
 0x3eb   : > { %v2808_v25 = vadd.f32 %v1471_v61, %v780_v16  ;;  %v1473_v19 = vpop.f32.mrb[3].mxu0  ;;  %v1506_v20 = vmax.f32 %v2806_v54, 0.0 }
 0x3ec   : > { %v2809_v23 = vadd.f32 %v1473_v19, %v780_v16  ;;  %v1507_v28 = vmax.f32 %v2807_v29, 0.0 }
 0x3ed   : > { %v1508_v0 = vmax.f32 %v2808_v25, 0.0  ;;  %v805_v25 = vpop.permute.xlu1 %804 }
 0x3ee   : > { %v1509_v34 = vmax.f32 %v2809_v23, 0.0 }
 0x3ef   : > { %v4363_v62 = vpack.c.bf16 %v1508_v0, %v1506_v20 }
 0x3f0   : > { %v4365_v59 = vpack.c.bf16 %v1509_v34, %v1507_v28  ;;  %v1477_v21 = vpop.f32.mrb[4].mxu0 }
 0x3f1   : > { %v2810_v26 = vadd.f32 %v1477_v21, %v785_v17  ;;  %v1479_v5 = vpop.f32.mrb[5].mxu0  ;;  %1758 = vrot.lane.b32.xlu0 %v4363_v62, %s3324_s16  ;;  %1586 = vrot.lane.b32.xlu1 %v4363_v62, %s3314_s24  ;;  %v1538_v50 = vsel %vm409_vm11, %v4363_v62, 0  ;;  %v1554_v51 = vsel %vm441_vm12, %v4363_v62, 0  ;;  %v1546_v39 = vsel %vm425_vm13, %v4363_v62, 0 }
 0x3f2   : > { %v2811_v38 = vadd.f32 %v1479_v5, %v785_v17  ;;  %v1481_v60 = vpop.f32.mrb[6].mxu0  ;;  %v1562_v20 = vsel %vm457_vm4, %v4363_v62, 0  ;;  %v1530_v0 = vsel %vm379_vm15, %v4363_v62, 0  ;;  %v810_v17 = vpop.permute.xlu0 %809 }
 0x3f3   : > { %v2812_v8 = vadd.f32 %v1481_v60, %v790_v33  ;;  %v1483_v10 = vpop.f32.mrb[7].mxu0  ;;  %v1510_v2 = vmax.f32 %v2810_v26, 0.0  ;;  %v1539_v60 = vsel %vm410_vm7, %v4365_v59, 0 }
 0x3f4   : > { %v2813_v22 = vadd.f32 %v1483_v10, %v790_v33  ;;  %v1511_v36 = vmax.f32 %v2811_v38, 0.0 }
 0x3f5   : > { %v1512_v31 = vmax.f32 %v2812_v8, 0.0  ;;  %1588 = vrot.lane.b32.xlu0 %v4365_v59, %s3314_s24  ;;  %1674 = vrot.lane.b32.xlu1 %v4363_v62, %s3316_s11 }
 0x3f6   : > { %v1513_v3 = vmax.f32 %v2813_v22, 0.0 }
 0x3f7   : > { %v4375_v32 = vpack.c.bf16 %v1512_v31, %v1510_v2 }
 0x3f8   : > { %v4377_v63 = vpack.c.bf16 %v1513_v3, %v1511_v36  ;;  %v1487_v52 = vpop.f32.mrb[8].mxu0  ;;  %v1547_v3 = vsel %vm426_vm8, %v4365_v59, 0 }
 0x3f9   : > { %v2814_v37 = vadd.f32 %v1487_v52, %v795_v13  ;;  %v1489_v58 = vpop.f32.mrb[9].mxu0  ;;  %1676 = vrot.lane.b32.xlu0 %v4365_v59, %s3316_s11  ;;  %1618 = vrot.lane.b32.xlu1 %v1538_v50, %s3318_s15  ;;  %v1531_v52 = vsel %vm380_vm9, %v4365_v59, 0  ;;  %v1563_v50 = vsel %vm458_vm3, %v4365_v59, 0 }
 0x3fa   : > { %v2815_v14 = vadd.f32 %v1489_v58, %v795_v13  ;;  %v1491_v53 = vpop.f32.mrb[10].mxu0  ;;  %v1555_v13 = vsel %vm442_vm1, %v4365_v59, 0  ;;  %v1540_v58 = vsel %vm409_vm11, %v4375_v32, 0 }
 0x3fb   : > { %v2816_v15 = vadd.f32 %v1491_v53, %v800_v11  ;;  %v1493_v46 = vpop.f32.mrb[11].mxu0  ;;  %v1514_v54 = vmax.f32 %v2814_v37, 0.0  ;;  %v1541_v37 = vsel %vm410_vm7, %v4377_v63, 0  ;;  %v1533_v53 = vsel %vm380_vm9, %v4377_v63, 0 }
 0x3fc   : > { %v2817_v42 = vadd.f32 %v1493_v46, %v800_v11  ;;  %v1515_v16 = vmax.f32 %v2815_v14, 0.0  ;;  %v1549_v11 = vsel %vm426_vm8, %v4377_v63, 0  ;;  %v1548_v14 = vsel %vm425_vm13, %v4375_v32, 0 }
 0x3fd   : > { %v1516_v35 = vmax.f32 %v2816_v15, 0.0  ;;  %1702 = vrot.lane.b32.xlu0 %v1554_v51, %s3322_s30  ;;  %1650 = vrot.lane.b32.xlu1 %v1546_v39, %s3321_s23  ;;  %v1532_v15 = vsel %vm379_vm15, %v4375_v32, 0  ;;  %v1557_v46 = vsel %vm442_vm1, %v4377_v63, 0  ;;  %v1565_v51 = vsel %vm458_vm3, %v4377_v63, 0 }
 0x3fe   : > { %v1517_v29 = vmax.f32 %v2817_v42, 0.0  ;;  %v1556_v42 = vsel %vm441_vm12, %v4375_v32, 0  ;;  %v1564_v39 = vsel %vm457_vm4, %v4375_v32, 0 }
 0x3ff   : > { %v4393_v61 = vpack.c.bf16 %v1516_v35, %v1514_v54 }
 0x400   : > { %v4395_v19 = vpack.c.bf16 %v1517_v29, %v1515_v16  ;;  %v1497_v23 = vpop.f32.mrb[12].mxu0 }
 0x401   : > { %v2818_v28 = vadd.f32 %v1497_v23, %v805_v25  ;;  %v1499_v34 = vpop.f32.mrb[13].mxu0  ;;  %1734 = vrot.lane.b32.xlu0 %v1562_v20, %s3323_s12  ;;  %1994 = vrot.lane.b32.xlu1 %v1530_v0, %s3320_s9  ;;  %v1542_v54 = vsel %vm409_vm11, %v4393_v61, 0  ;;  %v1558_v35 = vsel %vm441_vm12, %v4393_v61, 0  ;;  %v1550_v16 = vsel %vm425_vm13, %v4393_v61, 0 }
 0x402   : > { %v2819_v21 = vadd.f32 %v1499_v34, %v805_v25  ;;  %v1501_v26 = vpop.f32.mrb[14].mxu0  ;;  %v1566_v29 = vsel %vm457_vm4, %v4393_v61, 0  ;;  %v1534_v25 = vsel %vm379_vm15, %v4393_v61, 0  ;;  %v1543_v23 = vsel %vm410_vm7, %v4395_v19, 0 }
 0x403   : > { %v2820_v5 = vadd.f32 %v1501_v26, %v810_v17  ;;  %v1503_v33 = vpop.f32.mrb[15].mxu0  ;;  %v1518_v8 = vmax.f32 %v2818_v28, 0.0  ;;  %v1551_v20 = vsel %vm426_vm8, %v4395_v19, 0  ;;  %v1559_v0 = vsel %vm442_vm1, %v4395_v19, 0 }
 0x404   : > { %v2821_v38 = vadd.f32 %v1503_v33, %v810_v17  ;;  %v1519_v22 = vmax.f32 %v2819_v21, 0.0  ;;  %v1535_v28 = vsel %vm380_vm9, %v4395_v19, 0  ;;  %v1567_v34 = vsel %vm458_vm3, %v4395_v19, 0 }
 0x405   : > { %v1520_v10 = vmax.f32 %v2820_v5, 0.0  ;;  %1620 = vrot.lane.b32.xlu0 %v1539_v60, %s3318_s15  ;;  %1760 = vrot.lane.b32.xlu1 %v4365_v59, %s3324_s16 }
 0x406   : > { %v1521_v2 = vmax.f32 %v2821_v38, 0.0 }
 0x407   : > { %v4411_v31 = vpack.c.bf16 %v1520_v10, %v1518_v8 }
 0x408   : > { %v4413_v36 = vpack.c.bf16 %v1521_v2, %v1519_v22 }
 0x409   : > { %1652 = vrot.lane.b32.xlu0 %v1547_v3, %s3321_s23  ;;  %1704 = vrot.lane.b32.xlu1 %v1555_v13, %s3322_s30  ;;  %v1544_v21 = vsel %vm409_vm11, %v4411_v31, 0  ;;  %v1552_v5 = vsel %vm425_vm13, %v4411_v31, 0  ;;  %v1536_v43 = vsel %vm379_vm15, %v4411_v31, 0  ;;  %v1560_v8 = vsel %vm441_vm12, %v4411_v31, 0 }
 0x40a   : > { %v1545_v17 = vsel %vm410_vm7, %v4413_v36, 0  ;;  %v1553_v26 = vsel %vm426_vm8, %v4413_v36, 0  ;;  %v1537_v6 = vsel %vm380_vm9, %v4413_v36, 0  ;;  %v1561_v60 = vsel %vm442_vm1, %v4413_v36, 0 }
 0x40b   : > { %v1569_v10 = vsel %vm458_vm3, %v4413_v36, 0  ;;  %v1568_v22 = vsel %vm457_vm4, %v4411_v31, 0  ;;  %vm5217_vm7 = vcmask 1031168   ;;  %vm5218_vm8 = vcmask 916480  }
 0x40c   : > { %vm5219_vm9 = vcmask 908288   ;;  %vm5220_vm11 = vmmov %vm5217_vm7 }
 0x40d   : > { %1996 = vrot.lane.b32.xlu0 %v1531_v52, %s3320_s9  ;;  %1736 = vrot.lane.b32.xlu1 %v1563_v50, %s3323_s12  ;;  %vm5221_vm12 = vmmov %vm5218_vm8 }
 0x40e   : > { %vm5222_vm13 = vmmov %vm5217_vm7 }
 0x40f   : > { %vm5223_vm15 = vmmov %vm5218_vm8 }
 0x410   : > { %vm5224_vm1 = vmmov %vm5219_vm9 }
 0x411   : > { %1592 = vrot.lane.b32.xlu0 %v4377_v63, %s3314_s24  ;;  %1590 = vrot.lane.b32.xlu1 %v4375_v32, %s3314_s24  ;;  %vm5225_vm3 = vmmov %vm5217_vm7 }
 0x412   : > { %vm5226_vm4 = vmmov %vm5218_vm8 }
 0x415   : > { %1680 = vrot.lane.b32.xlu0 %v4377_v63, %s3316_s11  ;;  %1678 = vrot.lane.b32.xlu1 %v4375_v32, %s3316_s11 }
 0x419   : > { %1764 = vrot.lane.b32.xlu0 %v4377_v63, %s3324_s16  ;;  %1762 = vrot.lane.b32.xlu1 %v4375_v32, %s3324_s16 }
 0x41d   : > { %1624 = vrot.lane.b32.xlu0 %v1541_v37, %s3318_s15  ;;  %1622 = vrot.lane.b32.xlu1 %v1540_v58, %s3318_s15 }
 0x421   : > { %1656 = vrot.lane.b32.xlu0 %v1549_v11, %s3321_s23  ;;  %1654 = vrot.lane.b32.xlu1 %v1548_v14, %s3321_s23 }
 0x425   : > { %2000 = vrot.lane.b32.xlu0 %v1533_v53, %s3320_s9  ;;  %1998 = vrot.lane.b32.xlu1 %v1532_v15, %s3320_s9 }
 0x429   : > { %1708 = vrot.lane.b32.xlu0 %v1557_v46, %s3322_s30  ;;  %1706 = vrot.lane.b32.xlu1 %v1556_v42, %s3322_s30 }
 0x42d   : > { %1740 = vrot.lane.b32.xlu0 %v1565_v51, %s3323_s12  ;;  %1738 = vrot.lane.b32.xlu1 %v1564_v39, %s3323_s12 }
 0x431   : > { %1766 = vrot.lane.b32.xlu0 %v4393_v61, %s3324_s16  ;;  %1594 = vrot.lane.b32.xlu1 %v4393_v61, %s3314_s24 }
 0x435   : > { %1596 = vrot.lane.b32.xlu0 %v4395_v19, %s3314_s24  ;;  %1682 = vrot.lane.b32.xlu1 %v4393_v61, %s3316_s11 }
 0x439   : > { %1684 = vrot.lane.b32.xlu0 %v4395_v19, %s3316_s11  ;;  %1626 = vrot.lane.b32.xlu1 %v1542_v54, %s3318_s15 }
 0x43d   : > { %1710 = vrot.lane.b32.xlu0 %v1558_v35, %s3322_s30  ;;  %1658 = vrot.lane.b32.xlu1 %v1550_v16, %s3321_s23 }
 0x441   : > { %1742 = vrot.lane.b32.xlu0 %v1566_v29, %s3323_s12  ;;  %2002 = vrot.lane.b32.xlu1 %v1534_v25, %s3320_s9 }
 0x445   : > { %1628 = vrot.lane.b32.xlu0 %v1543_v23, %s3318_s15  ;;  %1768 = vrot.lane.b32.xlu1 %v4395_v19, %s3324_s16 }
 0x449   : > { %1660 = vrot.lane.b32.xlu0 %v1551_v20, %s3321_s23  ;;  %1712 = vrot.lane.b32.xlu1 %v1559_v0, %s3322_s30 }
 0x44d   : > { %2004 = vrot.lane.b32.xlu0 %v1535_v28, %s3320_s9  ;;  %1744 = vrot.lane.b32.xlu1 %v1567_v34, %s3323_s12 }
 0x451   : > { %1600 = vrot.lane.b32.xlu0 %v4413_v36, %s3314_s24  ;;  %1598 = vrot.lane.b32.xlu1 %v4411_v31, %s3314_s24  ;;  %s2623_s24 = sshll.u32 %s5106_s10, 4  ;;  %s5141_s24 = int_to_ptr.vmem [resolvable:$true] %s2623_s24 }
 0x455   : > { %1688 = vrot.lane.b32.xlu0 %v4413_v36, %s3316_s11  ;;  %1686 = vrot.lane.b32.xlu1 %v4411_v31, %s3316_s11 }
 0x459   : > { %1772 = vrot.lane.b32.xlu0 %v4413_v36, %s3324_s16  ;;  %1770 = vrot.lane.b32.xlu1 %v4411_v31, %s3324_s16 }
 0x45d   : > { %1632 = vrot.lane.b32.xlu0 %v1545_v17, %s3318_s15  ;;  %1630 = vrot.lane.b32.xlu1 %v1544_v21, %s3318_s15  ;;  %s3226_s15 = scalar_lea.vmem %s5141_s24, 2048 }
 0x45e   : > { %p3227_p3 = scmp.ne.s32.totalorder %s5141_s24, %s3226_s15 }
 0x460   : > { %p3228_p5 = pnand %p3227_p3, %p3517_p0 }
 0x461   : > { %1664 = vrot.lane.b32.xlu0 %v1553_v26, %s3321_s23  ;;  %1662 = vrot.lane.b32.xlu1 %v1552_v5, %s3321_s23 }
 0x462   : > { %p3229_p7 = pneg %p3228_p5 }
 0x463   : > { %v1587_v44 = vpop.permute.xlu1 %1586  ;;  %v4563_v33 = vpop.permute.xlu0 %1758 }
 0x464   : > { %v1602_v49 = vsel %vm423_vm6, %v3684_v48, %v1587_v44 }
 0x465   : > { %2008 = vrot.lane.b32.xlu0 %v1537_v6, %s3320_s9  ;;  %2006 = vrot.lane.b32.xlu1 %v1536_v43, %s3320_s9 }
 0x467   : > { %v1675_v12 = vpop.permute.xlu1 %1674  ;;  %v1589_v38 = vpop.permute.xlu0 %1588 }
 0x468   : > { %v1603_v52 = vsel %vm423_vm6, %v1587_v44, %v1589_v38 }
 0x469   : > { %1716 = vrot.lane.b32.xlu0 %v1561_v60, %s3322_s30  ;;  %1714 = vrot.lane.b32.xlu1 %v1560_v8, %s3322_s30 }
 0x46b   : > { %v1619_v45 = vpop.permute.xlu1 %1618  ;;  %v1677_v18 = vpop.permute.xlu0 %1676 }
 0x46c   : > { %v1634_v58 = vsel %vm5217_vm7, %v3826_v30, %v1619_v45  ;;  %v1690_v54 = vsel %vm5219_vm9, %v1675_v12, %v1677_v18  ;;  %vm5227_vm7 = vmmov %vm5225_vm3 }
 0x46d   : > { %1748 = vrot.lane.b32.xlu0 %v1569_v10, %s3323_s12  ;;  %1746 = vrot.lane.b32.xlu1 %v1568_v22, %s3323_s12  ;;  %vm5229_vm9 = vmmov %vm5224_vm1 }
 0x46f   : > { %v1651_v47 = vpop.permute.xlu1 %1650  ;;  %v4589_v27 = vpop.permute.xlu0 %1702 }
 0x470   : > { %v1666_v53 = vsel %vm5218_vm8, %v3878_v56, %v1651_v47  ;;  %vm5228_vm8 = vmmov %vm5226_vm4 }
 0x471   : > { %2082 = vrot.lane.b32.xlu1 %v1675_v12, %s3320_s9  ;;  %2014 = vrot.lane.b32.xlu0 %v1589_v38, %s3320_s9 }
 0x473   : > { %v1995_v2 = vpop.permute.xlu1 %1994  ;;  %v4593_v3 = vpop.permute.xlu0 %1734 }
 0x474   : > { %v2202_v42 = vsel %vm471_vm0, %v3847_v40, %v1995_v2 }
 0x475   : > { %2010 = vrot.lane.b32.xlu1 %v1602_v49, %s3320_s9  ;;  %2086 = vrot.lane.b32.xlu0 %v1677_v18, %s3320_s9 }
 0x477   : > { %v4599_v41 = vpop.permute.xlu1 %1760  ;;  %v1621_v13 = vpop.permute.xlu0 %1620 }
 0x478   : > { %v1635_v29 = vsel %vm5220_vm11, %v1619_v45, %v1621_v13  ;;  %vm5230_vm11 = vmmov %vm5225_vm3 }
 0x479   : > { %2012 = vrot.lane.b32.xlu1 %v1603_v52, %s3320_s9  ;;  %2038 = vrot.lane.b32.xlu0 %v1621_v13, %s3320_s9 }
 0x47b   : > { %v1705_v50 = vpop.permute.xlu1 %1704  ;;  %v1653_v37 = vpop.permute.xlu0 %1652 }
 0x47c   : > { %v1719_v15 = vsel %vm634_vm2, %v1705_v50, %v3914_v4  ;;  %v1667_v0 = vsel %vm5221_vm12, %v1651_v47, %v1653_v37  ;;  %v1718_v21 = vsel %vm634_vm2, %v4589_v27, %v1705_v50  ;;  %vm5231_vm12 = vmmov %vm5226_vm4 }
 0x47d   : > { %2034 = vrot.lane.b32.xlu1 %v1634_v58, %s3320_s9  ;;  %2062 = vrot.lane.b32.xlu0 %v1653_v37, %s3320_s9 }
 0x47f   : > { %v4608_v11 = vpop.permute.xlu1 %1736  ;;  %v1997_v14 = vpop.permute.xlu0 %1996 }
 0x480   : > { %v2203_v46 = vsel %vm471_vm0, %v1995_v2, %v1997_v14 }
 0x481   : > { %2058 = vrot.lane.b32.xlu1 %v1666_v53, %s3320_s9  ;;  %2110 = vrot.lane.b32.xlu0 %v1719_v15, %s3320_s9 }
 0x482   : > { %2358 = vmatprep.subr.bf16.mxu1 %v2203_v46 }
 0x483   : > { %2359 = vmatpush1.bf16.msra.mxu1 %v2202_v42  ;;  %v1591_v51 = vpop.permute.xlu1 %1590  ;;  %v1593_v39 = vpop.permute.xlu0 %1592 }
 0x484   : > { %v1604_v20 = vsel %vm423_vm6, %v3684_v48, %v1591_v51  ;;  %v1605_v17 = vsel %vm423_vm6, %v1591_v51, %v1593_v39 }
 0x485   : > { %2084 = vrot.lane.b32.xlu1 %v1690_v54, %s3320_s9 }
 0x487   : > { %v1679_v35 = vpop.permute.xlu1 %1678  ;;  %v1681_v16 = vpop.permute.xlu0 %1680 }
 0x488   : > { %2088 = vrot.lane.b32.xlu0 %v1679_v35, %s3320_s9  ;;  %v1691_v18 = vsel %vm5224_vm1, %v1679_v35, %v1681_v16 }
 0x489   : > { %2036 = vrot.lane.b32.xlu1 %v1635_v29, %s3320_s9 }
 0x48b   : > { %v4624_v25 = vpop.permute.xlu1 %1762  ;;  %v4626_v23 = vpop.permute.xlu0 %1764 }
 0x48c   : > { %2016 = vrot.lane.b32.xlu0 %v1604_v20, %s3320_s9 }
 0x48d   : > { %2060 = vrot.lane.b32.xlu1 %v1667_v0, %s3320_s9 }
 0x48f   : > { %v1623_v28 = vpop.permute.xlu1 %1622  ;;  %v1625_v34 = vpop.permute.xlu0 %1624 }
 0x490   : > { %2018 = vrot.lane.b32.xlu0 %v1605_v17, %s3320_s9  ;;  %v1636_v44 = vsel %vm5222_vm13, %v3826_v30, %v1623_v28  ;;  %v1637_v47 = vsel %vm5225_vm3, %v1623_v28, %v1625_v34  ;;  %vm5232_vm13 = vmmov %vm5225_vm3 }
 0x491   : > { %2108 = vrot.lane.b32.xlu1 %v1718_v21, %s3320_s9 }
 0x493   : > { %v1655_v26 = vpop.permute.xlu1 %1654  ;;  %v1657_v5 = vpop.permute.xlu0 %1656 }
 0x494   : > { %2040 = vrot.lane.b32.xlu0 %v1636_v44, %s3320_s9  ;;  %v1668_v12 = vsel %vm5223_vm15, %v3878_v56, %v1655_v26  ;;  %v1669_v13 = vsel %vm5226_vm4, %v1655_v26, %v1657_v5  ;;  %vm5234_vm15 = vmmov %vm5224_vm1 }
 0x495   : > { %2020 = vrot.lane.b32.xlu1 %v1593_v39, %s3320_s9  ;;  %vm5235_vm1 = vmmov %vm5225_vm3  ;;  %vm5236_vm3 = vcmp.ne.s16.totalorder %v3928_v9, 0 }
 0x497   : > { %v1999_v6 = vpop.permute.xlu1 %1998  ;;  %v2001_v43 = vpop.permute.xlu0 %2000 }
 0x498   : > { %2064 = vrot.lane.b32.xlu0 %v1668_v12, %s3320_s9  ;;  %v2205_v38 = vsel %vm471_vm0, %v1999_v6, %v2001_v43  ;;  %v2204_v60 = vsel %vm471_vm0, %v3847_v40, %v1999_v6 }
 0x499   : > { %2092 = vrot.lane.b32.xlu1 %v1681_v16, %s3320_s9  ;;  %2360 = vmatprep.subr.bf16.mxu1 %v2205_v38 }
 0x49a   : > { %2361 = vmatpush1.bf16.msra.mxu1 %v2204_v60 }
 0x49b   : > { %v4649_v8 = vpop.permute.xlu1 %1706  ;;  %v4651_v45 = vpop.permute.xlu0 %1708 }
 0x49c   : > { %2090 = vrot.lane.b32.xlu0 %v1691_v18, %s3320_s9  ;;  %v1720_v18 = vsel %vm634_vm2, %v4649_v8, %v4651_v45 }
 0x49d   : > { %2044 = vrot.lane.b32.xlu1 %v1625_v34, %s3320_s9 }
 0x49f   : > { %v4656_v10 = vpop.permute.xlu1 %1738  ;;  %v4658_v22 = vpop.permute.xlu0 %1740 }
 0x4a0   : > { %2042 = vrot.lane.b32.xlu0 %v1637_v47, %s3320_s9  ;;  %v1752_v24 = vsel %vm669_vm5, %v4656_v10, %v4658_v22 }
 0x4a1   : > { %2068 = vrot.lane.b32.xlu1 %v1657_v5, %s3320_s9 }
 0x4a3   : > { %v1595_v2 = vpop.permute.xlu1 %1594  ;;  %v4663_v49 = vpop.permute.xlu0 %1766 }
 0x4a4   : > { %2066 = vrot.lane.b32.xlu0 %v1669_v13, %s3320_s9  ;;  %v1606_v14 = vsel %vm423_vm6, %v3684_v48, %v1595_v2 }
 0x4a7   : > { %v1683_v52 = vpop.permute.xlu1 %1682  ;;  %v1597_v50 = vpop.permute.xlu0 %1596 }
 0x4a8   : > { %2094 = vrot.lane.b32.xlu1 %v1683_v52, %s3320_s9  ;;  %2026 = vrot.lane.b32.xlu0 %v1597_v50, %s3320_s9  ;;  %v1607_v46 = vsel %vm423_vm6, %v1595_v2, %v1597_v50 }
 0x4ab   : > { %v1627_v37 = vpop.permute.xlu1 %1626  ;;  %v1685_v58 = vpop.permute.xlu0 %1684 }
 0x4ac   : > { %2022 = vrot.lane.b32.xlu1 %v1606_v14, %s3320_s9  ;;  %2098 = vrot.lane.b32.xlu0 %v1685_v58, %s3320_s9  ;;  %v1638_v39 = vsel %vm5227_vm7, %v3826_v30, %v1627_v37  ;;  %v1692_v0 = vsel %vm5229_vm9, %v1683_v52, %v1685_v58  ;;  %v1721_v52 = vsel %vm634_vm2, %v4651_v45, %v3914_v4  ;;  %vm5240_vm9 = vmmov %vm5236_vm3 }
 0x4af   : > { %v1659_v53 = vpop.permute.xlu1 %1658  ;;  %v4673_v15 = vpop.permute.xlu0 %1710 }
 0x4b0   : > { %2024 = vrot.lane.b32.xlu1 %v1607_v46, %s3320_s9  ;;  %v1670_v16 = vsel %vm5228_vm8, %v3878_v56, %v1659_v53  ;;  %vm5239_vm8 = vmmov %vm5236_vm3 }
 0x4b3   : > { %v2003_v42 = vpop.permute.xlu1 %2002  ;;  %v4677_v51 = vpop.permute.xlu0 %1742 }
 0x4b4   : > { %2046 = vrot.lane.b32.xlu1 %v1638_v39, %s3320_s9  ;;  %v2206_v26 = vsel %vm471_vm0, %v3847_v40, %v2003_v42 }
 0x4b7   : > { %v4682_v54 = vpop.permute.xlu1 %1768  ;;  %v1629_v35 = vpop.permute.xlu0 %1628 }
 0x4b8   : > { %2070 = vrot.lane.b32.xlu1 %v1670_v16, %s3320_s9  ;;  %2050 = vrot.lane.b32.xlu0 %v1629_v35, %s3320_s9  ;;  %v1639_v17 = vsel %vm5230_vm11, %v1627_v37, %v1629_v35 }
 0x4bb   : > { %v4688_v29 = vpop.permute.xlu1 %1712  ;;  %v1661_v20 = vpop.permute.xlu0 %1660 }
 0x4bc   : > { %2096 = vrot.lane.b32.xlu1 %v1692_v0, %s3320_s9  ;;  %2074 = vrot.lane.b32.xlu0 %v1661_v20, %s3320_s9  ;;  %v1671_v6 = vsel %vm5231_vm12, %v1659_v53, %v1661_v20 }
 0x4bf   : > { %v4693_v28 = vpop.permute.xlu1 %1744  ;;  %v2005_v34 = vpop.permute.xlu0 %2004 }
 0x4c0   : > { %2048 = vrot.lane.b32.xlu1 %v1639_v17, %s3320_s9  ;;  %v2207_v21 = vsel %vm471_vm0, %v2003_v42, %v2005_v34  ;;  %v1722_v34 = vsel %vm634_vm2, %v4673_v15, %v4688_v29 }
 0x4c1   : > { %2362 = vmatprep.subr.bf16.mxu1 %v2207_v21 }
 0x4c2   : > { %2363 = vmatpush1.bf16.msra.mxu1 %v2206_v26 }
 0x4c3   : > { %v1599_v5 = vpop.permute.xlu1 %1598  ;;  %v1601_v44 = vpop.permute.xlu0 %1600 }
 0x4c4   : > { %2072 = vrot.lane.b32.xlu1 %v1671_v6, %s3320_s9  ;;  %v1608_v13 = vsel %vm423_vm6, %v3684_v48, %v1599_v5  ;;  %v1609_v58 = vsel %vm423_vm6, %v1599_v5, %v1601_v44  ;;  %vm5233_vm6 = vmmov %vm5226_vm4  ;;  %v3042_v6 = vld [vmem:[#allocation8 + $0x4] ss:$20 sps:$4 sm:$0xff]  }
 0x4c5   : > { %vm5237_vm4 = vmmov %vm5236_vm3  ;;  %2390 = vmatprep.mubr.bf16.mxu1 %v3042_v6 }
 0x4c6   : > { %v1572_v26 = vsel %vm5237_vm4, %v4375_v32, 0  ;;  %vm5238_vm7 = vmmov %vm5233_vm6 }
 0x4c7   : > { %v1687_v43 = vpop.permute.xlu1 %1686  ;;  %v1689_v12 = vpop.permute.xlu0 %1688 }
 0x4c8   : > { %2100 = vrot.lane.b32.xlu0 %v1687_v43, %s3320_s9  ;;  %2032 = vrot.lane.b32.xlu1 %v1601_v44, %s3320_s9  ;;  %v1693_v16 = vsel %vm5234_vm15, %v1687_v43, %v1689_v12 }
 0x4cb   : > { %v4704_v38 = vpop.permute.xlu1 %1770  ;;  %v4706_v60 = vpop.permute.xlu0 %1772 }
 0x4cc   : > { %2114 = vrot.lane.b32.xlu0 %v1720_v18, %s3320_s9  ;;  %2106 = vrot.lane.b32.xlu1 %v4589_v27, %s3320_s9 }
 0x4cf   : > { %v1631_v47 = vpop.permute.xlu1 %1630  ;;  %v1633_v2 = vpop.permute.xlu0 %1632 }
 0x4d0   : > { %2028 = vrot.lane.b32.xlu0 %v1608_v13, %s3320_s9  ;;  %2116 = vrot.lane.b32.xlu1 %v1721_v52, %s3320_s9  ;;  %v1640_v48 = vsel %vm5232_vm13, %v3826_v30, %v1631_v47  ;;  %v1641_v0 = vsel %vm5235_vm1, %v1631_v47, %v1633_v2  ;;  %v1573_v13 = vsel %vm474_vm10, %v4377_v63, 0  ;;  %v1576_v52 = vsel %vm5239_vm8, %v4411_v31, 0 }
 0x4d1   : > { %v1753_v31 = vsel %vm669_vm5, %v4658_v22, %v4117_v55  ;;  %vm5249_vm1 = vcmask 769024  }
 0x4d2   : > { %vm5251_vm4 = vmmov %vm5249_vm1 }
 0x4d3   : > { %v1663_v50 = vpop.permute.xlu1 %1662  ;;  %v1665_v37 = vpop.permute.xlu0 %1664  ;;  %vm5253_vm8 = vmmov %vm5249_vm1 }
 0x4d4   : > { %2030 = vrot.lane.b32.xlu0 %v1609_v58, %s3320_s9  ;;  %2104 = vrot.lane.b32.xlu1 %v1689_v12, %s3320_s9  ;;  %v1672_v39 = vsel %vm5233_vm6, %v3878_v56, %v1663_v50  ;;  %v1723_v12 = vsel %vm634_vm2, %v4688_v29, %v3914_v4  ;;  %v1673_v47 = vsel %vm5238_vm7, %v1663_v50, %v1665_v37  ;;  %v1574_v58 = vsel %vm5240_vm9, %v4393_v61, 0  ;;  %vm5252_vm7 = vmmov %vm5249_vm1 }
 0x4d5   : > { %v1751_v61 = vsel %vm669_vm5, %v4608_v11, %v4117_v55  ;;  %vm5254_vm9 = vmmov %vm5249_vm1 }
 0x4d7   : > { %v2007_v27 = vpop.permute.xlu1 %2006  ;;  %v2009_v14 = vpop.permute.xlu0 %2008 }
 0x4d8   : > { %2052 = vrot.lane.b32.xlu0 %v1640_v48, %s3320_s9  ;;  %2056 = vrot.lane.b32.xlu1 %v1633_v2, %s3320_s9  ;;  %v2209_v45 = vsel %vm471_vm0, %v2007_v27, %v2009_v14  ;;  %v2208_v53 = vsel %vm471_vm0, %v3847_v40, %v2007_v27  ;;  %v1571_v40 = vsel %vm474_vm10, %v4365_v59, 0  ;;  %v1570_v59 = vsel %vm5236_vm3, %v4363_v62, 0  ;;  %vm5250_vm3 = vmmov %vm5249_vm1 }
 0x4d9   : > { %2364 = vmatprep.subr.bf16.mxu1 %v2209_v45  ;;  %v1750_v2 = vsel %vm669_vm5, %v4593_v3, %v4608_v11 }
 0x4da   : > { %2365 = vmatpush1.bf16.msra.mxu1 %v2208_v53  ;;  %v1577_v53 = vsel %vm474_vm10, %v4413_v36, 0 }
 0x4db   : > { %v4731_v46 = vpop.permute.xlu1 %1714  ;;  %v4733_v42 = vpop.permute.xlu0 %1716 }
 0x4dc   : > { %2076 = vrot.lane.b32.xlu0 %v1672_v39, %s3320_s9  ;;  %2080 = vrot.lane.b32.xlu1 %v1665_v37, %s3320_s9  ;;  %v1725_v39 = vsel %vm634_vm2, %v4733_v42, %v3914_v4 }
 0x4df   : > { %v4739_v30 = vpop.permute.xlu1 %1746  ;;  %v4741_v35 = vpop.permute.xlu0 %1748 }
 0x4e0   : > { %2102 = vrot.lane.b32.xlu0 %v1693_v16, %s3320_s9  ;;  %1792 = vrot.lane.b32.xlu1 %v1571_v40, %s3325_s27 }
 0x4e3   : > { %v4749_v20 = vpop.permute.xlu1 %2082  ;;  %v2015_v56 = vpop.permute.xlu0 %2014 }
 0x4e4   : > { %2054 = vrot.lane.b32.xlu0 %v1641_v0, %s3320_s9  ;;  %2120 = vrot.lane.b32.xlu1 %v1722_v34, %s3320_s9 }
 0x4e7   : > { %v2011_v17 = vpop.permute.xlu1 %2010  ;;  %v4757_v21 = vpop.permute.xlu0 %2086 }
 0x4e8   : > { %1790 = vrot.lane.b32.xlu0 %v1570_v59, %s3325_s27  ;;  %1794 = vrot.lane.b32.xlu1 %v1572_v26, %s3325_s27  ;;  %v1757_v26 = vsel %vm669_vm5, %v4741_v35, %v4117_v55 }
 0x4eb   : > { %v2013_v5 = vpop.permute.xlu1 %2012  ;;  %v4767_v44 = vpop.permute.xlu0 %2038 }
 0x4ec   : > { %2112 = vrot.lane.b32.xlu0 %v4649_v8, %s3320_s9  ;;  %2118 = vrot.lane.b32.xlu1 %v4673_v15, %s3320_s9  ;;  %v2211_v62 = vsel %vm471_vm0, %v2013_v5, %v2015_v56  ;;  %v2210_v43 = vsel %vm471_vm0, %v2011_v17, %v2013_v5  ;;  %v1575_v8 = vsel %vm474_vm10, %v4395_v19, 0  ;;  %vm5241_vm10 = vcmask 777216  }
 0x4ed   : > { %2366 = vmatprep.subr.bf16.mxu1 %v2211_v62  ;;  %v1774_v36 = vsel %vm5241_vm10, %v4563_v33, %v4599_v41 }
 0x4ee   : > { %2367 = vmatpush1.bf16.msra.mxu1 %v2210_v43  ;;  %v1756_v43 = vsel %vm669_vm5, %v4739_v30, %v4741_v35 }
 0x4ef   : > { %v4775_v32 = vpop.permute.xlu1 %2034  ;;  %v4783_v18 = vpop.permute.xlu0 %2062 }
 0x4f0   : > { %2122 = vrot.lane.b32.xlu0 %v1723_v12, %s3320_s9  ;;  %1800 = vrot.lane.b32.xlu1 %v1575_v8, %s3325_s27 }
 0x4f3   : > { %v4787_v15 = vpop.permute.xlu1 %2058  ;;  %v4795_v29 = vpop.permute.xlu0 %2110 }
 0x4f4   : > { %2078 = vrot.lane.b32.xlu0 %v1673_v47, %s3320_s9  ;;  %2132 = vrot.lane.b32.xlu1 %v1750_v2, %s3320_s9 }
 0x4f7   : > { %v4797_v19 = vpop.permute.xlu1 %2084 }
 0x4f8   : > { %1796 = vrot.lane.b32.xlu0 %v1573_v13, %s3325_s27  ;;  %1802 = vrot.lane.b32.xlu1 %v1576_v52, %s3325_s27 }
 0x4fa   : > { %v4807_v50 = vpop.permute.xlu0 %2088 }
 0x4fb   : > { %v4809_v37 = vpop.permute.xlu1 %2036 }
 0x4fc   : > { %1798 = vrot.lane.b32.xlu0 %v1574_v58, %s3325_s27  ;;  %2130 = vrot.lane.b32.xlu1 %v4593_v3, %s3320_s9  ;;  %v1754_v3 = vsel %vm669_vm5, %v4677_v51, %v4693_v28 }
 0x4fe   : > { %v2017_v63 = vpop.permute.xlu0 %2016 }
 0x4ff   : > { %v4817_v27 = vpop.permute.xlu1 %2060 }
 0x500   : > { %2124 = vrot.lane.b32.xlu0 %v4731_v46, %s3320_s9  ;;  %2140 = vrot.lane.b32.xlu1 %v1753_v31, %s3320_s9 }
 0x502   : > { %v2019_v14 = vpop.permute.xlu0 %2018 }
 0x503   : > { %v4825_v9 = vpop.permute.xlu1 %2108  ;;  %v2212_v16 = vsel %vm471_vm0, %v2017_v63, %v2019_v14 }
 0x504   : > { %2134 = vrot.lane.b32.xlu0 %v1751_v61, %s3320_s9  ;;  %2144 = vrot.lane.b32.xlu1 %v1754_v3, %s3320_s9 }
 0x506   : > { %v4835_v48 = vpop.permute.xlu0 %2040 }
 0x507   : > { %v2021_v45 = vpop.permute.xlu1 %2020 }
 0x508   : > { %1804 = vrot.lane.b32.xlu0 %v1577_v53, %s3325_s27  ;;  %2128 = vrot.lane.b32.xlu1 %v1725_v39, %s3320_s9  ;;  %v2213_v11 = vsel %vm471_vm0, %v2019_v14, %v2021_v45 }
 0x509   : > { %2368 = vmatprep.subr.bf16.mxu1 %v2213_v11 }
 0x50a   : > { %2369 = vmatpush1.bf16.msra.mxu1 %v2212_v16  ;;  %v2065_v40 = vpop.permute.xlu0 %2064 }
 0x50b   : > { %v2093_v56 = vpop.permute.xlu1 %2092 }
 0x50c   : > { %2138 = vrot.lane.b32.xlu0 %v1752_v24, %s3320_s9  ;;  %2142 = vrot.lane.b32.xlu1 %v4677_v51, %s3320_s9  ;;  %v1724_v51 = vsel %vm634_vm2, %v4731_v46, %v4733_v42  ;;  %vm5242_vm2 = vmmov %vm5241_vm10  ;;  %v2218_v24 = vsel %vm471_vm0, %v4775_v32, %v4809_v37 }
 0x50d   : > { %v1777_v42 = vsel %vm5242_vm2, %v4626_v23, %v4127_v57  ;;  %vm5243_vm11 = vmmov %vm5242_vm2 }
 0x50e   : > { %v4853_v4 = vpop.permute.xlu0 %2090  ;;  %vm5244_vm12 = vmmov %vm5242_vm2 }
 0x50f   : > { %v4860_v0 = vsel %vm471_vm0, %v4853_v4, %v2093_v56  ;;  %v4862_v34 = vpop.permute.xlu1 %2044  ;;  %v1778_v5 = vsel %vm5244_vm12, %v4663_v49, %v4682_v54  ;;  %vm5245_vm13 = vmmov %vm5242_vm2 }
 0x510   : > { %2136 = vrot.lane.b32.xlu0 %v4656_v10, %s3320_s9  ;;  %2156 = vrot.lane.b32.xlu1 %v1774_v36, %s3320_s9  ;;  %v1755_v10 = vsel %vm669_vm5, %v4693_v28, %v4117_v55  ;;  %v1775_v55 = vsel %vm5243_vm11, %v4599_v41, %v4127_v57  ;;  %v1781_v47 = vsel %vm5245_vm13, %v4706_v60, %v4127_v57  ;;  %vm5246_vm6 = vmmov %vm5242_vm2 }
 0x511   : > { %vm5247_vm5 = vmmov %vm5242_vm2 }
 0x512   : > { %v4867_v22 = vpop.permute.xlu0 %2042  ;;  %v1779_v52 = vsel %vm5247_vm5, %v4682_v54, %v4127_v57  ;;  %vm5248_vm15 = vmmov %vm5242_vm2 }
 0x513   : > { %v4875_v17 = vpop.permute.xlu1 %2068  ;;  %v1780_v31 = vsel %vm5248_vm15, %v4704_v38, %v4706_v60  ;;  %v2221_v36 = vsel %vm471_vm0, %v4867_v22, %v4862_v34  ;;  %vm5255_vm10 = vmmov %vm5249_vm1 }
 0x514   : > { %2154 = vrot.lane.b32.xlu1 %v4563_v33, %s3320_s9  ;;  %2126 = vrot.lane.b32.xlu0 %v1724_v51, %s3320_s9  ;;  %vm5256_vm2 = vmmov %vm5249_vm1 }
 0x516   : > { %v4877_v59 = vpop.permute.xlu0 %2066 }
 0x517   : > { %v4887_v46 = vsel %vm471_vm0, %v2065_v40, %v4877_v59 }
 0x518   : > { %2146 = vrot.lane.b32.xlu0 %v1755_v10, %s3320_s9  ;;  %2152 = vrot.lane.b32.xlu1 %v1757_v26, %s3320_s9  ;;  %v2220_v26 = vsel %vm471_vm0, %v4835_v48, %v4867_v22 }
 0x51a   : > { %v2095_v33 = vpop.permute.xlu1 %2094  ;;  %v2027_v6 = vpop.permute.xlu0 %2026 }
 0x51c   : > { %2148 = vrot.lane.b32.xlu0 %v4739_v30, %s3320_s9  ;;  %2164 = vrot.lane.b32.xlu1 %v1777_v42, %s3320_s9  ;;  %v1776_v30 = vsel %vm5246_vm6, %v4624_v25, %v4626_v23 }
 0x51e   : > { %v2023_v28 = vpop.permute.xlu1 %2022 }
 0x520   : > { %2158 = vrot.lane.b32.xlu0 %v1775_v55, %s3320_s9  ;;  %2168 = vrot.lane.b32.xlu1 %v1778_v5, %s3320_s9  ;;  %v2227_v55 = vsel %vm471_vm0, %v4817_v27, %v4783_v18 }
 0x522   : > { %v2025_v62 = vpop.permute.xlu1 %2024 }
 0x523   : > { %v2215_v12 = vsel %vm471_vm0, %v2025_v62, %v2027_v6  ;;  %v2214_v8 = vsel %vm471_vm0, %v2023_v28, %v2025_v62 }
 0x524   : > { %2166 = vrot.lane.b32.xlu1 %v4663_v49, %s3320_s9  ;;  %2150 = vrot.lane.b32.xlu0 %v1756_v43, %s3320_s9  ;;  %v2099_v49 = vpop.permute.xlu0 %2098  ;;  %v2226_v43 = vsel %vm471_vm0, %v4787_v15, %v4817_v27 }
 0x525   : > { %2370 = vmatprep.subr.bf16.mxu1 %v2215_v12  ;;  %v2229_v12 = vsel %vm471_vm0, %v4877_v59, %v4875_v17 }
 0x526   : > { %2371 = vmatpush1.bf16.msra.mxu1 %v2214_v8  ;;  %v2047_v41 = vpop.permute.xlu1 %2046 }
 0x528   : > { %2176 = vrot.lane.b32.xlu1 %v1781_v47, %s3320_s9  ;;  %2162 = vrot.lane.b32.xlu0 %v1776_v30, %s3320_s9 }
 0x52a   : > { %v4921_v35 = vpop.permute.xlu1 %2070  ;;  %v2051_v58 = vpop.permute.xlu0 %2050 }
 0x52c   : > { %2160 = vrot.lane.b32.xlu0 %v4624_v25, %s3320_s9 }
 0x52e   : > { %v2097_v2 = vpop.permute.xlu1 %2096  ;;  %v2075_v25 = vpop.permute.xlu0 %2074 }
 0x52f   : > { %v4926_v13 = vsel %vm471_vm0, %v2095_v33, %v2097_v2  ;;  %v4932_v23 = vsel %vm471_vm0, %v2097_v2, %v2099_v49  ;;  %v3040_v2 = vld [vmem:[#allocation8] ss:$20 sps:$4 sm:$0xff]  }
 0x530   : > { %2170 = vrot.lane.b32.xlu0 %v1779_v52, %s3320_s9 }
 0x532   : > { %v2049_v63 = vpop.permute.xlu1 %2048 }
 0x534   : > { %2174 = vrot.lane.b32.xlu0 %v1780_v31, %s3320_s9 }
 0x536   : > { %v2073_v14 = vpop.permute.xlu1 %2072 }
 0x537   : > { %v2230_v15 = vsel %vm471_vm0, %v4921_v35, %v2073_v14 }
 0x538   : > { %2172 = vrot.lane.b32.xlu0 %v4704_v38, %s3320_s9  ;;  %v2219_v38 = vsel %vm471_vm0, %v4809_v37, %v4767_v44  ;;  %v2223_v44 = vsel %vm471_vm0, %v2049_v63, %v2051_v58  ;;  %v2222_v37 = vsel %vm471_vm0, %v2047_v41, %v2049_v63  ;;  %v2231_v41 = vsel %vm471_vm0, %v2073_v14, %v2075_v25  ;;  %v3043_v63 = vld [vmem:[#allocation8 + $0x2c] ss:$20 sps:$4 sm:$0xff]  }
 0x539   : > { %v2234_v25 = vsel %vm471_vm0, %v4749_v20, %v4797_v19 }
 0x53a   : > { %v2033_v61 = vpop.permute.xlu1 %2032  ;;  %v4941_v57 = vpop.permute.xlu0 %2100 }
 0x53e   : > { %v4943_v54 = vpop.permute.xlu1 %2106  ;;  %v4945_v3 = vpop.permute.xlu0 %2114 }
 0x542   : > { %v4947_v45 = vpop.permute.xlu1 %2116  ;;  %v2029_v53 = vpop.permute.xlu0 %2028 }
 0x546   : > { %v4949_v39 = vpop.permute.xlu1 %2104  ;;  %v2031_v60 = vpop.permute.xlu0 %2030 }
 0x547   : > { %v2217_v11 = vsel %vm471_vm0, %v2031_v60, %v2033_v61  ;;  %v2216_v16 = vsel %vm471_vm0, %v2029_v53, %v2031_v60  ;;  %v2236_v53 = vsel %vm471_vm0, %v4807_v50, %v4853_v4  ;;  %v3045_v60 = vld [vmem:[#allocation8 + $0x28] ss:$20 sps:$4 sm:$0xff]  }
 0x548   : > { %2372 = vmatprep.subr.bf16.mxu1 %v2217_v11  ;;  %v3046_v11 = vld [vmem:[#allocation8 + $0x54] ss:$20 sps:$4 sm:$0xff]  }
 0x549   : > { %2373 = vmatpush1.bf16.msra.mxu1 %v2216_v16 }
 0x54a   : > { %v2057_v40 = vpop.permute.xlu1 %2056  ;;  %2374 = vmatprep.subr.bf16.mxu1 %v2219_v38  ;;  %v2053_v56 = vpop.permute.xlu0 %2052  ;;  %v3048_v38 = vld [vmem:[#allocation8 + $0x50] ss:$20 sps:$4 sm:$0xff]  }
 0x54d   : > { %2375 = vmatpush1.bf16.msra.mxu1 %v2218_v24  ;;  %v3049_v24 = vld [vmem:[#allocation8 + $0x7c] ss:$20 sps:$4 sm:$0xff]  }
 0x54e   : > { %v2081_v51 = vpop.permute.xlu1 %2080  ;;  %2376 = vmatprep.subr.bf16.mxu1 %v2221_v36  ;;  %v2077_v10 = vpop.permute.xlu0 %2076 }
 0x551   : > { %2377 = vmatpush1.bf16.msra.mxu1 %v2220_v26 }
 0x552   : > { %v1793_v33 = vpop.permute.xlu1 %1792  ;;  %2378 = vmatprep.subr.bf16.mxu1 %v2223_v44  ;;  %v4966_v42 = vpop.permute.xlu0 %2102  ;;  %v1840_v44 = vld [vmem:[#allocation10 + $0x10] sm:$0xff] }
 0x553   : > { %v1807_v32 = vsel %vm5249_vm1, %v1793_v33, %v4300_v7  ;;  %v2241_v50 = vsel %vm471_vm0, %v4966_v42, %v4949_v39 }
 0x554   : > { %2182 = vrot.lane.b32.xlu0 %v1807_v32, %s3320_s9  ;;  %v3054_v32 = vld [vmem:[#allocation8 + $0xc] ss:$20 sps:$4 sm:$0xff]  }
 0x555   : > { %2379 = vmatpush1.bf16.msra.mxu1 %v2222_v37 }
 0x556   : > { %v4972_v34 = vpop.permute.xlu1 %2120  ;;  %v2055_v28 = vpop.permute.xlu0 %2054 }
 0x557   : > { %v2225_v48 = vsel %vm471_vm0, %v2055_v28, %v2057_v40  ;;  %v2224_v22 = vsel %vm471_vm0, %v2053_v56, %v2055_v28  ;;  %v1842_v28 = vld [vmem:[#allocation10 + $0x20] sm:$0xff] }
 0x558   : > { %2380 = vmatprep.subr.bf16.mxu1 %v2225_v48 }
 0x559   : > { %2381 = vmatpush1.bf16.msra.mxu1 %v2224_v22 }
 0x55a   : > { %v1795_v5 = vpop.permute.xlu1 %1794  ;;  %2382 = vmatprep.subr.bf16.mxu1 %v2227_v55  ;;  %v1791_v6 = vpop.permute.xlu0 %1790 }
 0x55b   : > { %v1806_v62 = vsel %vm5250_vm3, %v1791_v6, %v1793_v33 }
 0x55c   : > { %2180 = vrot.lane.b32.xlu1 %v1806_v62, %s3320_s9  ;;  %v1843_v62 = vld [vmem:[#allocation10 + $0x28] sm:$0xff] }
 0x55d   : > { %2383 = vmatpush1.bf16.msra.mxu1 %v2226_v43 }
 0x55e   : > { %v4987_v8 = vpop.permute.xlu1 %2118  ;;  %2384 = vmatprep.subr.bf16.mxu1 %v2229_v12  ;;  %v4989_v18 = vpop.permute.xlu0 %2112 }
 0x55f   : > { %v2246_v37 = vsel %vm471_vm0, %v4987_v8, %v4972_v34  ;;  %v1845_v8 = vld [vmem:[#allocation10 + $0x38] sm:$0xff] }
 0x560   : > { %2178 = vrot.lane.b32.xlu1 %v1791_v6, %s3320_s9  ;;  %v1844_v6 = vld [vmem:[#allocation10 + $0x30] sm:$0xff] }
 0x561   : > { %2385 = vmatpush1.bf16.msra.mxu1 %v4887_v46  ;;  %v2235_v46 = vsel %vm471_vm0, %v4797_v19, %v4757_v21 }
 0x562   : > { %v1801_v47 = vpop.permute.xlu1 %1800  ;;  %2386 = vmatprep.subr.bf16.mxu1 %v2231_v41  ;;  %v4994_v30 = vpop.permute.xlu0 %2122 }
 0x563   : > { %v1811_v16 = vsel %vm5254_vm9, %v1801_v47, %v4300_v7 }
 0x565   : > { %2387 = vmatpush1.bf16.msra.mxu1 %v2230_v15 }
 0x566   : > { %v4998_v27 = vpop.permute.xlu1 %2132  ;;  %v2079_v17 = vpop.permute.xlu0 %2078 }
 0x567   : > { %v2233_v59 = vsel %vm471_vm0, %v2079_v17, %v2081_v51  ;;  %v2232_v49 = vsel %vm471_vm0, %v2077_v10, %v2079_v17  ;;  %v1838_v51 = vld [vmem:[#allocation10] sm:$0xff]  ;;  %v2245_v10 = vsel %vm471_vm0, %v4945_v3, %v4947_v45 }
 0x568   : > { %2388 = vmatprep.subr.bf16.mxu1 %v2233_v59 }
 0x569   : > { %2389 = vmatpush1.bf16.msra.mxu1 %v2232_v49 }
 0x56a   : > { %v1803_v52 = vpop.permute.xlu1 %1802  ;;  %2431 = vmatprep.subr.bf16.mxu1 %v2235_v46  ;;  %v1797_v58 = vpop.permute.xlu0 %1796 }
 0x56b   : > { %v1808_v35 = vsel %vm5251_vm4, %v1795_v5, %v1797_v58  ;;  %v1809_v31 = vsel %vm5252_vm7, %v1797_v58, %v4300_v7 }
 0x56c   : > { %2188 = vrot.lane.b32.xlu1 %v1809_v31, %s3320_s9  ;;  %2186 = vrot.lane.b32.xlu0 %v1808_v35, %s3320_s9 }
 0x56d   : > { %2391 = vmatmul.mubr.bf16.vlgmr.msra.gmra.mrb[0].mxu1 %v3040_v2 }
 0x56e   : > { %2432 = vmatpush1.bf16.msra.mxu1 %v2234_v25  ;;  %v5013_v21 = vpop.permute.xlu1 %2130  ;;  %v1799_v14 = vpop.permute.xlu0 %1798  ;;  %2400 = vmatprep.mubr.bf16.mxu1 %v3043_v63 }
 0x56f   : > { %2433 = vmatprep.subr.bf16.mxu1 %v4860_v0  ;;  %v1810_v61 = vsel %vm5253_vm8, %v1799_v14, %v1801_v47  ;;  %v2250_v12 = vsel %vm471_vm0, %v5013_v21, %v4998_v27 }
 0x570   : > { %2184 = vrot.lane.b32.xlu0 %v1795_v5, %s3320_s9  ;;  %2192 = vrot.lane.b32.xlu1 %v1810_v61, %s3320_s9 }
 0x572   : > { %2434 = vmatpush1.bf16.msra.mxu1 %v2236_v53  ;;  %v5022_v20 = vpop.permute.xlu1 %2140  ;;  %v2125_v19 = vpop.permute.xlu0 %2124 }
 0x573   : > { %2435 = vmatprep.subr.bf16.mxu1 %v4932_v23  ;;  %v2240_v23 = vsel %vm471_vm0, %v4941_v57, %v4966_v42  ;;  %v2242_v57 = vsel %vm471_vm0, %v4943_v54, %v4825_v9  ;;  %v3051_v54 = vld [vmem:[#allocation8 + $0x78] ss:$20 sps:$4 sm:$0xff]   ;;  %v2247_v42 = vsel %vm471_vm0, %v4972_v34, %v4994_v30 }
 0x574   : > { %2194 = vrot.lane.b32.xlu0 %v1811_v16, %s3320_s9  ;;  %2190 = vrot.lane.b32.xlu1 %v1799_v14, %s3320_s9 }
 0x575   : > { %2401 = vmatmul.mubr.bf16.gmra.mrb[4].mxu1 %v3045_v60 }
 0x576   : > { %2436 = vmatpush1.bf16.msra.mxu1 %v4926_v13  ;;  %v5030_v0 = vpop.permute.xlu1 %2144  ;;  %v2135_v4 = vpop.permute.xlu0 %2134  ;;  %2410 = vmatprep.mubr.bf16.mxu1 %v3046_v11  ;;  %v2243_v13 = vsel %vm471_vm0, %v4825_v9, %v4795_v29  ;;  %v1839_v9 = vld [vmem:[#allocation10 + $0x8] sm:$0xff] }
 0x577   : > { %2437 = vmatprep.subr.bf16.mxu1 %v2241_v50  ;;  %v2251_v34 = vsel %vm471_vm0, %v4998_v27, %v2135_v4  ;;  %v3052_v50 = vld [vmem:[#allocation8 + $0x8] ss:$20 sps:$4 sm:$0xff]  }
 0x578   : > { %v3055_v4 = vld [vmem:[#allocation8 + $0x34] ss:$20 sps:$4 sm:$0xff]  }
 0x57a   : > { %2438 = vmatpush1.bf16.msra.mxu1 %v2240_v23  ;;  %v2129_v40 = vpop.permute.xlu1 %2128  ;;  %v1805_v56 = vpop.permute.xlu0 %1804  ;;  %v3057_v23 = vld [vmem:[#allocation8 + $0x30] ss:$20 sps:$4 sm:$0xff]  }
 0x57b   : > { %2439 = vmatprep.subr.bf16.mxu1 %v2243_v13  ;;  %v1812_v36 = vsel %vm5255_vm10, %v1803_v52, %v1805_v56  ;;  %v1813_v39 = vsel %vm5256_vm2, %v1805_v56, %v4300_v7  ;;  %v2244_v7 = vsel %vm471_vm0, %v4989_v18, %v4945_v3  ;;  %v1841_v3 = vld [vmem:[#allocation10 + $0x18] sm:$0xff]  ;;  %v3063_v56 = vld [vmem:[#allocation8 + $0x80] ss:$20 sps:$4 sm:$0xff]  }
 0x57c   : > { %2200 = vrot.lane.b32.xlu1 %v1813_v39, %s3320_s9  ;;  %2198 = vrot.lane.b32.xlu0 %v1812_v36, %s3320_s9  ;;  %v3061_v13 = vld [vmem:[#allocation8 + $0x84] ss:$20 sps:$4 sm:$0xff]  }
 0x57d   : > { %2411 = vmatmul.mubr.bf16.gmra.mrb[8].mxu1 %v3048_v38  ;;  %v3058_v38 = vld [vmem:[#allocation8 + $0x5c] ss:$20 sps:$4 sm:$0xff]  }
 0x57e   : > { %2440 = vmatpush1.bf16.msra.mxu1 %v2242_v57  ;;  %v2143_v29 = vpop.permute.xlu1 %2142  ;;  %v2139_v26 = vpop.permute.xlu0 %2138  ;;  %2420 = vmatprep.mubr.bf16.mxu1 %v3049_v24 }
 0x57f   : > { %2441 = vmatprep.subr.bf16.mxu1 %v2245_v10  ;;  %v2253_v41 = vsel %vm471_vm0, %v2139_v26, %v5022_v20  ;;  %v2254_v27 = vsel %vm471_vm0, %v2143_v29, %v5030_v0 }
 0x580   : > { %1848 = vperm.xlu1 %3011, %v1838_v51   ;;  %2196 = vrot.lane.b32.xlu0 %v1803_v52, %s3320_s9  ;;  %s3230_s9 = sshll.u32 %s3326_s8, 4  ;;  %s3231_s9 = int_to_ptr.vmem [resolvable:$false] %s3230_s9 }
 0x581   : > { %s3232_s23 = scalar_lea.vmem %s3231_s9, 4096  ;;  %p3233_p11 = scmp.lt.s32.totalorder %s5141_s24, %s3231_s9 }
 0x582   : > { %2442 = vmatpush1.bf16.msra.mxu1 %v2244_v7  ;;  %v2157_v33 = vpop.permute.xlu1 %2156  ;;  %v2137_v45 = vpop.permute.xlu0 %2136  ;;  %p3234_p2 = scmp.lt.s32.totalorder %s3232_s23, %s3226_s15 }
 0x583   : > { %2443 = vmatprep.subr.bf16.mxu1 %v2247_v42  ;;  %v2252_v30 = vsel %vm471_vm0, %v2137_v45, %v2139_v26 }
 0x584   : > { %1858 = vperm.xlu1 %3011, %v1840_v44   ;;  %1853 = vperm.xlu0 %3010, %v1839_v9   ;;  %p3235_p1 = por %p3234_p2, %p3233_p11 }
 0x585   : > { %2421 = vmatmul.mubr.bf16.gmra.mrb[12].mxu1 %v3051_v54 }
 0x586   : > { %2444 = vmatpush1.bf16.msra.mxu1 %v2246_v37  ;;  %v2127_v48 = vpop.permute.xlu0 %2126  ;;  %2463 = vmatprep.mubr.bf16.mxu1 %v3054_v32  ;;  %v2155_v5 = vpop.permute.xlu1 %2154  ;;  %p3236_p12 = pnand %p3235_p1, %p3229_p7 }
 0x587   : > { %v2248_v22 = vsel %vm471_vm0, %v2125_v19, %v2127_v48  ;;  %v2249_v55 = vsel %vm471_vm0, %v2127_v48, %v2129_v40  ;;  %v2258_v35 = vsel %vm471_vm0, %v2155_v5, %v2157_v33  ;;  %v3060_v40 = vld [vmem:[#allocation8 + $0x58] ss:$20 sps:$4 sm:$0xff]   ;;  %v3066_v5 = vld [vmem:[#allocation8 + $0x60] ss:$20 sps:$4 sm:$0xff]  }
 0x588   : > { %1868 = vperm.xlu1 %3011, %v1842_v28   ;;  %1863 = vperm.xlu0 %3010, %v1841_v3  }
 0x589   : > { %2445 = vmatprep.subr.bf16.mxu1 %v2249_v55  ;;  %v3065_v55 = vld [vmem:[#allocation8 + $0x38] ss:$20 sps:$4 sm:$0xff]  }
 0x58a   : > { %2446 = vmatpush1.bf16.msra.mxu1 %v2248_v22  ;;  %v2147_v43 = vpop.permute.xlu0 %2146  ;;  %v2153_v18 = vpop.permute.xlu1 %2152  ;;  %v3064_v22 = vld [vmem:[#allocation8 + $0x10] ss:$20 sps:$4 sm:$0xff]  }
 0x58b   : > { %2447 = vmatprep.subr.bf16.mxu1 %v2251_v34  ;;  %v2255_v15 = vsel %vm471_vm0, %v5030_v0, %v2147_v43 }
 0x58c   : > { %1878 = vperm.xlu1 %3011, %v1844_v6   ;;  %1873 = vperm.xlu0 %3010, %v1843_v62   ;;  %v3067_v6 = vld [vmem:[#allocation8 + $0x88] ss:$20 sps:$4 sm:$0xff]  }
 0x58e   : > { %2448 = vmatpush1.bf16.msra.mxu1 %v2250_v12  ;;  %v2149_v47 = vpop.permute.xlu0 %2148  ;;  %v2165_v59 = vpop.permute.xlu1 %2164 }
 0x58f   : > { %2449 = vmatprep.subr.bf16.mxu1 %v2253_v41 }
 0x590   : > { %1883 = vperm.xlu0 %3010, %v1845_v8  }
 0x592   : > { %2450 = vmatpush1.bf16.msra.mxu1 %v2252_v30  ;;  %v2159_v17 = vpop.permute.xlu0 %2158  ;;  %v2169_v52 = vpop.permute.xlu1 %2168 }
 0x593   : > { %2451 = vmatprep.subr.bf16.mxu1 %v2255_v15  ;;  %v2259_v58 = vsel %vm471_vm0, %v2157_v33, %v2159_v17 }
 0x596   : > { %2452 = vmatpush1.bf16.msra.mxu1 %v2254_v27  ;;  %v2151_v49 = vpop.permute.xlu0 %2150  ;;  %v2167_v14 = vpop.permute.xlu1 %2166 }
 0x597   : > { %v2256_v46 = vsel %vm471_vm0, %v2149_v47, %v2151_v49  ;;  %v2257_v2 = vsel %vm471_vm0, %v2151_v49, %v2153_v18  ;;  %v2262_v60 = vsel %vm471_vm0, %v2167_v14, %v2169_v52  ;;  %v3068_v47 = vld [vmem:[%s3575_s6] sm:$0xff]  ;;  %v3070_v49 = vld [vmem:[%s3575_s6 + $0x10] sm:$0xff] }
 0x598   : > { %2453 = vmatprep.subr.bf16.mxu1 %v2257_v2  ;;  %v3071_v2 = vld [vmem:[%s3575_s6 + $0x18] sm:$0xff] }
 0x59a   : > { %2454 = vmatpush1.bf16.msra.mxu1 %v2256_v46  ;;  %v2163_v63 = vpop.permute.xlu0 %2162  ;;  %v2177_v20 = vpop.permute.xlu1 %2176 }
 0x59b   : > { %2455 = vmatprep.subr.bf16.mxu1 %v2259_v58  ;;  %v2261_v31 = vsel %vm471_vm0, %v2163_v63, %v2165_v59  ;;  %v3069_v59 = vld [vmem:[%s3575_s6 + $0x8] sm:$0xff] }
 0x59e   : > { %2456 = vmatpush1.bf16.msra.mxu1 %v2258_v35  ;;  %v2161_v25 = vpop.permute.xlu0 %2160 }
 0x59f   : > { %2457 = vmatprep.subr.bf16.mxu1 %v2261_v31  ;;  %v2260_v21 = vsel %vm471_vm0, %v2161_v25, %v2163_v63 }
 0x5a2   : > { %2458 = vmatpush1.bf16.msra.mxu1 %v2260_v21  ;;  %v2171_v61 = vpop.permute.xlu0 %2170 }
 0x5a3   : > { %v2263_v53 = vsel %vm471_vm0, %v2169_v52, %v2171_v61  ;;  %v3072_v61 = vld [vmem:[%s3575_s6 + $0x20] sm:$0xff] }
 0x5a4   : > { %2459 = vmatprep.subr.bf16.mxu1 %v2263_v53 }
 0x5a6   : > { %2460 = vmatpush1.bf16.msra.mxu1 %v2262_v60  ;;  %v2175_v19 = vpop.permute.xlu0 %2174 }
 0x5a7   : > { %v2265_v11 = vsel %vm471_vm0, %v2175_v19, %v2177_v20 }
 0x5a8   : > { %2461 = vmatprep.subr.bf16.mxu1 %v2265_v11 }
 0x5aa   : > { %v2173_v16 = vpop.permute.xlu0 %2172 }
 0x5ab   : > { %v2264_v0 = vsel %vm471_vm0, %v2173_v16, %v2175_v19  ;;  %v3073_v19 = vld [vmem:[%s3575_s6 + $0x28] sm:$0xff] }
 0x5ac   : > { %2462 = vmatpush1.bf16.msra.mxu1 %v2264_v0  ;;  %v3074_v0 = vld [vmem:[%s3575_s6 + $0x30] sm:$0xff] }
 0x5af   : > { %2464 = vmatmul.mubr.bf16.vlgmr.msra.gmra.mrb[0].mxu1 %v3052_v50 }
 0x5b0   : > { %2473 = vmatprep.mubr.bf16.mxu1 %v3055_v4  ;;  %v3075_v4 = vld [vmem:[%s3575_s6 + $0x38] sm:$0xff] }
 0x5b7   : > { %2474 = vmatmul.mubr.bf16.gmra.mrb[4].mxu1 %v3057_v23 }
 0x5b8   : > { %2483 = vmatprep.mubr.bf16.mxu1 %v3058_v38 }
 0x5bf   : > { %2484 = vmatmul.mubr.bf16.gmra.mrb[8].mxu1 %v3060_v40 }
 0x5c0   : > { %2493 = vmatprep.mubr.bf16.mxu1 %v3061_v13 }
 0x5c6   : > { %v2183_v24 = vpop.permute.xlu0 %2182 }
 0x5c7   : > { %2494 = vmatmul.mubr.bf16.gmra.mrb[12].mxu1 %v3063_v56 }
 0x5c8   : > { %2536 = vmatprep.mubr.bf16.mxu1 %v3313_v1 }
 0x5ce   : > { %v2181_v36 = vpop.permute.xlu1 %2180 }
 0x5cf   : > { %v2267_v39 = vsel %vm471_vm0, %v2181_v36, %v2183_v24 }
 0x5d0   : > { %2504 = vmatprep.subr.bf16.mxu1 %v2267_v39 }
 0x5d2   : > { %v2179_v57 = vpop.permute.xlu1 %2178 }
 0x5d3   : > { %v2266_v51 = vsel %vm471_vm0, %v2179_v57, %v2181_v36  ;;  %v3076_v57 = vld [vmem:[%s3575_s6 + $0x40] sm:$0xff] }
 0x5d4   : > { %2505 = vmatpush1.bf16.msra.mxu1 %v2266_v51 }
 0x5de   : > { %v2189_v29 = vpop.permute.xlu1 %2188  ;;  %v2187_v10 = vpop.permute.xlu0 %2186 }
 0x5df   : > { %v2269_v26 = vsel %vm471_vm0, %v2187_v10, %v2189_v29 }
 0x5e0   : > { %2506 = vmatprep.subr.bf16.mxu1 %v2269_v26  ;;  %v3077_v26 = vld [vmem:[%s3575_s6 + $0x48] sm:$0xff] }
 0x5e2   : > { %v2193_v7 = vpop.permute.xlu1 %2192  ;;  %v2185_v44 = vpop.permute.xlu0 %2184 }
 0x5e3   : > { %v2268_v9 = vsel %vm471_vm0, %v2185_v44, %v2187_v10 }
 0x5e4   : > { %2507 = vmatpush1.bf16.msra.mxu1 %v2268_v9  ;;  %v3078_v9 = vld [vmem:[%s3575_s6 + $0x50] sm:$0xff] }
 0x5e6   : > { %v2191_v54 = vpop.permute.xlu1 %2190  ;;  %v2195_v33 = vpop.permute.xlu0 %2194 }
 0x5e7   : > { %v2270_v42 = vsel %vm471_vm0, %v2191_v54, %v2193_v7  ;;  %v2271_v45 = vsel %vm471_vm0, %v2193_v7, %v2195_v33  ;;  %v3079_v33 = vld [vmem:[%s3575_s6 + $0x58] sm:$0xff] }
 0x5e8   : > { %2508 = vmatprep.subr.bf16.mxu1 %v2271_v45 }
 0x5e9   : > { %2509 = vmatpush1.bf16.msra.mxu1 %v2270_v42 }
 0x5ee   : > { %v2201_v32 = vpop.permute.xlu1 %2200  ;;  %v2199_v37 = vpop.permute.xlu0 %2198 }
 0x5ef   : > { %v2273_v28 = vsel %vm471_vm0, %v2199_v37, %v2201_v32 }
 0x5f0   : > { %2510 = vmatprep.subr.bf16.mxu1 %v2273_v28 }
 0x5f2   : > { %v2197_v3 = vpop.permute.xlu0 %2196 }
 0x5f3   : > { %v2272_v48 = vsel %vm471_vm0, %v2197_v3, %v2199_v37 }
 0x5f4   : > { %2511 = vmatpush1.bf16.msra.mxu1 %v2272_v48 }
 0x5f7   : > { %2795 = vmatmul.mubr.msk.bf16.vlgmr.msra.gmra.mrb[0].mxu1 %vm1274_vm14, %v3064_v22 }
 0x5f8   : > { %2546 = vmatprep.mubr.bf16.mxu1 %v3313_v1 }
 0x5ff   : > { %2796 = vmatmul.mubr.msk.bf16.gmra.mrb[4].mxu1 %vm1274_vm14, %v3065_v55  ;;  %v1849_v62 = vpop.permute.xlu1 %1848  ;;  %v3080_v55 = vld [vmem:[%s3575_s6 + $0x60] sm:$0xff] }
 0x600   : > { %2556 = vmatprep.mubr.bf16.mxu1 %v3313_v1 }
 0x603   : > { %v1854_v8 = vpop.permute.xlu0 %1853  ;;  %v1859_v58 = vpop.permute.xlu1 %1858 }
 0x607   : > { %2797 = vmatmul.mubr.msk.bf16.gmra.mrb[8].mxu1 %vm1274_vm14, %v3066_v5  ;;  %v1864_v25 = vpop.permute.xlu0 %1863  ;;  %v1869_v38 = vpop.permute.xlu1 %1868 }
 0x608   : > { %2566 = vmatprep.mubr.bf16.mxu1 %v3313_v1 }
 0x60b   : > { %v1874_v24 = vpop.permute.xlu0 %1873  ;;  %v1879_v45 = vpop.permute.xlu1 %1878 }
 0x60f   : > { %2798 = vmatmul.mubr.msk.bf16.gmra.mrb[12].mxu1 %vm1274_vm14, %v3067_v6  ;;  %v1884_v3 = vpop.permute.xlu0 %1883 }
 0x6ca   : > { %v2538_v34 = vpop.f32.mrb[0].mxu1 }
 0x6cb   : > { %v2822_v43 = vadd.f32 %v2538_v34, %v1849_v62  ;;  %v2540_v12 = vpop.f32.mrb[1].mxu1  ;;  %v3081_v34 = vld [vmem:[%s3575_s6 + $0x68] sm:$0xff] }
 0x6cc   : > { %v2823_v18 = vadd.f32 %v2540_v12, %v1849_v62  ;;  %v2542_v41 = vpop.f32.mrb[2].mxu1 }
 0x6cd   : > { %v2577_v30 = vadd.f32 %v3068_v47, %v2822_v43  ;;  %v2824_v15 = vadd.f32 %v2542_v41, %v1854_v8  ;;  %v2544_v17 = vpop.f32.mrb[3].mxu1  ;;  %v3083_v41 = vld [vmem:[%s3575_s6 + $0x78] sm:$0xff] }
 0x6ce   : > { %v2578_v27 = vadd.f32 %v3069_v59, %v2823_v18  ;;  %v2825_v1 = vadd.f32 %v2544_v17, %v1854_v8  ;;  %v3082_v8 = vld [vmem:[%s3575_s6 + $0x70] sm:$0xff] }
 0x6cf   : > { %2593 = vst [vmem:[%s5106_s10] sm:$0xff] %v2577_v30  ;;  %v2579_v46 = vadd.f32 %v3070_v49, %v2824_v15 }
 0x6d0   : > { %2594 = vst [vmem:[%s5106_s10 + $0x8] sm:$0xff] %v2578_v27  ;;  %v2580_v52 = vadd.f32 %v3071_v2, %v2825_v1 }
 0x6d1   : > { %2595 = vst [vmem:[%s5106_s10 + $0x10] sm:$0xff] %v2579_v46 }
 0x6d2   : > { %2596 = vst [vmem:[%s5106_s10 + $0x18] sm:$0xff] %v2580_v52  ;;  %v2548_v63 = vpop.f32.mrb[4].mxu1 }
 0x6d3   : > { %v2826_v35 = vadd.f32 %v2548_v63, %v1859_v58  ;;  %v2550_v31 = vpop.f32.mrb[5].mxu1 }
 0x6d4   : > { %v2827_v21 = vadd.f32 %v2550_v31, %v1859_v58  ;;  %v2552_v14 = vpop.f32.mrb[6].mxu1 }
 0x6d5   : > { %v2581_v53 = vadd.f32 %v3072_v61, %v2826_v35  ;;  %v2828_v60 = vadd.f32 %v2552_v14, %v1864_v25  ;;  %v2554_v20 = vpop.f32.mrb[7].mxu1 }
 0x6d6   : > { %v2582_v11 = vadd.f32 %v3073_v19, %v2827_v21  ;;  %v2829_v16 = vadd.f32 %v2554_v20, %v1864_v25 }
 0x6d7   : > { %2597 = vst [vmem:[%s5106_s10 + $0x20] sm:$0xff] %v2581_v53  ;;  %v2583_v50 = vadd.f32 %v3074_v0, %v2828_v60 }
 0x6d8   : > { %2598 = vst [vmem:[%s5106_s10 + $0x28] sm:$0xff] %v2582_v11  ;;  %v2584_v23 = vadd.f32 %v3075_v4, %v2829_v16 }
 0x6d9   : > { %2599 = vst [vmem:[%s5106_s10 + $0x30] sm:$0xff] %v2583_v50 }
 0x6da   : > { %2600 = vst [vmem:[%s5106_s10 + $0x38] sm:$0xff] %v2584_v23  ;;  %v2558_v40 = vpop.f32.mrb[8].mxu1 }
 0x6db   : > { %v2830_v13 = vadd.f32 %v2558_v40, %v1869_v38  ;;  %v2560_v56 = vpop.f32.mrb[9].mxu1 }
 0x6dc   : > { %v2831_v36 = vadd.f32 %v2560_v56, %v1869_v38  ;;  %v2562_v39 = vpop.f32.mrb[10].mxu1 }
 0x6dd   : > { %v2585_v51 = vadd.f32 %v3076_v57, %v2830_v13  ;;  %v2832_v29 = vadd.f32 %v2562_v39, %v1874_v24  ;;  %v2564_v10 = vpop.f32.mrb[11].mxu1 }
 0x6de   : > { %v2586_v7 = vadd.f32 %v3077_v26, %v2831_v36  ;;  %v2833_v44 = vadd.f32 %v2564_v10, %v1874_v24 }
 0x6df   : > { %2601 = vst [vmem:[%s5106_s10 + $0x40] sm:$0xff] %v2585_v51  ;;  %v2587_v54 = vadd.f32 %v3078_v9, %v2832_v29 }
 0x6e0   : > { %2602 = vst [vmem:[%s5106_s10 + $0x48] sm:$0xff] %v2586_v7  ;;  %v2588_v42 = vadd.f32 %v3079_v33, %v2833_v44 }
 0x6e1   : > { %2603 = vst [vmem:[%s5106_s10 + $0x50] sm:$0xff] %v2587_v54 }
 0x6e2   : > { %2604 = vst [vmem:[%s5106_s10 + $0x58] sm:$0xff] %v2588_v42  ;;  %v2568_v32 = vpop.f32.mrb[12].mxu1 }
 0x6e3   : > { %v2834_v37 = vadd.f32 %v2568_v32, %v1879_v45  ;;  %v2570_v28 = vpop.f32.mrb[13].mxu1 }
 0x6e4   : > { %v2835_v48 = vadd.f32 %v2570_v28, %v1879_v45  ;;  %v2572_v22 = vpop.f32.mrb[14].mxu1 }
 0x6e5   : > { %v2589_v5 = vadd.f32 %v3080_v55, %v2834_v37  ;;  %v2836_v6 = vadd.f32 %v2572_v22, %v1884_v3  ;;  %v2574_v62 = vpop.f32.mrb[15].mxu1 }
 0x6e6   : > { %v2590_v43 = vadd.f32 %v3081_v34, %v2835_v48  ;;  %v2837_v12 = vadd.f32 %v2574_v62, %v1884_v3 }
 0x6e7   : > { %2605 = vst [vmem:[%s5106_s10 + $0x60] sm:$0xff] %v2589_v5  ;;  %v2591_v18 = vadd.f32 %v3082_v8, %v2836_v6 }
 0x6e8   : > { %2606 = vst [vmem:[%s5106_s10 + $0x68] sm:$0xff] %v2590_v43  ;;  %v2592_v47 = vadd.f32 %v3083_v41, %v2837_v12 }
 0x6e9   : > { %2607 = vst [vmem:[%s5106_s10 + $0x70] sm:$0xff] %v2591_v18 }
 0x6ea   : > { %2608 = vst [vmem:[%s5106_s10 + $0x78] sm:$0xff] %v2592_v47 }
 0x6eb   : > { %3239 = shalt.err (!%p3236_p12)
}
 0x6ec   : > { %s3240_s6 = scalar_lea.hbm %s5139_s13, 2048  ;;  %s3244_s16 = scalar_lea.hbm %s5193_s5, 8192 }
 0x6ed   : > { %p3241_p9 = scmp.ne.s32.totalorder %s5139_s13, %s3240_s6  ;;  %p3245_p4 = scmp.lt.u32.totalorder %s5139_s13, %s5193_s5 }
 0x6ee   : > { %p3246_p8 = scmp.lt.u32.totalorder %s3244_s16, %s3240_s6  ;;  %p3248_p3 = scmp.lt.u32.totalorder %s3240_s6, %s5139_s13 }
 0x6ef   : > { %p3242_p13 = pnand %p3241_p9, %p3517_p0 }
 0x6f0   : > { %p3247_p6 = por %p3246_p8, %p3245_p4 }
 0x6f1   : > { %p3243_p10 = pneg %p3242_p13 }
 0x6f2   : > { %p3249_p5 = por %p3248_p3, %p3247_p6 }
 0x6f4   : > { %p3250_p7 = pnand %p3249_p5, %p3243_p10 }
 0x6f6   : > { %3253 = shalt.err (!%p3250_p7)
}
 0x6f7   : > { %s3327_s29 = smov 256   ;;  %s3328_s26 = smov 16  }
 0x6f8   : > { %2920 = dma.vmem_to_hbm [thread:$0]  (%p3517_p0), %s5141_s24, 2048, %s5139_s13, %s2610_s22, %s3327_s29, %s3327_s29, %s3328_s26  }
 0x6f9 PF: > { %p2952_p11 = scmp.ge.s32.totalorder %s3300_s21, 2  ;;  %s2638_s11 = sand.u32 1, %s3288_s18  }
 0x6fa   : > { %p5257_p2 = scmp.ne.s32.totalorder %s5204_s25, 0  ;;  %s2639_s15 = scalar_lea.sflag [#allocation4], %s2638_s11 }
 0x6fc   : > { %p2940_p1 = pnand %p2952_p11, %p5257_p2 }
 0x6fe   : > { %3283 = dma.done.wait (!%p2940_p1), %s2639_s15, 2048  }
 0x6ff   : > { %3285 = vsyncadd (!%p2940_p1), %s2639_s15, 4294965248  ;;  %p20_p12 = scmp.ge.s32.totalorder %s3507_s14, 6   ;;  %s5258_s18 = smov %s3292_s19 }
 0x700   : > { %s5259_s19 = smov %s3296_s20  ;;  %s5260_s20 = smov %s3523_s7 }
 0x701   : > { %s5261_s21 = smov %s3507_s14  ;;  %22 = sbr.rel (!%p20_p12) target bundleno = 7 (0x7), region = 101 }
 0x708   :  { %2644 = vsyncpa [#allocation3], 1 }
 0x709   :  { %2646 = vsyncpa [#allocation3 + $0x1], 1 }
 0x70a   :  { %2647 = vsyncpa [#allocation6], 1 }
 0x70b   :  { %2648 = vsyncpa [#allocation9], 1 }
 0x70c   :  { %2649 = vsyncpa [#allocation4], 1 }
 0x70d   :  { %2651 = vsyncpa [#allocation4 + $0x1], 1 }

</bundles_post_ra>
